<compile_context>
chip_gen: v7x
topology: tpu7x:2x2x1
jax: 0.10.0
libtpu: 0.0.40
codegen_flags: <defaults>
</compile_context>

<pallas_src>
import numpy as np
import jax
import jax.numpy as jnp
from jax import lax
from jax.experimental import pallas as pl
from jax.experimental.pallas import tpu as pltpu

# ----------------------------- hyper-parameters ------------------------------
OBS = 11            # args.obs            (fc_a_X = nn.Linear(11, 12) forces obs == 11)
PREDS = 12          # args.preds
PREDS_STEP = 1      # args.preds_step  -> n_classes = 12 (fc_a_Y = nn.Linear(12, 12))
N_CLASSES = PREDS // PREDS_STEP
IN_CH = 3           # args.input_channels (H_yy reshaped to (3, -1))
LSTM_H = 16         # args.lstm_hidden_size
TCN_CH = 8          # args.tcn_channel_size
TCN_LAYERS = 2      # args.tcn_layers
TCN_K = 2           # args.tcn_kernels
CTX_IN = 2          # args.num_context_input_c
CTX_OUT = 4         # args.num_context_output_c
CNN_K = 2           # args.cnn_kernels (context seq OBS -> OBS - CNN_K + 1)
CVAE_CH = 8         # args.cvae_channel_size
LATENT = 4          # args.cvae_hidden
MLP_LAYER = 8       # args.mlp_layer
N_AGENTS = 2

TCN_CHANNELS = [TCN_CH] * TCN_LAYERS + [N_CLASSES]   # [8, 8, 12]
L_PAD = 16                                            # padded time length (sublane aligned)
OUT_LANES = 128                                       # lane-dense packed output width


# ------------------------------ parameter init -------------------------------
def init_params(key):
    p = {}

    def add(name, shape, scale=0.1):
        nonlocal key
        key, sub = jax.random.split(key)
        p[name] = scale * jax.random.normal(sub, shape, jnp.float32)

    # LstmNet encoders (1 LSTM layer, input_size = 1, fc: hidden -> n_classes)
    # TODO(synk): LstmNet not provided; reconstructed as LSTM + per-step Linear whose
    # output is (1, n_classes, seq) so that mean(dim=1) gives (1, 1, seq) for fc_a_*.
    for tag in ("X", "Y"):
        add(f"lstm{tag}_wih", (1, 4 * LSTM_H))
        add(f"lstm{tag}_whh", (LSTM_H, 4 * LSTM_H))
        add(f"lstm{tag}_b", (1, 4 * LSTM_H))          # combined bias (b_ih + b_hh)
        add(f"lstm{tag}_fcw", (LSTM_H, N_CLASSES))
        add(f"lstm{tag}_fcb", (1, N_CLASSES))
    # fc_a_X : Linear(11, 12), fc_a_Y : Linear(12, 12)  (PyTorch (out,in) layout)
    add("fcaX_w", (N_CLASSES, OBS))
    add("fcaX_b", (N_CLASSES, 1))
    add("fcaY_w", (N_CLASSES, PREDS))
    add("fcaY_b", (N_CLASSES, 1))
    # TemporalConvNets (causal dilated conv blocks, eval mode, weight_norm folded)
    for tag in ("x", "y"):
        cin = IN_CH
        for i, cout in enumerate(TCN_CHANNELS):
            add(f"tcn{tag}{i}_c1w", (TCN_K, cout, cin))
            add(f"tcn{tag}{i}_c1b", (cout, 1))
            add(f"tcn{tag}{i}_c2w", (TCN_K, cout, cout))
            add(f"tcn{tag}{i}_c2b", (cout, 1))
            if cin != cout:                       # 1x1 downsample conv
                add(f"tcn{tag}{i}_dw", (cout, cin))
                add(f"tcn{tag}{i}_db", (cout, 1))
            cin = cout
    # context_conv: Conv1d(CTX_IN, 1, CNN_K) ; context_linear: Linear(OBS-1, CTX_OUT)
    add("ctxconv_w", (CNN_K, 1, CTX_IN))
    add("ctxconv_b", (1, 1))
    add("ctxlin_w", (OBS - 1, CTX_OUT))
    add("ctxlin_b", (1, CTX_OUT))
    # CVAE encoder: Linear(144 + GAT_IN, 8) split over [flat(enc_y) | flat(enc_x) | ctx]
    # TODO(synk): CVAE internals reconstructed (MLP encoder/decoder, reparameterize).
    add("enc0_wy", (N_CLASSES, PREDS, CVAE_CH))
    add("enc0_wx", (N_CLASSES, OBS, CVAE_CH))
    add("enc0_wc", (CTX_OUT, CVAE_CH))
    add("enc0_b", (1, CVAE_CH))
    add("enc1_w", (CVAE_CH, CVAE_CH))
    add("enc1_b", (1, CVAE_CH))
    add("mu_w", (CVAE_CH, LATENT))
    add("mu_b", (1, LATENT))
    add("lv_w", (CVAE_CH, LATENT))
    add("lv_b", (1, LATENT))
    # CVAE decoder: Linear(LATENT + GAT_IN, 8) split over [z | flat(enc_x) | ctx]
    add("dec0_wz", (LATENT, CVAE_CH))
    add("dec0_wx", (N_CLASSES, OBS, CVAE_CH))
    add("dec0_wc", (CTX_OUT, CVAE_CH))
    add("dec0_b", (1, CVAE_CH))
    add("dec1_w", (CVAE_CH, CVAE_CH))
    add("dec1_b", (1, CVAE_CH))
    add("dec2_w", (CVAE_CH, IN_CH * MLP_LAYER))
    add("dec2_b", (1, IN_CH * MLP_LAYER))
    # linear_decoder: Linear(MLP_LAYER, N_CLASSES)
    add("ld_w", (MLP_LAYER, N_CLASSES), 0.05)
    add("ld_b", (1, N_CLASSES), 0.05)
    return p


# -------------------- host-side weight repack into one slab -------------------
def pack_params(p):
    """One-time host-side repack of all weights into a single (rows, 128) f32 slab.
    Several sub-module heads are folded algebraically at pack time (class head,
    linear_decoder + acc_to_abs, fused enc/dec conditional weights)."""
    pn = {k: np.asarray(v, np.float32) for k, v in p.items()}
    H = LSTM_H
    entries = []

    def gate_expand(w, branch):
        # w: (R, 4H) gate order [i|f|g|o]; combined (R, 8H) layout where each 2H
        # gate block is [X(0:H) | Y(H:2H)].
        out = np.zeros((w.shape[0], 8 * H), np.float32)
        for g in range(4):
            c0 = g * 2 * H + branch * H
            out[:, c0:c0 + H] = w[:, g * H:(g + 1) * H]
        return out

    # Fused X/Y altitude-LSTM weights (block-diagonal recurrence over a 32-wide state).
    whh = np.concatenate([gate_expand(pn["lstmX_whh"], 0),
                          gate_expand(pn["lstmY_whh"], 1)], axis=0)      # (32, 128)
    wih = np.concatenate([gate_expand(pn["lstmX_wih"], 0),
                          gate_expand(pn["lstmY_wih"], 1)], axis=0)      # (2, 128)
    b_l = gate_expand(pn["lstmX_b"], 0) + gate_expand(pn["lstmY_b"], 1)  # (1, 128)
    entries += [("lstm_whh", whh), ("lstm_wih", wih), ("lstm_b", b_l)]

    # Folded class head: mean_j(h_t @ fcw + fcb) fed to fc_a_X / fc_a_Y, fully
    # flattened into one (PREDS*32, 24) weight applied to [h_0 | ... | h_11].
    fcmX = np.mean(pn["lstmX_fcw"], axis=1)          # (16,)
    fcmY = np.mean(pn["lstmY_fcw"], axis=1)          # (16,)
    fcbX = float(np.mean(pn["lstmX_fcb"]))
    fcbY = float(np.mean(pn["lstmY_fcb"]))
    faXw = pn["fcaX_w"].T                            # (11, 12)
    faYw = pn["fcaY_w"].T                            # (12, 12)
    head_w = np.zeros((PREDS * 2 * H, 2 * N_CLASSES), np.float32)
    for t in range(PREDS):
        if t < OBS:                                  # X sequence has OBS real steps
            head_w[t * 2 * H: t * 2 * H + H, 0:N_CLASSES] = np.outer(fcmX, faXw[t])
        head_w[t * 2 * H + H:(t + 1) * 2 * H, N_CLASSES:] = np.outer(fcmY, faYw[t])
    head_b = np.concatenate(
        [fcbX * np.sum(faXw, axis=0, keepdims=True) + pn["fcaX_b"].T,
         fcbY * np.sum(faYw, axis=0, keepdims=True) + pn["fcaY_b"].T], axis=1)  # (1,24)
    entries += [("head_w", head_w), ("head_b", head_b)]

    # TCN conv weights, taps stacked on rows in (cin, cout) orientation.
    for tag in ("x", "y"):
        cin = IN_CH
        for i, cout in enumerate(TCN_CHANNELS):
            for cname in ("c1", "c2"):
                w = pn[f"tcn{tag}{i}_{cname}w"]                     # (K, cout, c_in)
                w2 = np.concatenate([w[k].T for k in range(TCN_K)], axis=0)
                entries += [(f"tcn{tag}{i}_{cname}w", w2),
                            (f"tcn{tag}{i}_{cname}b", pn[f"tcn{tag}{i}_{cname}b"].T)]
            if cin != cout:
                entries += [(f"tcn{tag}{i}_dw", pn[f"tcn{tag}{i}_dw"].T),
                            (f"tcn{tag}{i}_db", pn[f"tcn{tag}{i}_db"].T)]
            cin = cout

    entries += [("ctxconv_w", pn["ctxconv_w"][:, 0, :]),            # (K, CTX_IN)
                ("ctxconv_b", pn["ctxconv_b"]),
                ("ctxlin_w", pn["ctxlin_w"]), ("ctxlin_b", pn["ctxlin_b"])]

    def flat_w(w3):
        # (N_CLASSES, T, F) -> (T*N_CLASSES, F); row index = t*N_CLASSES + c, matching
        # the in-kernel flatten of the (A, T, C) activations.
        return np.transpose(w3, (1, 0, 2)).reshape(-1, w3.shape[2])

    # Fused conditional weights: enc/dec share flat(enc_x) and ctx inputs.
    wx_comb = np.concatenate([flat_w(pn["enc0_wx"]), flat_w(pn["dec0_wx"])], axis=1)
    wc_comb = np.concatenate([pn["enc0_wc"], pn["dec0_wc"]], axis=1)
    entries += [("enc0_wy", flat_w(pn["enc0_wy"])),
                ("wx_comb", wx_comb), ("wc_comb", wc_comb),
                ("enc0_b", pn["enc0_b"]),
                ("enc1_w", pn["enc1_w"]), ("enc1_b", pn["enc1_b"]),
                ("mulv_w", np.concatenate([pn["mu_w"], pn["lv_w"]], axis=1)),
                ("mulv_b", np.concatenate([pn["mu_b"], pn["lv_b"]], axis=1)),
                ("dec0_wz", pn["dec0_wz"]), ("dec0_b", pn["dec0_b"]),
                ("dec1_w", pn["dec1_w"]), ("dec1_b", pn["dec1_b"]),
                ("dec2_w", pn["dec2_w"]), ("dec2_b", pn["dec2_b"])]

    # linear_decoder + acc_to_abs folded into block-diagonal weights.
    # TODO(synk): acc_to_abs not provided; reconstructed as double integration seeded
    # with x[-1] and (x[-1]-x[-2]):  pos[t] = pos0 + (t+1)*vel0 + sum_{s<=t}(t-s+1)*acc[s]
    idx = np.arange(N_CLASSES)
    lmat = np.maximum(idx[None, :] - idx[:, None] + 1, 0).astype(np.float32)  # (12,12)
    ramp = (idx + 1).astype(np.float32)                                        # (12,)
    ld_lmat = pn["ld_w"] @ lmat                       # (8, 12)
    ldb_lmat = pn["ld_b"] @ lmat                      # (1, 12)
    ld_fold = np.zeros((IN_CH * MLP_LAYER, IN_CH * N_CLASSES), np.float32)
    pv_fold = np.zeros((2 * IN_CH, IN_CH * N_CLASSES), np.float32)
    for r in range(IN_CH):
        ld_fold[r * MLP_LAYER:(r + 1) * MLP_LAYER,
                r * N_CLASSES:(r + 1) * N_CLASSES] = ld_lmat
        pv_fold[r, r * N_CLASSES:(r + 1) * N_CLASSES] = 1.0
        pv_fold[IN_CH + r, r * N_CLASSES:(r + 1) * N_CLASSES] = ramp
    ld_fold_b = np.tile(ldb_lmat, (1, IN_CH))         # (1, 36)
    entries += [("ld_fold_w", ld_fold), ("pv_fold_w", pv_fold), ("ld_fold_b", ld_fold_b)]

    offs = {}
    blocks = []
    cur = 0
    for name, arr in entries:
        arr = np.asarray(arr, np.float32)
        r, c = arr.shape
        offs[name] = (cur, r, c)
        rp = ((r + 7) // 8) * 8                       # 8-align row offsets
        blk = np.zeros((rp, 128), np.float32)
        blk[:r, :c] = arr
        blocks.append(blk)
        cur += rp
    slab = jnp.asarray(np.concatenate(blocks, axis=0))
    return slab, offs


# ---------------------------------- kernel -----------------------------------
def _make_kernel(offs, n_agents):
    A = n_agents
    LP = L_PAD

    def kernel(xf_ref, yf_ref, ctx_ref, alt_ref, pv_ref, eps_ref, slab_ref, out_ref):
        f32 = jnp.float32

        def W(name):
            # Lazy, static-sliced load from the packed weight slab at the use site.
            off, r, c = offs[name]
            return slab_ref[off:off + r, 0:c]

        def mm(a, b):
            return jnp.dot(a, b, preferred_element_type=f32)

        xf = xf_ref[...]        # (A*LP, 3)  obs trajectories, time padded to LP
        yf = yf_ref[...]        # (A*LP, 3)  pred trajectories, time padded to LP
        ctx = ctx_ref[...]      # (A, CTX_IN, OBS)
        alt = alt_ref[...]      # (PREDS, A, 2)  [X altitude zero-padded | Y altitude]
        pv = pv_ref[...]        # (A, 6)   [pos0 | vel0] acc_to_abs seed
        eps = eps_ref[...]      # (A, LATENT)

        # ---- fused altitude LSTMs (X & Y in one 12-step recurrence, agents batched) ----
        pre = (mm(alt.reshape(PREDS * A, 2), W("lstm_wih")) + W("lstm_b")
               ).reshape(PREDS, A, 8 * LSTM_H)
        whh = W("lstm_whh")                                  # (32, 128) block-diagonal
        h = jnp.zeros((A, 2 * LSTM_H), f32)
        c = jnp.zeros((A, 2 * LSTM_H), f32)
        hs = []
        for t in range(PREDS):
            g = pre[t] + mm(h, whh)
            gi = jax.nn.sigmoid(g[:, 0:2 * LSTM_H])
            gf = jax.nn.sigmoid(g[:, 2 * LSTM_H:4 * LSTM_H])
            gg = jnp.tanh(g[:, 4 * LSTM_H:6 * LSTM_H])
            go = jax.nn.sigmoid(g[:, 6 * LSTM_H:8 * LSTM_H])
            c = gf * c + gi * gg
            h = go * jnp.tanh(c)
            hs.append(h)
        # Class head hoisted out of the recurrence: one (A, 384) @ (384, 24) matmul.
        h_all = jnp.concatenate(hs, axis=1)                  # (A, PREDS*32)
        gates_a = jax.nn.sigmoid(mm(h_all, W("head_w")) + W("head_b"))   # (A, 24)
        a_x = gates_a[:, :N_CLASSES]                         # per-class gates (X)
        a_y = gates_a[:, N_CLASSES:]                         # per-class gates (Y)

        # ---- TCN branches in flat (A*LP, C) layout, no pad-concat ----
        row = lax.broadcasted_iota(jnp.int32, (A * LP, 1), 0) % LP
        masks = [row >= (2 ** i) for i in range(len(TCN_CHANNELS))]

        def conv(x2, w2, b, d, cin, mask):
            # causal dilated conv, K=2: out[t] = w0 @ x[t-d] + w1 @ x[t] + b
            t1 = mm(x2, w2[cin:2 * cin, :])
            t0 = mm(x2, w2[0:cin, :])
            t0 = jnp.where(mask, pltpu.roll(t0, d, axis=0), 0.0)
            return t0 + t1 + b

        def tcn(x2, tag):
            out = x2
            cin = IN_CH
            for i, cout in enumerate(TCN_CHANNELS):
                d = 2 ** i
                m = masks[i]
                h1 = jnp.maximum(conv(out, W(f"tcn{tag}{i}_c1w"),
                                      W(f"tcn{tag}{i}_c1b"), d, cin, m), 0.0)
                h2 = jnp.maximum(conv(h1, W(f"tcn{tag}{i}_c2w"),
                                      W(f"tcn{tag}{i}_c2b"), d, cout, m), 0.0)
                if cin != cout:
                    res = mm(out, W(f"tcn{tag}{i}_dw")) + W(f"tcn{tag}{i}_db")
                else:
                    res = out
                out = jnp.maximum(h2 + res, 0.0)
                cin = cout
            return out

        enc_x = tcn(xf, "x").reshape(A, LP, N_CLASSES)
        enc_y = tcn(yf, "y").reshape(A, LP, N_CLASSES)
        flat_x = (enc_x[:, :OBS, :] * a_x[:, None, :]).reshape(A, OBS * N_CLASSES)
        flat_y = (enc_y[:, :PREDS, :] * a_y[:, None, :]).reshape(A, PREDS * N_CLASSES)

        # ---- context branch: conv1d + linear + relu ----
        Lc = OBS - CNN_K + 1
        cw = W("ctxconv_w")                                  # (K, CTX_IN)
        cb = W("ctxconv_b")                                  # (1, 1)
        conv_c = jnp.zeros((A, Lc), f32)
        for k in range(CNN_K):
            for ci in range(CTX_IN):
                conv_c = conv_c + cw[k:k + 1, ci:ci + 1] * ctx[:, ci, k:k + Lc]
        conv_c = conv_c + cb
        ec = jnp.maximum(mm(conv_c, W("ctxlin_w")) + W("ctxlin_b"), 0.0)   # (A, 4)

        # ---- CVAE (encoder / reparameterize / decoder); shared conditionals fused ----
        hx = mm(flat_x, W("wx_comb"))                        # (A, 16): [:8] enc, [8:] dec
        hc = mm(ec, W("wc_comb"))                            # (A, 16)
        he = jnp.maximum(mm(flat_y, W("enc0_wy"))
                         + hx[:, :CVAE_CH] + hc[:, :CVAE_CH] + W("enc0_b"), 0.0)
        he = jnp.maximum(mm(he, W("enc1_w")) + W("enc1_b"), 0.0)
        mulv = mm(he, W("mulv_w")) + W("mulv_b")             # (A, 8) = [mu | logvar]
        mu = mulv[:, :LATENT]
        lv = mulv[:, LATENT:]
        z = mu + eps * jnp.exp(0.5 * lv)

        hd = jnp.maximum(mm(z, W("dec0_wz"))
                         + hx[:, CVAE_CH:] + hc[:, CVAE_CH:] + W("dec0_b"), 0.0)
        hd = jnp.maximum(mm(hd, W("dec1_w")) + W("dec1_b"), 0.0)
        dec_out = mm(hd, W("dec2_w")) + W("dec2_b")          # (A, 24)

        # ---- linear_decoder + acc_to_abs, folded into two matmuls ----
        recon = (mm(dec_out, W("ld_fold_w")) + mm(pv, W("pv_fold_w"))
                 + W("ld_fold_b"))                           # (A, 36)

        # ---- single lane-dense output block: [recon 36 | mulv 8 | zero pad] ----
        pad = jnp.zeros((A, OUT_LANES - IN_CH * N_CLASSES - 2 * LATENT), f32)
        out_ref[...] = jnp.concatenate([recon, mulv, pad], axis=1)

    return kernel


# --------------------------------- wrapper -----------------------------------
def build_actrajnet(params, n_agents):
    """One-time setup: pack weights into the slab, build + jit the pallas_call.
    Returns forward(x, y, adj, context, eps) matching the PyTorch return structure."""
    slab, offs = pack_params(params)
    kernel = _make_kernel(offs, n_agents)
    # Single invocation, no grid: all agents batched on sublanes, every array a
    # whole-array VMEM block (<1 MiB total).  For A >= ~16 on v7x one could add a
    # leading "parallel" agent-chunk grid to use both TensorCores.
    call = pl.pallas_call(
        kernel,
        out_shape=jax.ShapeDtypeStruct((n_agents, OUT_LANES), jnp.float32),
    )

    @jax.jit
    def fwd(x, y, context, eps):
        A = n_agents
        x_t = jnp.transpose(x, (2, 0, 1)).astype(jnp.float32)          # (A, OBS, 3)
        y_t = jnp.transpose(y, (2, 0, 1)).astype(jnp.float32)          # (A, PREDS, 3)
        xf = (jnp.zeros((A, L_PAD, IN_CH), jnp.float32)
              .at[:, :OBS, :].set(x_t).reshape(A * L_PAD, IN_CH))
        yf = (jnp.zeros((A, L_PAD, IN_CH), jnp.float32)
              .at[:, :PREDS, :].set(y_t).reshape(A * L_PAD, IN_CH))
        ctx = jnp.transpose(context, (2, 1, 0)).astype(jnp.float32)    # (A, CTX_IN, OBS)
        alt = jnp.zeros((PREDS, A, 2), jnp.float32)
        alt = alt.at[:OBS, :, 0].set(x[:, 2, :].astype(jnp.float32))
        alt = alt.at[:, :, 1].set(y[:, 2, :].astype(jnp.float32))
        pos0 = x_t[:, OBS - 1, :]
        vel0 = pos0 - x_t[:, OBS - 2, :]
        pv = jnp.concatenate([pos0, vel0], axis=1)                     # (A, 6)
        eps_k = eps.reshape(A, LATENT).astype(jnp.float32)

        out = call(xf, yf, ctx, alt, pv, eps_k, slab)                  # (A, 128)
        nr = IN_CH * N_CLASSES
        recon = out[:, :nr].reshape(A, IN_CH, N_CLASSES)
        mu = out[:, nr:nr + LATENT]
        lv = out[:, nr + LATENT:nr + 2 * LATENT]
        return recon, mu, lv

    def forward(x, y, adj, context, eps):
        del adj  # adj is accepted but never used in the reference forward
        recon, mu, lv = fwd(x, y, context, eps)
        recon_y = [recon[a][None] for a in range(n_agents)]            # each (1, 3, 12)
        m = [mu[a].reshape(1, 1, LATENT) for a in range(n_agents)]
        var = [lv[a].reshape(1, 1, LATENT) for a in range(n_agents)]
        return recon_y, m, var

    return forward


# ----------------------------------- main -------------------------------------
if __name__ == "__main__":
    key = jax.random.PRNGKey(0)
    kp, kx, ky, kc, ke = jax.random.split(key, 5)
    params = init_params(kp)

    x = jax.random.normal(kx, (OBS, IN_CH, N_AGENTS), jnp.float32)
    y = jax.random.normal(ky, (PREDS, IN_CH, N_AGENTS), jnp.float32)
    context = jax.random.normal(kc, (OBS, CTX_IN, N_AGENTS), jnp.float32)
    adj = jnp.ones((N_AGENTS, N_AGENTS), jnp.float32)
    eps = jax.random.normal(ke, (N_AGENTS, 1, LATENT), jnp.float32)

    forward = build_actrajnet(params, N_AGENTS)      # pack slab + build kernel ONCE
    recon_y, m, var = forward(x, y, adj, context, eps)
    jax.block_until_ready((recon_y, m, var))

    # Second call reuses the cached jitted pallas_call (no repack / retrace).
    recon_y, m, var = forward(x, y, adj, context, eps)
    jax.block_until_ready((recon_y, m, var))

    assert len(recon_y) == N_AGENTS
    assert recon_y[0].shape == (1, IN_CH, N_CLASSES)
    assert m[0].shape == (1, 1, LATENT) and var[0].shape == (1, 1, LATENT)
    assert all(bool(jnp.all(jnp.isfinite(r))) for r in recon_y)
    print("KERNEL_OK")
</pallas_src>

<mosaic_0001>
module attributes {stable_mosaic.version = 11 : i64} {
  func.func @kernel(%arg0: memref<32x3xf32, #tpu.memory_space<vmem>>, %arg1: memref<32x3xf32, #tpu.memory_space<vmem>>, %arg2: memref<2x2x11xf32, #tpu.memory_space<vmem>>, %arg3: memref<12x2x2xf32, #tpu.memory_space<vmem>>, %arg4: memref<2x6xf32, #tpu.memory_space<vmem>>, %arg5: memref<2x4xf32, #tpu.memory_space<vmem>>, %arg6: memref<1248x128xf32, #tpu.memory_space<vmem>>, %arg7: memref<2x128xf32, #tpu.memory_space<vmem>>) attributes {dimension_semantics = [], scalar_prefetch = 0 : i64, scratch_operands = 0 : i64, tpu.core_type = #tpu.core_type<tc>} {
    %c0 = arith.constant 0 : index
    %c0_0 = arith.constant 0 : index
    %0 = vector.load %arg0[%c0, %c0_0] : memref<32x3xf32, #tpu.memory_space<vmem>>, vector<32x3xf32>
    %c0_1 = arith.constant 0 : index
    %c0_2 = arith.constant 0 : index
    %1 = vector.load %arg1[%c0_1, %c0_2] : memref<32x3xf32, #tpu.memory_space<vmem>>, vector<32x3xf32>
    %c0_3 = arith.constant 0 : index
    %c0_4 = arith.constant 0 : index
    %c0_5 = arith.constant 0 : index
    %2 = vector.load %arg2[%c0_3, %c0_4, %c0_5] : memref<2x2x11xf32, #tpu.memory_space<vmem>>, vector<2x2x11xf32>
    %c0_6 = arith.constant 0 : index
    %c0_7 = arith.constant 0 : index
    %c0_8 = arith.constant 0 : index
    %3 = vector.load %arg3[%c0_6, %c0_7, %c0_8] : memref<12x2x2xf32, #tpu.memory_space<vmem>>, vector<12x2x2xf32>
    %c0_9 = arith.constant 0 : index
    %c0_10 = arith.constant 0 : index
    %4 = vector.load %arg4[%c0_9, %c0_10] : memref<2x6xf32, #tpu.memory_space<vmem>>, vector<2x6xf32>
    %c0_11 = arith.constant 0 : index
    %c0_12 = arith.constant 0 : index
    %5 = vector.load %arg5[%c0_11, %c0_12] : memref<2x4xf32, #tpu.memory_space<vmem>>, vector<2x4xf32>
    %6 = vector.shape_cast %3 : vector<12x2x2xf32> to vector<24x2xf32>
    %c32 = arith.constant 32 : index
    %c0_13 = arith.constant 0 : index
    %7 = vector.load %arg6[%c32, %c0_13] : memref<1248x128xf32, #tpu.memory_space<vmem>>, vector<2x128xf32>
    %cst = arith.constant dense<0.000000e+00> : vector<24x128xf32>
    %8 = tpu.matmul %6, %7, %cst {dimension_numbers = #tpu.dot_dimension_numbers<[1], [0], [0], [1], [0, 0, 1, 1], [], []>} : vector<24x2xf32>, vector<2x128xf32>, vector<24x128xf32> -> vector<24x128xf32>
    %c40 = arith.constant 40 : index
    %c0_14 = arith.constant 0 : index
    %9 = vector.load %arg6[%c40, %c0_14] : memref<1248x128xf32, #tpu.memory_space<vmem>>, vector<1x128xf32>
    %10 = vector.broadcast %9 : vector<1x128xf32> to vector<24x128xf32>
    %11 = arith.addf %8, %10 : vector<24x128xf32>
    %12 = vector.shape_cast %11 : vector<24x128xf32> to vector<12x2x128xf32>
    %c0_15 = arith.constant 0 : index
    %c0_16 = arith.constant 0 : index
    %13 = vector.load %arg6[%c0_15, %c0_16] : memref<1248x128xf32, #tpu.memory_space<vmem>>, vector<32x128xf32>
    %cst_17 = arith.constant 0.000000e+00 : f32
    %14 = vector.broadcast %cst_17 : f32 to vector<2x32xf32>
    %cst_18 = arith.constant 0.000000e+00 : f32
    %15 = vector.broadcast %cst_18 : f32 to vector<2x32xf32>
    %16 = vector.extract_strided_slice %12 {offsets = [0, 0, 0], sizes = [1, 2, 128], strides = [1, 1, 1]} : vector<12x2x128xf32> to vector<1x2x128xf32>
    %17 = vector.shape_cast %16 : vector<1x2x128xf32> to vector<2x128xf32>
    %cst_19 = arith.constant dense<0.000000e+00> : vector<2x128xf32>
    %18 = tpu.matmul %14, %13, %cst_19 {dimension_numbers = #tpu.dot_dimension_numbers<[1], [0], [0], [1], [0, 0, 1, 1], [], []>} : vector<2x32xf32>, vector<32x128xf32>, vector<2x128xf32> -> vector<2x128xf32>
    %19 = arith.addf %17, %18 : vector<2x128xf32>
    %20 = vector.extract_strided_slice %19 {offsets = [0, 0], sizes = [2, 32], strides = [1, 1]} : vector<2x128xf32> to vector<2x32xf32>
    %21 = arith.negf %20 : vector<2x32xf32>
    %22 = math.exp %21 : vector<2x32xf32>
    %cst_20 = arith.constant 1.000000e+00 : f32
    %23 = vector.broadcast %cst_20 : f32 to vector<2x32xf32>
    %24 = arith.addf %23, %22 : vector<2x32xf32>
    %25 = arith.divf %23, %24 : vector<2x32xf32>
    %26 = vector.extract_strided_slice %19 {offsets = [0, 32], sizes = [2, 32], strides = [1, 1]} : vector<2x128xf32> to vector<2x32xf32>
    %27 = arith.negf %26 : vector<2x32xf32>
    %28 = math.exp %27 : vector<2x32xf32>
    %cst_21 = arith.constant 1.000000e+00 : f32
    %29 = vector.broadcast %cst_21 : f32 to vector<2x32xf32>
    %30 = arith.addf %29, %28 : vector<2x32xf32>
    %31 = arith.divf %29, %30 : vector<2x32xf32>
    %32 = vector.extract_strided_slice %19 {offsets = [0, 64], sizes = [2, 32], strides = [1, 1]} : vector<2x128xf32> to vector<2x32xf32>
    %33 = math.tanh %32 : vector<2x32xf32>
    %34 = vector.extract_strided_slice %19 {offsets = [0, 96], sizes = [2, 32], strides = [1, 1]} : vector<2x128xf32> to vector<2x32xf32>
    %35 = arith.negf %34 : vector<2x32xf32>
    %36 = math.exp %35 : vector<2x32xf32>
    %cst_22 = arith.constant 1.000000e+00 : f32
    %37 = vector.broadcast %cst_22 : f32 to vector<2x32xf32>
    %38 = arith.addf %37, %36 : vector<2x32xf32>
    %39 = arith.divf %37, %38 : vector<2x32xf32>
    %40 = arith.mulf %31, %15 : vector<2x32xf32>
    %41 = arith.mulf %25, %33 : vector<2x32xf32>
    %42 = arith.addf %40, %41 : vector<2x32xf32>
    %43 = math.tanh %42 : vector<2x32xf32>
    %44 = arith.mulf %39, %43 : vector<2x32xf32>
    %45 = vector.extract_strided_slice %12 {offsets = [1, 0, 0], sizes = [1, 2, 128], strides = [1, 1, 1]} : vector<12x2x128xf32> to vector<1x2x128xf32>
    %46 = vector.shape_cast %45 : vector<1x2x128xf32> to vector<2x128xf32>
    %cst_23 = arith.constant dense<0.000000e+00> : vector<2x128xf32>
    %47 = tpu.matmul %44, %13, %cst_23 {dimension_numbers = #tpu.dot_dimension_numbers<[1], [0], [0], [1], [0, 0, 1, 1], [], []>} : vector<2x32xf32>, vector<32x128xf32>, vector<2x128xf32> -> vector<2x128xf32>
    %48 = arith.addf %46, %47 : vector<2x128xf32>
    %49 = vector.extract_strided_slice %48 {offsets = [0, 0], sizes = [2, 32], strides = [1, 1]} : vector<2x128xf32> to vector<2x32xf32>
    %50 = arith.negf %49 : vector<2x32xf32>
    %51 = math.exp %50 : vector<2x32xf32>
    %cst_24 = arith.constant 1.000000e+00 : f32
    %52 = vector.broadcast %cst_24 : f32 to vector<2x32xf32>
    %53 = arith.addf %52, %51 : vector<2x32xf32>
    %54 = arith.divf %52, %53 : vector<2x32xf32>
    %55 = vector.extract_strided_slice %48 {offsets = [0, 32], sizes = [2, 32], strides = [1, 1]} : vector<2x128xf32> to vector<2x32xf32>
    %56 = arith.negf %55 : vector<2x32xf32>
    %57 = math.exp %56 : vector<2x32xf32>
    %cst_25 = arith.constant 1.000000e+00 : f32
    %58 = vector.broadcast %cst_25 : f32 to vector<2x32xf32>
    %59 = arith.addf %58, %57 : vector<2x32xf32>
    %60 = arith.divf %58, %59 : vector<2x32xf32>
    %61 = vector.extract_strided_slice %48 {offsets = [0, 64], sizes = [2, 32], strides = [1, 1]} : vector<2x128xf32> to vector<2x32xf32>
    %62 = math.tanh %61 : vector<2x32xf32>
    %63 = vector.extract_strided_slice %48 {offsets = [0, 96], sizes = [2, 32], strides = [1, 1]} : vector<2x128xf32> to vector<2x32xf32>
    %64 = arith.negf %63 : vector<2x32xf32>
    %65 = math.exp %64 : vector<2x32xf32>
    %cst_26 = arith.constant 1.000000e+00 : f32
    %66 = vector.broadcast %cst_26 : f32 to vector<2x32xf32>
    %67 = arith.addf %66, %65 : vector<2x32xf32>
    %68 = arith.divf %66, %67 : vector<2x32xf32>
    %69 = arith.mulf %60, %42 : vector<2x32xf32>
    %70 = arith.mulf %54, %62 : vector<2x32xf32>
    %71 = arith.addf %69, %70 : vector<2x32xf32>
    %72 = math.tanh %71 : vector<2x32xf32>
    %73 = arith.mulf %68, %72 : vector<2x32xf32>
    %74 = vector.extract_strided_slice %12 {offsets = [2, 0, 0], sizes = [1, 2, 128], strides = [1, 1, 1]} : vector<12x2x128xf32> to vector<1x2x128xf32>
    %75 = vector.shape_cast %74 : vector<1x2x128xf32> to vector<2x128xf32>
    %cst_27 = arith.constant dense<0.000000e+00> : vector<2x128xf32>
    %76 = tpu.matmul %73, %13, %cst_27 {dimension_numbers = #tpu.dot_dimension_numbers<[1], [0], [0], [1], [0, 0, 1, 1], [], []>} : vector<2x32xf32>, vector<32x128xf32>, vector<2x128xf32> -> vector<2x128xf32>
    %77 = arith.addf %75, %76 : vector<2x128xf32>
    %78 = vector.extract_strided_slice %77 {offsets = [0, 0], sizes = [2, 32], strides = [1, 1]} : vector<2x128xf32> to vector<2x32xf32>
    %79 = arith.negf %78 : vector<2x32xf32>
    %80 = math.exp %79 : vector<2x32xf32>
    %cst_28 = arith.constant 1.000000e+00 : f32
    %81 = vector.broadcast %cst_28 : f32 to vector<2x32xf32>
    %82 = arith.addf %81, %80 : vector<2x32xf32>
    %83 = arith.divf %81, %82 : vector<2x32xf32>
    %84 = vector.extract_strided_slice %77 {offsets = [0, 32], sizes = [2, 32], strides = [1, 1]} : vector<2x128xf32> to vector<2x32xf32>
    %85 = arith.negf %84 : vector<2x32xf32>
    %86 = math.exp %85 : vector<2x32xf32>
    %cst_29 = arith.constant 1.000000e+00 : f32
    %87 = vector.broadcast %cst_29 : f32 to vector<2x32xf32>
    %88 = arith.addf %87, %86 : vector<2x32xf32>
    %89 = arith.divf %87, %88 : vector<2x32xf32>
    %90 = vector.extract_strided_slice %77 {offsets = [0, 64], sizes = [2, 32], strides = [1, 1]} : vector<2x128xf32> to vector<2x32xf32>
    %91 = math.tanh %90 : vector<2x32xf32>
    %92 = vector.extract_strided_slice %77 {offsets = [0, 96], sizes = [2, 32], strides = [1, 1]} : vector<2x128xf32> to vector<2x32xf32>
    %93 = arith.negf %92 : vector<2x32xf32>
    %94 = math.exp %93 : vector<2x32xf32>
    %cst_30 = arith.constant 1.000000e+00 : f32
    %95 = vector.broadcast %cst_30 : f32 to vector<2x32xf32>
    %96 = arith.addf %95, %94 : vector<2x32xf32>
    %97 = arith.divf %95, %96 : vector<2x32xf32>
    %98 = arith.mulf %89, %71 : vector<2x32xf32>
    %99 = arith.mulf %83, %91 : vector<2x32xf32>
    %100 = arith.addf %98, %99 : vector<2x32xf32>
    %101 = math.tanh %100 : vector<2x32xf32>
    %102 = arith.mulf %97, %101 : vector<2x32xf32>
    %103 = vector.extract_strided_slice %12 {offsets = [3, 0, 0], sizes = [1, 2, 128], strides = [1, 1, 1]} : vector<12x2x128xf32> to vector<1x2x128xf32>
    %104 = vector.shape_cast %103 : vector<1x2x128xf32> to vector<2x128xf32>
    %cst_31 = arith.constant dense<0.000000e+00> : vector<2x128xf32>
    %105 = tpu.matmul %102, %13, %cst_31 {dimension_numbers = #tpu.dot_dimension_numbers<[1], [0], [0], [1], [0, 0, 1, 1], [], []>} : vector<2x32xf32>, vector<32x128xf32>, vector<2x128xf32> -> vector<2x128xf32>
    %106 = arith.addf %104, %105 : vector<2x128xf32>
    %107 = vector.extract_strided_slice %106 {offsets = [0, 0], sizes = [2, 32], strides = [1, 1]} : vector<2x128xf32> to vector<2x32xf32>
    %108 = arith.negf %107 : vector<2x32xf32>
    %109 = math.exp %108 : vector<2x32xf32>
    %cst_32 = arith.constant 1.000000e+00 : f32
    %110 = vector.broadcast %cst_32 : f32 to vector<2x32xf32>
    %111 = arith.addf %110, %109 : vector<2x32xf32>
    %112 = arith.divf %110, %111 : vector<2x32xf32>
    %113 = vector.extract_strided_slice %106 {offsets = [0, 32], sizes = [2, 32], strides = [1, 1]} : vector<2x128xf32> to vector<2x32xf32>
    %114 = arith.negf %113 : vector<2x32xf32>
    %115 = math.exp %114 : vector<2x32xf32>
    %cst_33 = arith.constant 1.000000e+00 : f32
    %116 = vector.broadcast %cst_33 : f32 to vector<2x32xf32>
    %117 = arith.addf %116, %115 : vector<2x32xf32>
    %118 = arith.divf %116, %117 : vector<2x32xf32>
    %119 = vector.extract_strided_slice %106 {offsets = [0, 64], sizes = [2, 32], strides = [1, 1]} : vector<2x128xf32> to vector<2x32xf32>
    %120 = math.tanh %119 : vector<2x32xf32>
    %121 = vector.extract_strided_slice %106 {offsets = [0, 96], sizes = [2, 32], strides = [1, 1]} : vector<2x128xf32> to vector<2x32xf32>
    %122 = arith.negf %121 : vector<2x32xf32>
    %123 = math.exp %122 : vector<2x32xf32>
    %cst_34 = arith.constant 1.000000e+00 : f32
    %124 = vector.broadcast %cst_34 : f32 to vector<2x32xf32>
    %125 = arith.addf %124, %123 : vector<2x32xf32>
    %126 = arith.divf %124, %125 : vector<2x32xf32>
    %127 = arith.mulf %118, %100 : vector<2x32xf32>
    %128 = arith.mulf %112, %120 : vector<2x32xf32>
    %129 = arith.addf %127, %128 : vector<2x32xf32>
    %130 = math.tanh %129 : vector<2x32xf32>
    %131 = arith.mulf %126, %130 : vector<2x32xf32>
    %132 = vector.extract_strided_slice %12 {offsets = [4, 0, 0], sizes = [1, 2, 128], strides = [1, 1, 1]} : vector<12x2x128xf32> to vector<1x2x128xf32>
    %133 = vector.shape_cast %132 : vector<1x2x128xf32> to vector<2x128xf32>
    %cst_35 = arith.constant dense<0.000000e+00> : vector<2x128xf32>
    %134 = tpu.matmul %131, %13, %cst_35 {dimension_numbers = #tpu.dot_dimension_numbers<[1], [0], [0], [1], [0, 0, 1, 1], [], []>} : vector<2x32xf32>, vector<32x128xf32>, vector<2x128xf32> -> vector<2x128xf32>
    %135 = arith.addf %133, %134 : vector<2x128xf32>
    %136 = vector.extract_strided_slice %135 {offsets = [0, 0], sizes = [2, 32], strides = [1, 1]} : vector<2x128xf32> to vector<2x32xf32>
    %137 = arith.negf %136 : vector<2x32xf32>
    %138 = math.exp %137 : vector<2x32xf32>
    %cst_36 = arith.constant 1.000000e+00 : f32
    %139 = vector.broadcast %cst_36 : f32 to vector<2x32xf32>
    %140 = arith.addf %139, %138 : vector<2x32xf32>
    %141 = arith.divf %139, %140 : vector<2x32xf32>
    %142 = vector.extract_strided_slice %135 {offsets = [0, 32], sizes = [2, 32], strides = [1, 1]} : vector<2x128xf32> to vector<2x32xf32>
    %143 = arith.negf %142 : vector<2x32xf32>
    %144 = math.exp %143 : vector<2x32xf32>
    %cst_37 = arith.constant 1.000000e+00 : f32
    %145 = vector.broadcast %cst_37 : f32 to vector<2x32xf32>
    %146 = arith.addf %145, %144 : vector<2x32xf32>
    %147 = arith.divf %145, %146 : vector<2x32xf32>
    %148 = vector.extract_strided_slice %135 {offsets = [0, 64], sizes = [2, 32], strides = [1, 1]} : vector<2x128xf32> to vector<2x32xf32>
    %149 = math.tanh %148 : vector<2x32xf32>
    %150 = vector.extract_strided_slice %135 {offsets = [0, 96], sizes = [2, 32], strides = [1, 1]} : vector<2x128xf32> to vector<2x32xf32>
    %151 = arith.negf %150 : vector<2x32xf32>
    %152 = math.exp %151 : vector<2x32xf32>
    %cst_38 = arith.constant 1.000000e+00 : f32
    %153 = vector.broadcast %cst_38 : f32 to vector<2x32xf32>
    %154 = arith.addf %153, %152 : vector<2x32xf32>
    %155 = arith.divf %153, %154 : vector<2x32xf32>
    %156 = arith.mulf %147, %129 : vector<2x32xf32>
    %157 = arith.mulf %141, %149 : vector<2x32xf32>
    %158 = arith.addf %156, %157 : vector<2x32xf32>
    %159 = math.tanh %158 : vector<2x32xf32>
    %160 = arith.mulf %155, %159 : vector<2x32xf32>
    %161 = vector.extract_strided_slice %12 {offsets = [5, 0, 0], sizes = [1, 2, 128], strides = [1, 1, 1]} : vector<12x2x128xf32> to vector<1x2x128xf32>
    %162 = vector.shape_cast %161 : vector<1x2x128xf32> to vector<2x128xf32>
    %cst_39 = arith.constant dense<0.000000e+00> : vector<2x128xf32>
    %163 = tpu.matmul %160, %13, %cst_39 {dimension_numbers = #tpu.dot_dimension_numbers<[1], [0], [0], [1], [0, 0, 1, 1], [], []>} : vector<2x32xf32>, vector<32x128xf32>, vector<2x128xf32> -> vector<2x128xf32>
    %164 = arith.addf %162, %163 : vector<2x128xf32>
    %165 = vector.extract_strided_slice %164 {offsets = [0, 0], sizes = [2, 32], strides = [1, 1]} : vector<2x128xf32> to vector<2x32xf32>
    %166 = arith.negf %165 : vector<2x32xf32>
    %167 = math.exp %166 : vector<2x32xf32>
    %cst_40 = arith.constant 1.000000e+00 : f32
    %168 = vector.broadcast %cst_40 : f32 to vector<2x32xf32>
    %169 = arith.addf %168, %167 : vector<2x32xf32>
    %170 = arith.divf %168, %169 : vector<2x32xf32>
    %171 = vector.extract_strided_slice %164 {offsets = [0, 32], sizes = [2, 32], strides = [1, 1]} : vector<2x128xf32> to vector<2x32xf32>
    %172 = arith.negf %171 : vector<2x32xf32>
    %173 = math.exp %172 : vector<2x32xf32>
    %cst_41 = arith.constant 1.000000e+00 : f32
    %174 = vector.broadcast %cst_41 : f32 to vector<2x32xf32>
    %175 = arith.addf %174, %173 : vector<2x32xf32>
    %176 = arith.divf %174, %175 : vector<2x32xf32>
    %177 = vector.extract_strided_slice %164 {offsets = [0, 64], sizes = [2, 32], strides = [1, 1]} : vector<2x128xf32> to vector<2x32xf32>
    %178 = math.tanh %177 : vector<2x32xf32>
    %179 = vector.extract_strided_slice %164 {offsets = [0, 96], sizes = [2, 32], strides = [1, 1]} : vector<2x128xf32> to vector<2x32xf32>
    %180 = arith.negf %179 : vector<2x32xf32>
    %181 = math.exp %180 : vector<2x32xf32>
    %cst_42 = arith.constant 1.000000e+00 : f32
    %182 = vector.broadcast %cst_42 : f32 to vector<2x32xf32>
    %183 = arith.addf %182, %181 : vector<2x32xf32>
    %184 = arith.divf %182, %183 : vector<2x32xf32>
    %185 = arith.mulf %176, %158 : vector<2x32xf32>
    %186 = arith.mulf %170, %178 : vector<2x32xf32>
    %187 = arith.addf %185, %186 : vector<2x32xf32>
    %188 = math.tanh %187 : vector<2x32xf32>
    %189 = arith.mulf %184, %188 : vector<2x32xf32>
    %190 = vector.extract_strided_slice %12 {offsets = [6, 0, 0], sizes = [1, 2, 128], strides = [1, 1, 1]} : vector<12x2x128xf32> to vector<1x2x128xf32>
    %191 = vector.shape_cast %190 : vector<1x2x128xf32> to vector<2x128xf32>
    %cst_43 = arith.constant dense<0.000000e+00> : vector<2x128xf32>
    %192 = tpu.matmul %189, %13, %cst_43 {dimension_numbers = #tpu.dot_dimension_numbers<[1], [0], [0], [1], [0, 0, 1, 1], [], []>} : vector<2x32xf32>, vector<32x128xf32>, vector<2x128xf32> -> vector<2x128xf32>
    %193 = arith.addf %191, %192 : vector<2x128xf32>
    %194 = vector.extract_strided_slice %193 {offsets = [0, 0], sizes = [2, 32], strides = [1, 1]} : vector<2x128xf32> to vector<2x32xf32>
    %195 = arith.negf %194 : vector<2x32xf32>
    %196 = math.exp %195 : vector<2x32xf32>
    %cst_44 = arith.constant 1.000000e+00 : f32
    %197 = vector.broadcast %cst_44 : f32 to vector<2x32xf32>
    %198 = arith.addf %197, %196 : vector<2x32xf32>
    %199 = arith.divf %197, %198 : vector<2x32xf32>
    %200 = vector.extract_strided_slice %193 {offsets = [0, 32], sizes = [2, 32], strides = [1, 1]} : vector<2x128xf32> to vector<2x32xf32>
    %201 = arith.negf %200 : vector<2x32xf32>
    %202 = math.exp %201 : vector<2x32xf32>
    %cst_45 = arith.constant 1.000000e+00 : f32
    %203 = vector.broadcast %cst_45 : f32 to vector<2x32xf32>
    %204 = arith.addf %203, %202 : vector<2x32xf32>
    %205 = arith.divf %203, %204 : vector<2x32xf32>
    %206 = vector.extract_strided_slice %193 {offsets = [0, 64], sizes = [2, 32], strides = [1, 1]} : vector<2x128xf32> to vector<2x32xf32>
    %207 = math.tanh %206 : vector<2x32xf32>
    %208 = vector.extract_strided_slice %193 {offsets = [0, 96], sizes = [2, 32], strides = [1, 1]} : vector<2x128xf32> to vector<2x32xf32>
    %209 = arith.negf %208 : vector<2x32xf32>
    %210 = math.exp %209 : vector<2x32xf32>
    %cst_46 = arith.constant 1.000000e+00 : f32
    %211 = vector.broadcast %cst_46 : f32 to vector<2x32xf32>
    %212 = arith.addf %211, %210 : vector<2x32xf32>
    %213 = arith.divf %211, %212 : vector<2x32xf32>
    %214 = arith.mulf %205, %187 : vector<2x32xf32>
    %215 = arith.mulf %199, %207 : vector<2x32xf32>
    %216 = arith.addf %214, %215 : vector<2x32xf32>
    %217 = math.tanh %216 : vector<2x32xf32>
    %218 = arith.mulf %213, %217 : vector<2x32xf32>
    %219 = vector.extract_strided_slice %12 {offsets = [7, 0, 0], sizes = [1, 2, 128], strides = [1, 1, 1]} : vector<12x2x128xf32> to vector<1x2x128xf32>
    %220 = vector.shape_cast %219 : vector<1x2x128xf32> to vector<2x128xf32>
    %cst_47 = arith.constant dense<0.000000e+00> : vector<2x128xf32>
    %221 = tpu.matmul %218, %13, %cst_47 {dimension_numbers = #tpu.dot_dimension_numbers<[1], [0], [0], [1], [0, 0, 1, 1], [], []>} : vector<2x32xf32>, vector<32x128xf32>, vector<2x128xf32> -> vector<2x128xf32>
    %222 = arith.addf %220, %221 : vector<2x128xf32>
    %223 = vector.extract_strided_slice %222 {offsets = [0, 0], sizes = [2, 32], strides = [1, 1]} : vector<2x128xf32> to vector<2x32xf32>
    %224 = arith.negf %223 : vector<2x32xf32>
    %225 = math.exp %224 : vector<2x32xf32>
    %cst_48 = arith.constant 1.000000e+00 : f32
    %226 = vector.broadcast %cst_48 : f32 to vector<2x32xf32>
    %227 = arith.addf %226, %225 : vector<2x32xf32>
    %228 = arith.divf %226, %227 : vector<2x32xf32>
    %229 = vector.extract_strided_slice %222 {offsets = [0, 32], sizes = [2, 32], strides = [1, 1]} : vector<2x128xf32> to vector<2x32xf32>
    %230 = arith.negf %229 : vector<2x32xf32>
    %231 = math.exp %230 : vector<2x32xf32>
    %cst_49 = arith.constant 1.000000e+00 : f32
    %232 = vector.broadcast %cst_49 : f32 to vector<2x32xf32>
    %233 = arith.addf %232, %231 : vector<2x32xf32>
    %234 = arith.divf %232, %233 : vector<2x32xf32>
    %235 = vector.extract_strided_slice %222 {offsets = [0, 64], sizes = [2, 32], strides = [1, 1]} : vector<2x128xf32> to vector<2x32xf32>
    %236 = math.tanh %235 : vector<2x32xf32>
    %237 = vector.extract_strided_slice %222 {offsets = [0, 96], sizes = [2, 32], strides = [1, 1]} : vector<2x128xf32> to vector<2x32xf32>
    %238 = arith.negf %237 : vector<2x32xf32>
    %239 = math.exp %238 : vector<2x32xf32>
    %cst_50 = arith.constant 1.000000e+00 : f32
    %240 = vector.broadcast %cst_50 : f32 to vector<2x32xf32>
    %241 = arith.addf %240, %239 : vector<2x32xf32>
    %242 = arith.divf %240, %241 : vector<2x32xf32>
    %243 = arith.mulf %234, %216 : vector<2x32xf32>
    %244 = arith.mulf %228, %236 : vector<2x32xf32>
    %245 = arith.addf %243, %244 : vector<2x32xf32>
    %246 = math.tanh %245 : vector<2x32xf32>
    %247 = arith.mulf %242, %246 : vector<2x32xf32>
    %248 = vector.extract_strided_slice %12 {offsets = [8, 0, 0], sizes = [1, 2, 128], strides = [1, 1, 1]} : vector<12x2x128xf32> to vector<1x2x128xf32>
    %249 = vector.shape_cast %248 : vector<1x2x128xf32> to vector<2x128xf32>
    %cst_51 = arith.constant dense<0.000000e+00> : vector<2x128xf32>
    %250 = tpu.matmul %247, %13, %cst_51 {dimension_numbers = #tpu.dot_dimension_numbers<[1], [0], [0], [1], [0, 0, 1, 1], [], []>} : vector<2x32xf32>, vector<32x128xf32>, vector<2x128xf32> -> vector<2x128xf32>
    %251 = arith.addf %249, %250 : vector<2x128xf32>
    %252 = vector.extract_strided_slice %251 {offsets = [0, 0], sizes = [2, 32], strides = [1, 1]} : vector<2x128xf32> to vector<2x32xf32>
    %253 = arith.negf %252 : vector<2x32xf32>
    %254 = math.exp %253 : vector<2x32xf32>
    %cst_52 = arith.constant 1.000000e+00 : f32
    %255 = vector.broadcast %cst_52 : f32 to vector<2x32xf32>
    %256 = arith.addf %255, %254 : vector<2x32xf32>
    %257 = arith.divf %255, %256 : vector<2x32xf32>
    %258 = vector.extract_strided_slice %251 {offsets = [0, 32], sizes = [2, 32], strides = [1, 1]} : vector<2x128xf32> to vector<2x32xf32>
    %259 = arith.negf %258 : vector<2x32xf32>
    %260 = math.exp %259 : vector<2x32xf32>
    %cst_53 = arith.constant 1.000000e+00 : f32
    %261 = vector.broadcast %cst_53 : f32 to vector<2x32xf32>
    %262 = arith.addf %261, %260 : vector<2x32xf32>
    %263 = arith.divf %261, %262 : vector<2x32xf32>
    %264 = vector.extract_strided_slice %251 {offsets = [0, 64], sizes = [2, 32], strides = [1, 1]} : vector<2x128xf32> to vector<2x32xf32>
    %265 = math.tanh %264 : vector<2x32xf32>
    %266 = vector.extract_strided_slice %251 {offsets = [0, 96], sizes = [2, 32], strides = [1, 1]} : vector<2x128xf32> to vector<2x32xf32>
    %267 = arith.negf %266 : vector<2x32xf32>
    %268 = math.exp %267 : vector<2x32xf32>
    %cst_54 = arith.constant 1.000000e+00 : f32
    %269 = vector.broadcast %cst_54 : f32 to vector<2x32xf32>
    %270 = arith.addf %269, %268 : vector<2x32xf32>
    %271 = arith.divf %269, %270 : vector<2x32xf32>
    %272 = arith.mulf %263, %245 : vector<2x32xf32>
    %273 = arith.mulf %257, %265 : vector<2x32xf32>
    %274 = arith.addf %272, %273 : vector<2x32xf32>
    %275 = math.tanh %274 : vector<2x32xf32>
    %276 = arith.mulf %271, %275 : vector<2x32xf32>
    %277 = vector.extract_strided_slice %12 {offsets = [9, 0, 0], sizes = [1, 2, 128], strides = [1, 1, 1]} : vector<12x2x128xf32> to vector<1x2x128xf32>
    %278 = vector.shape_cast %277 : vector<1x2x128xf32> to vector<2x128xf32>
    %cst_55 = arith.constant dense<0.000000e+00> : vector<2x128xf32>
    %279 = tpu.matmul %276, %13, %cst_55 {dimension_numbers = #tpu.dot_dimension_numbers<[1], [0], [0], [1], [0, 0, 1, 1], [], []>} : vector<2x32xf32>, vector<32x128xf32>, vector<2x128xf32> -> vector<2x128xf32>
    %280 = arith.addf %278, %279 : vector<2x128xf32>
    %281 = vector.extract_strided_slice %280 {offsets = [0, 0], sizes = [2, 32], strides = [1, 1]} : vector<2x128xf32> to vector<2x32xf32>
    %282 = arith.negf %281 : vector<2x32xf32>
    %283 = math.exp %282 : vector<2x32xf32>
    %cst_56 = arith.constant 1.000000e+00 : f32
    %284 = vector.broadcast %cst_56 : f32 to vector<2x32xf32>
    %285 = arith.addf %284, %283 : vector<2x32xf32>
    %286 = arith.divf %284, %285 : vector<2x32xf32>
    %287 = vector.extract_strided_slice %280 {offsets = [0, 32], sizes = [2, 32], strides = [1, 1]} : vector<2x128xf32> to vector<2x32xf32>
    %288 = arith.negf %287 : vector<2x32xf32>
    %289 = math.exp %288 : vector<2x32xf32>
    %cst_57 = arith.constant 1.000000e+00 : f32
    %290 = vector.broadcast %cst_57 : f32 to vector<2x32xf32>
    %291 = arith.addf %290, %289 : vector<2x32xf32>
    %292 = arith.divf %290, %291 : vector<2x32xf32>
    %293 = vector.extract_strided_slice %280 {offsets = [0, 64], sizes = [2, 32], strides = [1, 1]} : vector<2x128xf32> to vector<2x32xf32>
    %294 = math.tanh %293 : vector<2x32xf32>
    %295 = vector.extract_strided_slice %280 {offsets = [0, 96], sizes = [2, 32], strides = [1, 1]} : vector<2x128xf32> to vector<2x32xf32>
    %296 = arith.negf %295 : vector<2x32xf32>
    %297 = math.exp %296 : vector<2x32xf32>
    %cst_58 = arith.constant 1.000000e+00 : f32
    %298 = vector.broadcast %cst_58 : f32 to vector<2x32xf32>
    %299 = arith.addf %298, %297 : vector<2x32xf32>
    %300 = arith.divf %298, %299 : vector<2x32xf32>
    %301 = arith.mulf %292, %274 : vector<2x32xf32>
    %302 = arith.mulf %286, %294 : vector<2x32xf32>
    %303 = arith.addf %301, %302 : vector<2x32xf32>
    %304 = math.tanh %303 : vector<2x32xf32>
    %305 = arith.mulf %300, %304 : vector<2x32xf32>
    %306 = vector.extract_strided_slice %12 {offsets = [10, 0, 0], sizes = [1, 2, 128], strides = [1, 1, 1]} : vector<12x2x128xf32> to vector<1x2x128xf32>
    %307 = vector.shape_cast %306 : vector<1x2x128xf32> to vector<2x128xf32>
    %cst_59 = arith.constant dense<0.000000e+00> : vector<2x128xf32>
    %308 = tpu.matmul %305, %13, %cst_59 {dimension_numbers = #tpu.dot_dimension_numbers<[1], [0], [0], [1], [0, 0, 1, 1], [], []>} : vector<2x32xf32>, vector<32x128xf32>, vector<2x128xf32> -> vector<2x128xf32>
    %309 = arith.addf %307, %308 : vector<2x128xf32>
    %310 = vector.extract_strided_slice %309 {offsets = [0, 0], sizes = [2, 32], strides = [1, 1]} : vector<2x128xf32> to vector<2x32xf32>
    %311 = arith.negf %310 : vector<2x32xf32>
    %312 = math.exp %311 : vector<2x32xf32>
    %cst_60 = arith.constant 1.000000e+00 : f32
    %313 = vector.broadcast %cst_60 : f32 to vector<2x32xf32>
    %314 = arith.addf %313, %312 : vector<2x32xf32>
    %315 = arith.divf %313, %314 : vector<2x32xf32>
    %316 = vector.extract_strided_slice %309 {offsets = [0, 32], sizes = [2, 32], strides = [1, 1]} : vector<2x128xf32> to vector<2x32xf32>
    %317 = arith.negf %316 : vector<2x32xf32>
    %318 = math.exp %317 : vector<2x32xf32>
    %cst_61 = arith.constant 1.000000e+00 : f32
    %319 = vector.broadcast %cst_61 : f32 to vector<2x32xf32>
    %320 = arith.addf %319, %318 : vector<2x32xf32>
    %321 = arith.divf %319, %320 : vector<2x32xf32>
    %322 = vector.extract_strided_slice %309 {offsets = [0, 64], sizes = [2, 32], strides = [1, 1]} : vector<2x128xf32> to vector<2x32xf32>
    %323 = math.tanh %322 : vector<2x32xf32>
    %324 = vector.extract_strided_slice %309 {offsets = [0, 96], sizes = [2, 32], strides = [1, 1]} : vector<2x128xf32> to vector<2x32xf32>
    %325 = arith.negf %324 : vector<2x32xf32>
    %326 = math.exp %325 : vector<2x32xf32>
    %cst_62 = arith.constant 1.000000e+00 : f32
    %327 = vector.broadcast %cst_62 : f32 to vector<2x32xf32>
    %328 = arith.addf %327, %326 : vector<2x32xf32>
    %329 = arith.divf %327, %328 : vector<2x32xf32>
    %330 = arith.mulf %321, %303 : vector<2x32xf32>
    %331 = arith.mulf %315, %323 : vector<2x32xf32>
    %332 = arith.addf %330, %331 : vector<2x32xf32>
    %333 = math.tanh %332 : vector<2x32xf32>
    %334 = arith.mulf %329, %333 : vector<2x32xf32>
    %335 = vector.extract_strided_slice %12 {offsets = [11, 0, 0], sizes = [1, 2, 128], strides = [1, 1, 1]} : vector<12x2x128xf32> to vector<1x2x128xf32>
    %336 = vector.shape_cast %335 : vector<1x2x128xf32> to vector<2x128xf32>
    %cst_63 = arith.constant dense<0.000000e+00> : vector<2x128xf32>
    %337 = tpu.matmul %334, %13, %cst_63 {dimension_numbers = #tpu.dot_dimension_numbers<[1], [0], [0], [1], [0, 0, 1, 1], [], []>} : vector<2x32xf32>, vector<32x128xf32>, vector<2x128xf32> -> vector<2x128xf32>
    %338 = arith.addf %336, %337 : vector<2x128xf32>
    %339 = vector.extract_strided_slice %338 {offsets = [0, 0], sizes = [2, 32], strides = [1, 1]} : vector<2x128xf32> to vector<2x32xf32>
    %340 = arith.negf %339 : vector<2x32xf32>
    %341 = math.exp %340 : vector<2x32xf32>
    %cst_64 = arith.constant 1.000000e+00 : f32
    %342 = vector.broadcast %cst_64 : f32 to vector<2x32xf32>
    %343 = arith.addf %342, %341 : vector<2x32xf32>
    %344 = arith.divf %342, %343 : vector<2x32xf32>
    %345 = vector.extract_strided_slice %338 {offsets = [0, 32], sizes = [2, 32], strides = [1, 1]} : vector<2x128xf32> to vector<2x32xf32>
    %346 = arith.negf %345 : vector<2x32xf32>
    %347 = math.exp %346 : vector<2x32xf32>
    %cst_65 = arith.constant 1.000000e+00 : f32
    %348 = vector.broadcast %cst_65 : f32 to vector<2x32xf32>
    %349 = arith.addf %348, %347 : vector<2x32xf32>
    %350 = arith.divf %348, %349 : vector<2x32xf32>
    %351 = vector.extract_strided_slice %338 {offsets = [0, 64], sizes = [2, 32], strides = [1, 1]} : vector<2x128xf32> to vector<2x32xf32>
    %352 = math.tanh %351 : vector<2x32xf32>
    %353 = vector.extract_strided_slice %338 {offsets = [0, 96], sizes = [2, 32], strides = [1, 1]} : vector<2x128xf32> to vector<2x32xf32>
    %354 = arith.negf %353 : vector<2x32xf32>
    %355 = math.exp %354 : vector<2x32xf32>
    %cst_66 = arith.constant 1.000000e+00 : f32
    %356 = vector.broadcast %cst_66 : f32 to vector<2x32xf32>
    %357 = arith.addf %356, %355 : vector<2x32xf32>
    %358 = arith.divf %356, %357 : vector<2x32xf32>
    %359 = arith.mulf %350, %332 : vector<2x32xf32>
    %360 = arith.mulf %344, %352 : vector<2x32xf32>
    %361 = arith.addf %359, %360 : vector<2x32xf32>
    %362 = math.tanh %361 : vector<2x32xf32>
    %363 = arith.mulf %358, %362 : vector<2x32xf32>
    %364 = tpu.concatenate %44, %73, %102, %131, %160, %189, %218, %247, %276, %305, %334, %363 in 1 : vector<2x32xf32>, vector<2x32xf32>, vector<2x32xf32>, vector<2x32xf32>, vector<2x32xf32>, vector<2x32xf32>, vector<2x32xf32>, vector<2x32xf32>, vector<2x32xf32>, vector<2x32xf32>, vector<2x32xf32>, vector<2x32xf32> -> vector<2x384xf32>
    %c48 = arith.constant 48 : index
    %c0_67 = arith.constant 0 : index
    %365 = vector.load %arg6[%c48, %c0_67] : memref<1248x128xf32, #tpu.memory_space<vmem>>, vector<384x24xf32>
    %cst_68 = arith.constant dense<0.000000e+00> : vector<2x24xf32>
    %366 = tpu.matmul %364, %365, %cst_68 {dimension_numbers = #tpu.dot_dimension_numbers<[1], [0], [0], [1], [0, 0, 1, 1], [], []>} : vector<2x384xf32>, vector<384x24xf32>, vector<2x24xf32> -> vector<2x24xf32>
    %c432 = arith.constant 432 : index
    %c0_69 = arith.constant 0 : index
    %367 = vector.load %arg6[%c432, %c0_69] : memref<1248x128xf32, #tpu.memory_space<vmem>>, vector<1x24xf32>
    %368 = vector.broadcast %367 : vector<1x24xf32> to vector<2x24xf32>
    %369 = arith.addf %366, %368 : vector<2x24xf32>
    %370 = arith.negf %369 : vector<2x24xf32>
    %371 = math.exp %370 : vector<2x24xf32>
    %cst_70 = arith.constant 1.000000e+00 : f32
    %372 = vector.broadcast %cst_70 : f32 to vector<2x24xf32>
    %373 = arith.addf %372, %371 : vector<2x24xf32>
    %374 = arith.divf %372, %373 : vector<2x24xf32>
    %375 = vector.extract_strided_slice %374 {offsets = [0, 0], sizes = [2, 12], strides = [1, 1]} : vector<2x24xf32> to vector<2x12xf32>
    %376 = vector.extract_strided_slice %374 {offsets = [0, 12], sizes = [2, 12], strides = [1, 1]} : vector<2x24xf32> to vector<2x12xf32>
    %377 = tpu.iota {dimensions = array<i32: 0>} : vector<32x1xi32>
    %c16_i32 = arith.constant 16 : i32
    %c0_i32 = arith.constant 0 : i32
    %378 = arith.cmpi eq, %c16_i32, %c0_i32 : i32
    %c1_i32 = arith.constant 1 : i32
    %379 = arith.select %378, %c1_i32, %c16_i32 : i32
    %380 = vector.broadcast %379 : i32 to vector<32x1xi32>
    %381 = arith.remsi %377, %380 : vector<32x1xi32>
    %c0_i32_71 = arith.constant 0 : i32
    %382 = vector.broadcast %c0_i32_71 : i32 to vector<32x1xi32>
    %383 = arith.cmpi ne, %381, %382 : vector<32x1xi32>
    %c0_i32_72 = arith.constant 0 : i32
    %384 = vector.broadcast %c0_i32_72 : i32 to vector<32x1xi32>
    %385 = arith.cmpi slt, %381, %384 : vector<32x1xi32>
    %c0_i32_73 = arith.constant 0 : i32
    %386 = arith.cmpi slt, %379, %c0_i32_73 : i32
    %387 = vector.broadcast %386 : i1 to vector<32x1xi1>
    %388 = vector.broadcast %387 : vector<32x1xi1> to vector<32x1xi1>
    %389 = arith.xori %385, %388 : vector<32x1xi1>
    %390 = arith.andi %389, %383 : vector<32x1xi1>
    %391 = vector.broadcast %379 : i32 to vector<32x1xi32>
    %392 = arith.addi %381, %391 : vector<32x1xi32>
    %393 = arith.select %390, %392, %381 : vector<32x1xi1>, vector<32x1xi32>
    %c1_i32_74 = arith.constant 1 : i32
    %394 = vector.broadcast %c1_i32_74 : i32 to vector<32x1xi32>
    %395 = arith.cmpi sge, %393, %394 : vector<32x1xi32>
    %c2_i32 = arith.constant 2 : i32
    %396 = vector.broadcast %c2_i32 : i32 to vector<32x1xi32>
    %397 = arith.cmpi sge, %393, %396 : vector<32x1xi32>
    %c4_i32 = arith.constant 4 : i32
    %398 = vector.broadcast %c4_i32 : i32 to vector<32x1xi32>
    %399 = arith.cmpi sge, %393, %398 : vector<32x1xi32>
    %c440 = arith.constant 440 : index
    %c0_75 = arith.constant 0 : index
    %400 = vector.load %arg6[%c440, %c0_75] : memref<1248x128xf32, #tpu.memory_space<vmem>>, vector<6x8xf32>
    %c448 = arith.constant 448 : index
    %c0_76 = arith.constant 0 : index
    %401 = vector.load %arg6[%c448, %c0_76] : memref<1248x128xf32, #tpu.memory_space<vmem>>, vector<1x8xf32>
    %402 = vector.extract_strided_slice %400 {offsets = [3, 0], sizes = [3, 8], strides = [1, 1]} : vector<6x8xf32> to vector<3x8xf32>
    %cst_77 = arith.constant dense<0.000000e+00> : vector<32x8xf32>
    %403 = tpu.matmul %0, %402, %cst_77 {dimension_numbers = #tpu.dot_dimension_numbers<[1], [0], [0], [1], [0, 0, 1, 1], [], []>} : vector<32x3xf32>, vector<3x8xf32>, vector<32x8xf32> -> vector<32x8xf32>
    %404 = vector.extract_strided_slice %400 {offsets = [0, 0], sizes = [3, 8], strides = [1, 1]} : vector<6x8xf32> to vector<3x8xf32>
    %cst_78 = arith.constant dense<0.000000e+00> : vector<32x8xf32>
    %405 = tpu.matmul %0, %404, %cst_78 {dimension_numbers = #tpu.dot_dimension_numbers<[1], [0], [0], [1], [0, 0, 1, 1], [], []>} : vector<32x3xf32>, vector<3x8xf32>, vector<32x8xf32> -> vector<32x8xf32>
    %c1_i32_79 = arith.constant 1 : i32
    %406 = tpu.dynamic_rotate %405 by %c1_i32_79 dim 0 : vector<32x8xf32>, i32 -> vector<32x8xf32>
    %cst_80 = arith.constant 0.000000e+00 : f32
    %407 = vector.shape_cast %395 : vector<32x1xi1> to vector<32x1xi1>
    %408 = vector.broadcast %407 : vector<32x1xi1> to vector<32x8xi1>
    %409 = vector.broadcast %cst_80 : f32 to vector<32x8xf32>
    %410 = arith.select %408, %406, %409 : vector<32x8xi1>, vector<32x8xf32>
    %411 = arith.addf %410, %403 : vector<32x8xf32>
    %412 = vector.broadcast %401 : vector<1x8xf32> to vector<32x8xf32>
    %413 = arith.addf %411, %412 : vector<32x8xf32>
    %cst_81 = arith.constant 0.000000e+00 : f32
    %414 = vector.broadcast %cst_81 : f32 to vector<32x8xf32>
    %415 = arith.maximumf %413, %414 : vector<32x8xf32>
    %c456 = arith.constant 456 : index
    %c0_82 = arith.constant 0 : index
    %416 = vector.load %arg6[%c456, %c0_82] : memref<1248x128xf32, #tpu.memory_space<vmem>>, vector<16x8xf32>
    %c472 = arith.constant 472 : index
    %c0_83 = arith.constant 0 : index
    %417 = vector.load %arg6[%c472, %c0_83] : memref<1248x128xf32, #tpu.memory_space<vmem>>, vector<1x8xf32>
    %418 = vector.extract_strided_slice %416 {offsets = [8, 0], sizes = [8, 8], strides = [1, 1]} : vector<16x8xf32> to vector<8x8xf32>
    %cst_84 = arith.constant dense<0.000000e+00> : vector<32x8xf32>
    %419 = tpu.matmul %415, %418, %cst_84 {dimension_numbers = #tpu.dot_dimension_numbers<[1], [0], [0], [1], [0, 0, 1, 1], [], []>} : vector<32x8xf32>, vector<8x8xf32>, vector<32x8xf32> -> vector<32x8xf32>
    %420 = vector.extract_strided_slice %416 {offsets = [0, 0], sizes = [8, 8], strides = [1, 1]} : vector<16x8xf32> to vector<8x8xf32>
    %cst_85 = arith.constant dense<0.000000e+00> : vector<32x8xf32>
    %421 = tpu.matmul %415, %420, %cst_85 {dimension_numbers = #tpu.dot_dimension_numbers<[1], [0], [0], [1], [0, 0, 1, 1], [], []>} : vector<32x8xf32>, vector<8x8xf32>, vector<32x8xf32> -> vector<32x8xf32>
    %c1_i32_86 = arith.constant 1 : i32
    %422 = tpu.dynamic_rotate %421 by %c1_i32_86 dim 0 : vector<32x8xf32>, i32 -> vector<32x8xf32>
    %cst_87 = arith.constant 0.000000e+00 : f32
    %423 = vector.shape_cast %395 : vector<32x1xi1> to vector<32x1xi1>
    %424 = vector.broadcast %423 : vector<32x1xi1> to vector<32x8xi1>
    %425 = vector.broadcast %cst_87 : f32 to vector<32x8xf32>
    %426 = arith.select %424, %422, %425 : vector<32x8xi1>, vector<32x8xf32>
    %427 = arith.addf %426, %419 : vector<32x8xf32>
    %428 = vector.broadcast %417 : vector<1x8xf32> to vector<32x8xf32>
    %429 = arith.addf %427, %428 : vector<32x8xf32>
    %cst_88 = arith.constant 0.000000e+00 : f32
    %430 = vector.broadcast %cst_88 : f32 to vector<32x8xf32>
    %431 = arith.maximumf %429, %430 : vector<32x8xf32>
    %c480 = arith.constant 480 : index
    %c0_89 = arith.constant 0 : index
    %432 = vector.load %arg6[%c480, %c0_89] : memref<1248x128xf32, #tpu.memory_space<vmem>>, vector<3x8xf32>
    %cst_90 = arith.constant dense<0.000000e+00> : vector<32x8xf32>
    %433 = tpu.matmul %0, %432, %cst_90 {dimension_numbers = #tpu.dot_dimension_numbers<[1], [0], [0], [1], [0, 0, 1, 1], [], []>} : vector<32x3xf32>, vector<3x8xf32>, vector<32x8xf32> -> vector<32x8xf32>
    %c488 = arith.constant 488 : index
    %c0_91 = arith.constant 0 : index
    %434 = vector.load %arg6[%c488, %c0_91] : memref<1248x128xf32, #tpu.memory_space<vmem>>, vector<1x8xf32>
    %435 = vector.broadcast %434 : vector<1x8xf32> to vector<32x8xf32>
    %436 = arith.addf %433, %435 : vector<32x8xf32>
    %437 = arith.addf %431, %436 : vector<32x8xf32>
    %cst_92 = arith.constant 0.000000e+00 : f32
    %438 = vector.broadcast %cst_92 : f32 to vector<32x8xf32>
    %439 = arith.maximumf %437, %438 : vector<32x8xf32>
    %c496 = arith.constant 496 : index
    %c0_93 = arith.constant 0 : index
    %440 = vector.load %arg6[%c496, %c0_93] : memref<1248x128xf32, #tpu.memory_space<vmem>>, vector<16x8xf32>
    %c512 = arith.constant 512 : index
    %c0_94 = arith.constant 0 : index
    %441 = vector.load %arg6[%c512, %c0_94] : memref<1248x128xf32, #tpu.memory_space<vmem>>, vector<1x8xf32>
    %442 = vector.extract_strided_slice %440 {offsets = [8, 0], sizes = [8, 8], strides = [1, 1]} : vector<16x8xf32> to vector<8x8xf32>
    %cst_95 = arith.constant dense<0.000000e+00> : vector<32x8xf32>
    %443 = tpu.matmul %439, %442, %cst_95 {dimension_numbers = #tpu.dot_dimension_numbers<[1], [0], [0], [1], [0, 0, 1, 1], [], []>} : vector<32x8xf32>, vector<8x8xf32>, vector<32x8xf32> -> vector<32x8xf32>
    %444 = vector.extract_strided_slice %440 {offsets = [0, 0], sizes = [8, 8], strides = [1, 1]} : vector<16x8xf32> to vector<8x8xf32>
    %cst_96 = arith.constant dense<0.000000e+00> : vector<32x8xf32>
    %445 = tpu.matmul %439, %444, %cst_96 {dimension_numbers = #tpu.dot_dimension_numbers<[1], [0], [0], [1], [0, 0, 1, 1], [], []>} : vector<32x8xf32>, vector<8x8xf32>, vector<32x8xf32> -> vector<32x8xf32>
    %c2_i32_97 = arith.constant 2 : i32
    %446 = tpu.dynamic_rotate %445 by %c2_i32_97 dim 0 : vector<32x8xf32>, i32 -> vector<32x8xf32>
    %cst_98 = arith.constant 0.000000e+00 : f32
    %447 = vector.shape_cast %397 : vector<32x1xi1> to vector<32x1xi1>
    %448 = vector.broadcast %447 : vector<32x1xi1> to vector<32x8xi1>
    %449 = vector.broadcast %cst_98 : f32 to vector<32x8xf32>
    %450 = arith.select %448, %446, %449 : vector<32x8xi1>, vector<32x8xf32>
    %451 = arith.addf %450, %443 : vector<32x8xf32>
    %452 = vector.broadcast %441 : vector<1x8xf32> to vector<32x8xf32>
    %453 = arith.addf %451, %452 : vector<32x8xf32>
    %cst_99 = arith.constant 0.000000e+00 : f32
    %454 = vector.broadcast %cst_99 : f32 to vector<32x8xf32>
    %455 = arith.maximumf %453, %454 : vector<32x8xf32>
    %c520 = arith.constant 520 : index
    %c0_100 = arith.constant 0 : index
    %456 = vector.load %arg6[%c520, %c0_100] : memref<1248x128xf32, #tpu.memory_space<vmem>>, vector<16x8xf32>
    %c536 = arith.constant 536 : index
    %c0_101 = arith.constant 0 : index
    %457 = vector.load %arg6[%c536, %c0_101] : memref<1248x128xf32, #tpu.memory_space<vmem>>, vector<1x8xf32>
    %458 = vector.extract_strided_slice %456 {offsets = [8, 0], sizes = [8, 8], strides = [1, 1]} : vector<16x8xf32> to vector<8x8xf32>
    %cst_102 = arith.constant dense<0.000000e+00> : vector<32x8xf32>
    %459 = tpu.matmul %455, %458, %cst_102 {dimension_numbers = #tpu.dot_dimension_numbers<[1], [0], [0], [1], [0, 0, 1, 1], [], []>} : vector<32x8xf32>, vector<8x8xf32>, vector<32x8xf32> -> vector<32x8xf32>
    %460 = vector.extract_strided_slice %456 {offsets = [0, 0], sizes = [8, 8], strides = [1, 1]} : vector<16x8xf32> to vector<8x8xf32>
    %cst_103 = arith.constant dense<0.000000e+00> : vector<32x8xf32>
    %461 = tpu.matmul %455, %460, %cst_103 {dimension_numbers = #tpu.dot_dimension_numbers<[1], [0], [0], [1], [0, 0, 1, 1], [], []>} : vector<32x8xf32>, vector<8x8xf32>, vector<32x8xf32> -> vector<32x8xf32>
    %c2_i32_104 = arith.constant 2 : i32
    %462 = tpu.dynamic_rotate %461 by %c2_i32_104 dim 0 : vector<32x8xf32>, i32 -> vector<32x8xf32>
    %cst_105 = arith.constant 0.000000e+00 : f32
    %463 = vector.shape_cast %397 : vector<32x1xi1> to vector<32x1xi1>
    %464 = vector.broadcast %463 : vector<32x1xi1> to vector<32x8xi1>
    %465 = vector.broadcast %cst_105 : f32 to vector<32x8xf32>
    %466 = arith.select %464, %462, %465 : vector<32x8xi1>, vector<32x8xf32>
    %467 = arith.addf %466, %459 : vector<32x8xf32>
    %468 = vector.broadcast %457 : vector<1x8xf32> to vector<32x8xf32>
    %469 = arith.addf %467, %468 : vector<32x8xf32>
    %cst_106 = arith.constant 0.000000e+00 : f32
    %470 = vector.broadcast %cst_106 : f32 to vector<32x8xf32>
    %471 = arith.maximumf %469, %470 : vector<32x8xf32>
    %472 = arith.addf %471, %439 : vector<32x8xf32>
    %cst_107 = arith.constant 0.000000e+00 : f32
    %473 = vector.broadcast %cst_107 : f32 to vector<32x8xf32>
    %474 = arith.maximumf %472, %473 : vector<32x8xf32>
    %c544 = arith.constant 544 : index
    %c0_108 = arith.constant 0 : index
    %475 = vector.load %arg6[%c544, %c0_108] : memref<1248x128xf32, #tpu.memory_space<vmem>>, vector<16x12xf32>
    %c560 = arith.constant 560 : index
    %c0_109 = arith.constant 0 : index
    %476 = vector.load %arg6[%c560, %c0_109] : memref<1248x128xf32, #tpu.memory_space<vmem>>, vector<1x12xf32>
    %477 = vector.extract_strided_slice %475 {offsets = [8, 0], sizes = [8, 12], strides = [1, 1]} : vector<16x12xf32> to vector<8x12xf32>
    %cst_110 = arith.constant dense<0.000000e+00> : vector<32x12xf32>
    %478 = tpu.matmul %474, %477, %cst_110 {dimension_numbers = #tpu.dot_dimension_numbers<[1], [0], [0], [1], [0, 0, 1, 1], [], []>} : vector<32x8xf32>, vector<8x12xf32>, vector<32x12xf32> -> vector<32x12xf32>
    %479 = vector.extract_strided_slice %475 {offsets = [0, 0], sizes = [8, 12], strides = [1, 1]} : vector<16x12xf32> to vector<8x12xf32>
    %cst_111 = arith.constant dense<0.000000e+00> : vector<32x12xf32>
    %480 = tpu.matmul %474, %479, %cst_111 {dimension_numbers = #tpu.dot_dimension_numbers<[1], [0], [0], [1], [0, 0, 1, 1], [], []>} : vector<32x8xf32>, vector<8x12xf32>, vector<32x12xf32> -> vector<32x12xf32>
    %c4_i32_112 = arith.constant 4 : i32
    %481 = tpu.dynamic_rotate %480 by %c4_i32_112 dim 0 : vector<32x12xf32>, i32 -> vector<32x12xf32>
    %cst_113 = arith.constant 0.000000e+00 : f32
    %482 = vector.shape_cast %399 : vector<32x1xi1> to vector<32x1xi1>
    %483 = vector.broadcast %482 : vector<32x1xi1> to vector<32x12xi1>
    %484 = vector.broadcast %cst_113 : f32 to vector<32x12xf32>
    %485 = arith.select %483, %481, %484 : vector<32x12xi1>, vector<32x12xf32>
    %486 = arith.addf %485, %478 : vector<32x12xf32>
    %487 = vector.broadcast %476 : vector<1x12xf32> to vector<32x12xf32>
    %488 = arith.addf %486, %487 : vector<32x12xf32>
    %cst_114 = arith.constant 0.000000e+00 : f32
    %489 = vector.broadcast %cst_114 : f32 to vector<32x12xf32>
    %490 = arith.maximumf %488, %489 : vector<32x12xf32>
    %c568 = arith.constant 568 : index
    %c0_115 = arith.constant 0 : index
    %491 = vector.load %arg6[%c568, %c0_115] : memref<1248x128xf32, #tpu.memory_space<vmem>>, vector<24x12xf32>
    %c592 = arith.constant 592 : index
    %c0_116 = arith.constant 0 : index
    %492 = vector.load %arg6[%c592, %c0_116] : memref<1248x128xf32, #tpu.memory_space<vmem>>, vector<1x12xf32>
    %493 = vector.extract_strided_slice %491 {offsets = [12, 0], sizes = [12, 12], strides = [1, 1]} : vector<24x12xf32> to vector<12x12xf32>
    %cst_117 = arith.constant dense<0.000000e+00> : vector<32x12xf32>
    %494 = tpu.matmul %490, %493, %cst_117 {dimension_numbers = #tpu.dot_dimension_numbers<[1], [0], [0], [1], [0, 0, 1, 1], [], []>} : vector<32x12xf32>, vector<12x12xf32>, vector<32x12xf32> -> vector<32x12xf32>
    %495 = vector.extract_strided_slice %491 {offsets = [0, 0], sizes = [12, 12], strides = [1, 1]} : vector<24x12xf32> to vector<12x12xf32>
    %cst_118 = arith.constant dense<0.000000e+00> : vector<32x12xf32>
    %496 = tpu.matmul %490, %495, %cst_118 {dimension_numbers = #tpu.dot_dimension_numbers<[1], [0], [0], [1], [0, 0, 1, 1], [], []>} : vector<32x12xf32>, vector<12x12xf32>, vector<32x12xf32> -> vector<32x12xf32>
    %c4_i32_119 = arith.constant 4 : i32
    %497 = tpu.dynamic_rotate %496 by %c4_i32_119 dim 0 : vector<32x12xf32>, i32 -> vector<32x12xf32>
    %cst_120 = arith.constant 0.000000e+00 : f32
    %498 = vector.shape_cast %399 : vector<32x1xi1> to vector<32x1xi1>
    %499 = vector.broadcast %498 : vector<32x1xi1> to vector<32x12xi1>
    %500 = vector.broadcast %cst_120 : f32 to vector<32x12xf32>
    %501 = arith.select %499, %497, %500 : vector<32x12xi1>, vector<32x12xf32>
    %502 = arith.addf %501, %494 : vector<32x12xf32>
    %503 = vector.broadcast %492 : vector<1x12xf32> to vector<32x12xf32>
    %504 = arith.addf %502, %503 : vector<32x12xf32>
    %cst_121 = arith.constant 0.000000e+00 : f32
    %505 = vector.broadcast %cst_121 : f32 to vector<32x12xf32>
    %506 = arith.maximumf %504, %505 : vector<32x12xf32>
    %c600 = arith.constant 600 : index
    %c0_122 = arith.constant 0 : index
    %507 = vector.load %arg6[%c600, %c0_122] : memref<1248x128xf32, #tpu.memory_space<vmem>>, vector<8x12xf32>
    %cst_123 = arith.constant dense<0.000000e+00> : vector<32x12xf32>
    %508 = tpu.matmul %474, %507, %cst_123 {dimension_numbers = #tpu.dot_dimension_numbers<[1], [0], [0], [1], [0, 0, 1, 1], [], []>} : vector<32x8xf32>, vector<8x12xf32>, vector<32x12xf32> -> vector<32x12xf32>
    %c608 = arith.constant 608 : index
    %c0_124 = arith.constant 0 : index
    %509 = vector.load %arg6[%c608, %c0_124] : memref<1248x128xf32, #tpu.memory_space<vmem>>, vector<1x12xf32>
    %510 = vector.broadcast %509 : vector<1x12xf32> to vector<32x12xf32>
    %511 = arith.addf %508, %510 : vector<32x12xf32>
    %512 = arith.addf %506, %511 : vector<32x12xf32>
    %cst_125 = arith.constant 0.000000e+00 : f32
    %513 = vector.broadcast %cst_125 : f32 to vector<32x12xf32>
    %514 = arith.maximumf %512, %513 : vector<32x12xf32>
    %515 = vector.shape_cast %514 : vector<32x12xf32> to vector<2x16x12xf32>
    %c616 = arith.constant 616 : index
    %c0_126 = arith.constant 0 : index
    %516 = vector.load %arg6[%c616, %c0_126] : memref<1248x128xf32, #tpu.memory_space<vmem>>, vector<6x8xf32>
    %c624 = arith.constant 624 : index
    %c0_127 = arith.constant 0 : index
    %517 = vector.load %arg6[%c624, %c0_127] : memref<1248x128xf32, #tpu.memory_space<vmem>>, vector<1x8xf32>
    %518 = vector.extract_strided_slice %516 {offsets = [3, 0], sizes = [3, 8], strides = [1, 1]} : vector<6x8xf32> to vector<3x8xf32>
    %cst_128 = arith.constant dense<0.000000e+00> : vector<32x8xf32>
    %519 = tpu.matmul %1, %518, %cst_128 {dimension_numbers = #tpu.dot_dimension_numbers<[1], [0], [0], [1], [0, 0, 1, 1], [], []>} : vector<32x3xf32>, vector<3x8xf32>, vector<32x8xf32> -> vector<32x8xf32>
    %520 = vector.extract_strided_slice %516 {offsets = [0, 0], sizes = [3, 8], strides = [1, 1]} : vector<6x8xf32> to vector<3x8xf32>
    %cst_129 = arith.constant dense<0.000000e+00> : vector<32x8xf32>
    %521 = tpu.matmul %1, %520, %cst_129 {dimension_numbers = #tpu.dot_dimension_numbers<[1], [0], [0], [1], [0, 0, 1, 1], [], []>} : vector<32x3xf32>, vector<3x8xf32>, vector<32x8xf32> -> vector<32x8xf32>
    %c1_i32_130 = arith.constant 1 : i32
    %522 = tpu.dynamic_rotate %521 by %c1_i32_130 dim 0 : vector<32x8xf32>, i32 -> vector<32x8xf32>
    %cst_131 = arith.constant 0.000000e+00 : f32
    %523 = vector.shape_cast %395 : vector<32x1xi1> to vector<32x1xi1>
    %524 = vector.broadcast %523 : vector<32x1xi1> to vector<32x8xi1>
    %525 = vector.broadcast %cst_131 : f32 to vector<32x8xf32>
    %526 = arith.select %524, %522, %525 : vector<32x8xi1>, vector<32x8xf32>
    %527 = arith.addf %526, %519 : vector<32x8xf32>
    %528 = vector.broadcast %517 : vector<1x8xf32> to vector<32x8xf32>
    %529 = arith.addf %527, %528 : vector<32x8xf32>
    %cst_132 = arith.constant 0.000000e+00 : f32
    %530 = vector.broadcast %cst_132 : f32 to vector<32x8xf32>
    %531 = arith.maximumf %529, %530 : vector<32x8xf32>
    %c632 = arith.constant 632 : index
    %c0_133 = arith.constant 0 : index
    %532 = vector.load %arg6[%c632, %c0_133] : memref<1248x128xf32, #tpu.memory_space<vmem>>, vector<16x8xf32>
    %c648 = arith.constant 648 : index
    %c0_134 = arith.constant 0 : index
    %533 = vector.load %arg6[%c648, %c0_134] : memref<1248x128xf32, #tpu.memory_space<vmem>>, vector<1x8xf32>
    %534 = vector.extract_strided_slice %532 {offsets = [8, 0], sizes = [8, 8], strides = [1, 1]} : vector<16x8xf32> to vector<8x8xf32>
    %cst_135 = arith.constant dense<0.000000e+00> : vector<32x8xf32>
    %535 = tpu.matmul %531, %534, %cst_135 {dimension_numbers = #tpu.dot_dimension_numbers<[1], [0], [0], [1], [0, 0, 1, 1], [], []>} : vector<32x8xf32>, vector<8x8xf32>, vector<32x8xf32> -> vector<32x8xf32>
    %536 = vector.extract_strided_slice %532 {offsets = [0, 0], sizes = [8, 8], strides = [1, 1]} : vector<16x8xf32> to vector<8x8xf32>
    %cst_136 = arith.constant dense<0.000000e+00> : vector<32x8xf32>
    %537 = tpu.matmul %531, %536, %cst_136 {dimension_numbers = #tpu.dot_dimension_numbers<[1], [0], [0], [1], [0, 0, 1, 1], [], []>} : vector<32x8xf32>, vector<8x8xf32>, vector<32x8xf32> -> vector<32x8xf32>
    %c1_i32_137 = arith.constant 1 : i32
    %538 = tpu.dynamic_rotate %537 by %c1_i32_137 dim 0 : vector<32x8xf32>, i32 -> vector<32x8xf32>
    %cst_138 = arith.constant 0.000000e+00 : f32
    %539 = vector.shape_cast %395 : vector<32x1xi1> to vector<32x1xi1>
    %540 = vector.broadcast %539 : vector<32x1xi1> to vector<32x8xi1>
    %541 = vector.broadcast %cst_138 : f32 to vector<32x8xf32>
    %542 = arith.select %540, %538, %541 : vector<32x8xi1>, vector<32x8xf32>
    %543 = arith.addf %542, %535 : vector<32x8xf32>
    %544 = vector.broadcast %533 : vector<1x8xf32> to vector<32x8xf32>
    %545 = arith.addf %543, %544 : vector<32x8xf32>
    %cst_139 = arith.constant 0.000000e+00 : f32
    %546 = vector.broadcast %cst_139 : f32 to vector<32x8xf32>
    %547 = arith.maximumf %545, %546 : vector<32x8xf32>
    %c656 = arith.constant 656 : index
    %c0_140 = arith.constant 0 : index
    %548 = vector.load %arg6[%c656, %c0_140] : memref<1248x128xf32, #tpu.memory_space<vmem>>, vector<3x8xf32>
    %cst_141 = arith.constant dense<0.000000e+00> : vector<32x8xf32>
    %549 = tpu.matmul %1, %548, %cst_141 {dimension_numbers = #tpu.dot_dimension_numbers<[1], [0], [0], [1], [0, 0, 1, 1], [], []>} : vector<32x3xf32>, vector<3x8xf32>, vector<32x8xf32> -> vector<32x8xf32>
    %c664 = arith.constant 664 : index
    %c0_142 = arith.constant 0 : index
    %550 = vector.load %arg6[%c664, %c0_142] : memref<1248x128xf32, #tpu.memory_space<vmem>>, vector<1x8xf32>
    %551 = vector.broadcast %550 : vector<1x8xf32> to vector<32x8xf32>
    %552 = arith.addf %549, %551 : vector<32x8xf32>
    %553 = arith.addf %547, %552 : vector<32x8xf32>
    %cst_143 = arith.constant 0.000000e+00 : f32
    %554 = vector.broadcast %cst_143 : f32 to vector<32x8xf32>
    %555 = arith.maximumf %553, %554 : vector<32x8xf32>
    %c672 = arith.constant 672 : index
    %c0_144 = arith.constant 0 : index
    %556 = vector.load %arg6[%c672, %c0_144] : memref<1248x128xf32, #tpu.memory_space<vmem>>, vector<16x8xf32>
    %c688 = arith.constant 688 : index
    %c0_145 = arith.constant 0 : index
    %557 = vector.load %arg6[%c688, %c0_145] : memref<1248x128xf32, #tpu.memory_space<vmem>>, vector<1x8xf32>
    %558 = vector.extract_strided_slice %556 {offsets = [8, 0], sizes = [8, 8], strides = [1, 1]} : vector<16x8xf32> to vector<8x8xf32>
    %cst_146 = arith.constant dense<0.000000e+00> : vector<32x8xf32>
    %559 = tpu.matmul %555, %558, %cst_146 {dimension_numbers = #tpu.dot_dimension_numbers<[1], [0], [0], [1], [0, 0, 1, 1], [], []>} : vector<32x8xf32>, vector<8x8xf32>, vector<32x8xf32> -> vector<32x8xf32>
    %560 = vector.extract_strided_slice %556 {offsets = [0, 0], sizes = [8, 8], strides = [1, 1]} : vector<16x8xf32> to vector<8x8xf32>
    %cst_147 = arith.constant dense<0.000000e+00> : vector<32x8xf32>
    %561 = tpu.matmul %555, %560, %cst_147 {dimension_numbers = #tpu.dot_dimension_numbers<[1], [0], [0], [1], [0, 0, 1, 1], [], []>} : vector<32x8xf32>, vector<8x8xf32>, vector<32x8xf32> -> vector<32x8xf32>
    %c2_i32_148 = arith.constant 2 : i32
    %562 = tpu.dynamic_rotate %561 by %c2_i32_148 dim 0 : vector<32x8xf32>, i32 -> vector<32x8xf32>
    %cst_149 = arith.constant 0.000000e+00 : f32
    %563 = vector.shape_cast %397 : vector<32x1xi1> to vector<32x1xi1>
    %564 = vector.broadcast %563 : vector<32x1xi1> to vector<32x8xi1>
    %565 = vector.broadcast %cst_149 : f32 to vector<32x8xf32>
    %566 = arith.select %564, %562, %565 : vector<32x8xi1>, vector<32x8xf32>
    %567 = arith.addf %566, %559 : vector<32x8xf32>
    %568 = vector.broadcast %557 : vector<1x8xf32> to vector<32x8xf32>
    %569 = arith.addf %567, %568 : vector<32x8xf32>
    %cst_150 = arith.constant 0.000000e+00 : f32
    %570 = vector.broadcast %cst_150 : f32 to vector<32x8xf32>
    %571 = arith.maximumf %569, %570 : vector<32x8xf32>
    %c696 = arith.constant 696 : index
    %c0_151 = arith.constant 0 : index
    %572 = vector.load %arg6[%c696, %c0_151] : memref<1248x128xf32, #tpu.memory_space<vmem>>, vector<16x8xf32>
    %c712 = arith.constant 712 : index
    %c0_152 = arith.constant 0 : index
    %573 = vector.load %arg6[%c712, %c0_152] : memref<1248x128xf32, #tpu.memory_space<vmem>>, vector<1x8xf32>
    %574 = vector.extract_strided_slice %572 {offsets = [8, 0], sizes = [8, 8], strides = [1, 1]} : vector<16x8xf32> to vector<8x8xf32>
    %cst_153 = arith.constant dense<0.000000e+00> : vector<32x8xf32>
    %575 = tpu.matmul %571, %574, %cst_153 {dimension_numbers = #tpu.dot_dimension_numbers<[1], [0], [0], [1], [0, 0, 1, 1], [], []>} : vector<32x8xf32>, vector<8x8xf32>, vector<32x8xf32> -> vector<32x8xf32>
    %576 = vector.extract_strided_slice %572 {offsets = [0, 0], sizes = [8, 8], strides = [1, 1]} : vector<16x8xf32> to vector<8x8xf32>
    %cst_154 = arith.constant dense<0.000000e+00> : vector<32x8xf32>
    %577 = tpu.matmul %571, %576, %cst_154 {dimension_numbers = #tpu.dot_dimension_numbers<[1], [0], [0], [1], [0, 0, 1, 1], [], []>} : vector<32x8xf32>, vector<8x8xf32>, vector<32x8xf32> -> vector<32x8xf32>
    %c2_i32_155 = arith.constant 2 : i32
    %578 = tpu.dynamic_rotate %577 by %c2_i32_155 dim 0 : vector<32x8xf32>, i32 -> vector<32x8xf32>
    %cst_156 = arith.constant 0.000000e+00 : f32
    %579 = vector.shape_cast %397 : vector<32x1xi1> to vector<32x1xi1>
    %580 = vector.broadcast %579 : vector<32x1xi1> to vector<32x8xi1>
    %581 = vector.broadcast %cst_156 : f32 to vector<32x8xf32>
    %582 = arith.select %580, %578, %581 : vector<32x8xi1>, vector<32x8xf32>
    %583 = arith.addf %582, %575 : vector<32x8xf32>
    %584 = vector.broadcast %573 : vector<1x8xf32> to vector<32x8xf32>
    %585 = arith.addf %583, %584 : vector<32x8xf32>
    %cst_157 = arith.constant 0.000000e+00 : f32
    %586 = vector.broadcast %cst_157 : f32 to vector<32x8xf32>
    %587 = arith.maximumf %585, %586 : vector<32x8xf32>
    %588 = arith.addf %587, %555 : vector<32x8xf32>
    %cst_158 = arith.constant 0.000000e+00 : f32
    %589 = vector.broadcast %cst_158 : f32 to vector<32x8xf32>
    %590 = arith.maximumf %588, %589 : vector<32x8xf32>
    %c720 = arith.constant 720 : index
    %c0_159 = arith.constant 0 : index
    %591 = vector.load %arg6[%c720, %c0_159] : memref<1248x128xf32, #tpu.memory_space<vmem>>, vector<16x12xf32>
    %c736 = arith.constant 736 : index
    %c0_160 = arith.constant 0 : index
    %592 = vector.load %arg6[%c736, %c0_160] : memref<1248x128xf32, #tpu.memory_space<vmem>>, vector<1x12xf32>
    %593 = vector.extract_strided_slice %591 {offsets = [8, 0], sizes = [8, 12], strides = [1, 1]} : vector<16x12xf32> to vector<8x12xf32>
    %cst_161 = arith.constant dense<0.000000e+00> : vector<32x12xf32>
    %594 = tpu.matmul %590, %593, %cst_161 {dimension_numbers = #tpu.dot_dimension_numbers<[1], [0], [0], [1], [0, 0, 1, 1], [], []>} : vector<32x8xf32>, vector<8x12xf32>, vector<32x12xf32> -> vector<32x12xf32>
    %595 = vector.extract_strided_slice %591 {offsets = [0, 0], sizes = [8, 12], strides = [1, 1]} : vector<16x12xf32> to vector<8x12xf32>
    %cst_162 = arith.constant dense<0.000000e+00> : vector<32x12xf32>
    %596 = tpu.matmul %590, %595, %cst_162 {dimension_numbers = #tpu.dot_dimension_numbers<[1], [0], [0], [1], [0, 0, 1, 1], [], []>} : vector<32x8xf32>, vector<8x12xf32>, vector<32x12xf32> -> vector<32x12xf32>
    %c4_i32_163 = arith.constant 4 : i32
    %597 = tpu.dynamic_rotate %596 by %c4_i32_163 dim 0 : vector<32x12xf32>, i32 -> vector<32x12xf32>
    %cst_164 = arith.constant 0.000000e+00 : f32
    %598 = vector.shape_cast %399 : vector<32x1xi1> to vector<32x1xi1>
    %599 = vector.broadcast %598 : vector<32x1xi1> to vector<32x12xi1>
    %600 = vector.broadcast %cst_164 : f32 to vector<32x12xf32>
    %601 = arith.select %599, %597, %600 : vector<32x12xi1>, vector<32x12xf32>
    %602 = arith.addf %601, %594 : vector<32x12xf32>
    %603 = vector.broadcast %592 : vector<1x12xf32> to vector<32x12xf32>
    %604 = arith.addf %602, %603 : vector<32x12xf32>
    %cst_165 = arith.constant 0.000000e+00 : f32
    %605 = vector.broadcast %cst_165 : f32 to vector<32x12xf32>
    %606 = arith.maximumf %604, %605 : vector<32x12xf32>
    %c744 = arith.constant 744 : index
    %c0_166 = arith.constant 0 : index
    %607 = vector.load %arg6[%c744, %c0_166] : memref<1248x128xf32, #tpu.memory_space<vmem>>, vector<24x12xf32>
    %c768 = arith.constant 768 : index
    %c0_167 = arith.constant 0 : index
    %608 = vector.load %arg6[%c768, %c0_167] : memref<1248x128xf32, #tpu.memory_space<vmem>>, vector<1x12xf32>
    %609 = vector.extract_strided_slice %607 {offsets = [12, 0], sizes = [12, 12], strides = [1, 1]} : vector<24x12xf32> to vector<12x12xf32>
    %cst_168 = arith.constant dense<0.000000e+00> : vector<32x12xf32>
    %610 = tpu.matmul %606, %609, %cst_168 {dimension_numbers = #tpu.dot_dimension_numbers<[1], [0], [0], [1], [0, 0, 1, 1], [], []>} : vector<32x12xf32>, vector<12x12xf32>, vector<32x12xf32> -> vector<32x12xf32>
    %611 = vector.extract_strided_slice %607 {offsets = [0, 0], sizes = [12, 12], strides = [1, 1]} : vector<24x12xf32> to vector<12x12xf32>
    %cst_169 = arith.constant dense<0.000000e+00> : vector<32x12xf32>
    %612 = tpu.matmul %606, %611, %cst_169 {dimension_numbers = #tpu.dot_dimension_numbers<[1], [0], [0], [1], [0, 0, 1, 1], [], []>} : vector<32x12xf32>, vector<12x12xf32>, vector<32x12xf32> -> vector<32x12xf32>
    %c4_i32_170 = arith.constant 4 : i32
    %613 = tpu.dynamic_rotate %612 by %c4_i32_170 dim 0 : vector<32x12xf32>, i32 -> vector<32x12xf32>
    %cst_171 = arith.constant 0.000000e+00 : f32
    %614 = vector.shape_cast %399 : vector<32x1xi1> to vector<32x1xi1>
    %615 = vector.broadcast %614 : vector<32x1xi1> to vector<32x12xi1>
    %616 = vector.broadcast %cst_171 : f32 to vector<32x12xf32>
    %617 = arith.select %615, %613, %616 : vector<32x12xi1>, vector<32x12xf32>
    %618 = arith.addf %617, %610 : vector<32x12xf32>
    %619 = vector.broadcast %608 : vector<1x12xf32> to vector<32x12xf32>
    %620 = arith.addf %618, %619 : vector<32x12xf32>
    %cst_172 = arith.constant 0.000000e+00 : f32
    %621 = vector.broadcast %cst_172 : f32 to vector<32x12xf32>
    %622 = arith.maximumf %620, %621 : vector<32x12xf32>
    %c776 = arith.constant 776 : index
    %c0_173 = arith.constant 0 : index
    %623 = vector.load %arg6[%c776, %c0_173] : memref<1248x128xf32, #tpu.memory_space<vmem>>, vector<8x12xf32>
    %cst_174 = arith.constant dense<0.000000e+00> : vector<32x12xf32>
    %624 = tpu.matmul %590, %623, %cst_174 {dimension_numbers = #tpu.dot_dimension_numbers<[1], [0], [0], [1], [0, 0, 1, 1], [], []>} : vector<32x8xf32>, vector<8x12xf32>, vector<32x12xf32> -> vector<32x12xf32>
    %c784 = arith.constant 784 : index
    %c0_175 = arith.constant 0 : index
    %625 = vector.load %arg6[%c784, %c0_175] : memref<1248x128xf32, #tpu.memory_space<vmem>>, vector<1x12xf32>
    %626 = vector.broadcast %625 : vector<1x12xf32> to vector<32x12xf32>
    %627 = arith.addf %624, %626 : vector<32x12xf32>
    %628 = arith.addf %622, %627 : vector<32x12xf32>
    %cst_176 = arith.constant 0.000000e+00 : f32
    %629 = vector.broadcast %cst_176 : f32 to vector<32x12xf32>
    %630 = arith.maximumf %628, %629 : vector<32x12xf32>
    %631 = vector.shape_cast %630 : vector<32x12xf32> to vector<2x16x12xf32>
    %632 = vector.extract_strided_slice %515 {offsets = [0, 0, 0], sizes = [2, 11, 12], strides = [1, 1, 1]} : vector<2x16x12xf32> to vector<2x11x12xf32>
    %633 = vector.shape_cast %375 : vector<2x12xf32> to vector<2x1x12xf32>
    %634 = vector.broadcast %633 : vector<2x1x12xf32> to vector<2x11x12xf32>
    %635 = arith.mulf %632, %634 : vector<2x11x12xf32>
    %636 = vector.shape_cast %635 : vector<2x11x12xf32> to vector<2x132xf32>
    %637 = vector.extract_strided_slice %631 {offsets = [0, 0, 0], sizes = [2, 12, 12], strides = [1, 1, 1]} : vector<2x16x12xf32> to vector<2x12x12xf32>
    %638 = vector.shape_cast %376 : vector<2x12xf32> to vector<2x1x12xf32>
    %639 = vector.broadcast %638 : vector<2x1x12xf32> to vector<2x12x12xf32>
    %640 = arith.mulf %637, %639 : vector<2x12x12xf32>
    %641 = vector.shape_cast %640 : vector<2x12x12xf32> to vector<2x144xf32>
    %c792 = arith.constant 792 : index
    %c0_177 = arith.constant 0 : index
    %642 = vector.load %arg6[%c792, %c0_177] : memref<1248x128xf32, #tpu.memory_space<vmem>>, vector<2x2xf32>
    %c800 = arith.constant 800 : index
    %c0_178 = arith.constant 0 : index
    %643 = vector.load %arg6[%c800, %c0_178] : memref<1248x128xf32, #tpu.memory_space<vmem>>, vector<1x1xf32>
    %cst_179 = arith.constant 0.000000e+00 : f32
    %644 = vector.broadcast %cst_179 : f32 to vector<2x10xf32>
    %645 = vector.extract_strided_slice %642 {offsets = [0, 0], sizes = [1, 1], strides = [1, 1]} : vector<2x2xf32> to vector<1x1xf32>
    %646 = vector.extract_strided_slice %2 {offsets = [0, 0, 0], sizes = [2, 1, 10], strides = [1, 1, 1]} : vector<2x2x11xf32> to vector<2x1x10xf32>
    %647 = vector.shape_cast %646 : vector<2x1x10xf32> to vector<2x10xf32>
    %648 = vector.broadcast %645 : vector<1x1xf32> to vector<2x10xf32>
    %649 = arith.mulf %648, %647 : vector<2x10xf32>
    %650 = arith.addf %644, %649 : vector<2x10xf32>
    %651 = vector.extract_strided_slice %642 {offsets = [0, 1], sizes = [1, 1], strides = [1, 1]} : vector<2x2xf32> to vector<1x1xf32>
    %652 = vector.extract_strided_slice %2 {offsets = [0, 1, 0], sizes = [2, 1, 10], strides = [1, 1, 1]} : vector<2x2x11xf32> to vector<2x1x10xf32>
    %653 = vector.shape_cast %652 : vector<2x1x10xf32> to vector<2x10xf32>
    %654 = vector.broadcast %651 : vector<1x1xf32> to vector<2x10xf32>
    %655 = arith.mulf %654, %653 : vector<2x10xf32>
    %656 = arith.addf %650, %655 : vector<2x10xf32>
    %657 = vector.extract_strided_slice %642 {offsets = [1, 0], sizes = [1, 1], strides = [1, 1]} : vector<2x2xf32> to vector<1x1xf32>
    %658 = vector.extract_strided_slice %2 {offsets = [0, 0, 1], sizes = [2, 1, 10], strides = [1, 1, 1]} : vector<2x2x11xf32> to vector<2x1x10xf32>
    %659 = vector.shape_cast %658 : vector<2x1x10xf32> to vector<2x10xf32>
    %660 = vector.broadcast %657 : vector<1x1xf32> to vector<2x10xf32>
    %661 = arith.mulf %660, %659 : vector<2x10xf32>
    %662 = arith.addf %656, %661 : vector<2x10xf32>
    %663 = vector.extract_strided_slice %642 {offsets = [1, 1], sizes = [1, 1], strides = [1, 1]} : vector<2x2xf32> to vector<1x1xf32>
    %664 = vector.extract_strided_slice %2 {offsets = [0, 1, 1], sizes = [2, 1, 10], strides = [1, 1, 1]} : vector<2x2x11xf32> to vector<2x1x10xf32>
    %665 = vector.shape_cast %664 : vector<2x1x10xf32> to vector<2x10xf32>
    %666 = vector.broadcast %663 : vector<1x1xf32> to vector<2x10xf32>
    %667 = arith.mulf %666, %665 : vector<2x10xf32>
    %668 = arith.addf %662, %667 : vector<2x10xf32>
    %669 = vector.broadcast %643 : vector<1x1xf32> to vector<2x10xf32>
    %670 = arith.addf %668, %669 : vector<2x10xf32>
    %c808 = arith.constant 808 : index
    %c0_180 = arith.constant 0 : index
    %671 = vector.load %arg6[%c808, %c0_180] : memref<1248x128xf32, #tpu.memory_space<vmem>>, vector<10x4xf32>
    %cst_181 = arith.constant dense<0.000000e+00> : vector<2x4xf32>
    %672 = tpu.matmul %670, %671, %cst_181 {dimension_numbers = #tpu.dot_dimension_numbers<[1], [0], [0], [1], [0, 0, 1, 1], [], []>} : vector<2x10xf32>, vector<10x4xf32>, vector<2x4xf32> -> vector<2x4xf32>
    %c824 = arith.constant 824 : index
    %c0_182 = arith.constant 0 : index
    %673 = vector.load %arg6[%c824, %c0_182] : memref<1248x128xf32, #tpu.memory_space<vmem>>, vector<1x4xf32>
    %674 = vector.broadcast %673 : vector<1x4xf32> to vector<2x4xf32>
    %675 = arith.addf %672, %674 : vector<2x4xf32>
    %cst_183 = arith.constant 0.000000e+00 : f32
    %676 = vector.broadcast %cst_183 : f32 to vector<2x4xf32>
    %677 = arith.maximumf %675, %676 : vector<2x4xf32>
    %c976 = arith.constant 976 : index
    %c0_184 = arith.constant 0 : index
    %678 = vector.load %arg6[%c976, %c0_184] : memref<1248x128xf32, #tpu.memory_space<vmem>>, vector<132x16xf32>
    %cst_185 = arith.constant dense<0.000000e+00> : vector<2x16xf32>
    %679 = tpu.matmul %636, %678, %cst_185 {dimension_numbers = #tpu.dot_dimension_numbers<[1], [0], [0], [1], [0, 0, 1, 1], [], []>} : vector<2x132xf32>, vector<132x16xf32>, vector<2x16xf32> -> vector<2x16xf32>
    %c1112 = arith.constant 1112 : index
    %c0_186 = arith.constant 0 : index
    %680 = vector.load %arg6[%c1112, %c0_186] : memref<1248x128xf32, #tpu.memory_space<vmem>>, vector<4x16xf32>
    %cst_187 = arith.constant dense<0.000000e+00> : vector<2x16xf32>
    %681 = tpu.matmul %677, %680, %cst_187 {dimension_numbers = #tpu.dot_dimension_numbers<[1], [0], [0], [1], [0, 0, 1, 1], [], []>} : vector<2x4xf32>, vector<4x16xf32>, vector<2x16xf32> -> vector<2x16xf32>
    %c832 = arith.constant 832 : index
    %c0_188 = arith.constant 0 : index
    %682 = vector.load %arg6[%c832, %c0_188] : memref<1248x128xf32, #tpu.memory_space<vmem>>, vector<144x8xf32>
    %cst_189 = arith.constant dense<0.000000e+00> : vector<2x8xf32>
    %683 = tpu.matmul %641, %682, %cst_189 {dimension_numbers = #tpu.dot_dimension_numbers<[1], [0], [0], [1], [0, 0, 1, 1], [], []>} : vector<2x144xf32>, vector<144x8xf32>, vector<2x8xf32> -> vector<2x8xf32>
    %684 = vector.extract_strided_slice %679 {offsets = [0, 0], sizes = [2, 8], strides = [1, 1]} : vector<2x16xf32> to vector<2x8xf32>
    %685 = arith.addf %683, %684 : vector<2x8xf32>
    %686 = vector.extract_strided_slice %681 {offsets = [0, 0], sizes = [2, 8], strides = [1, 1]} : vector<2x16xf32> to vector<2x8xf32>
    %687 = arith.addf %685, %686 : vector<2x8xf32>
    %c1120 = arith.constant 1120 : index
    %c0_190 = arith.constant 0 : index
    %688 = vector.load %arg6[%c1120, %c0_190] : memref<1248x128xf32, #tpu.memory_space<vmem>>, vector<1x8xf32>
    %689 = vector.broadcast %688 : vector<1x8xf32> to vector<2x8xf32>
    %690 = arith.addf %687, %689 : vector<2x8xf32>
    %cst_191 = arith.constant 0.000000e+00 : f32
    %691 = vector.broadcast %cst_191 : f32 to vector<2x8xf32>
    %692 = arith.maximumf %690, %691 : vector<2x8xf32>
    %c1128 = arith.constant 1128 : index
    %c0_192 = arith.constant 0 : index
    %693 = vector.load %arg6[%c1128, %c0_192] : memref<1248x128xf32, #tpu.memory_space<vmem>>, vector<8x8xf32>
    %cst_193 = arith.constant dense<0.000000e+00> : vector<2x8xf32>
    %694 = tpu.matmul %692, %693, %cst_193 {dimension_numbers = #tpu.dot_dimension_numbers<[1], [0], [0], [1], [0, 0, 1, 1], [], []>} : vector<2x8xf32>, vector<8x8xf32>, vector<2x8xf32> -> vector<2x8xf32>
    %c1136 = arith.constant 1136 : index
    %c0_194 = arith.constant 0 : index
    %695 = vector.load %arg6[%c1136, %c0_194] : memref<1248x128xf32, #tpu.memory_space<vmem>>, vector<1x8xf32>
    %696 = vector.broadcast %695 : vector<1x8xf32> to vector<2x8xf32>
    %697 = arith.addf %694, %696 : vector<2x8xf32>
    %cst_195 = arith.constant 0.000000e+00 : f32
    %698 = vector.broadcast %cst_195 : f32 to vector<2x8xf32>
    %699 = arith.maximumf %697, %698 : vector<2x8xf32>
    %c1144 = arith.constant 1144 : index
    %c0_196 = arith.constant 0 : index
    %700 = vector.load %arg6[%c1144, %c0_196] : memref<1248x128xf32, #tpu.memory_space<vmem>>, vector<8x8xf32>
    %cst_197 = arith.constant dense<0.000000e+00> : vector<2x8xf32>
    %701 = tpu.matmul %699, %700, %cst_197 {dimension_numbers = #tpu.dot_dimension_numbers<[1], [0], [0], [1], [0, 0, 1, 1], [], []>} : vector<2x8xf32>, vector<8x8xf32>, vector<2x8xf32> -> vector<2x8xf32>
    %c1152 = arith.constant 1152 : index
    %c0_198 = arith.constant 0 : index
    %702 = vector.load %arg6[%c1152, %c0_198] : memref<1248x128xf32, #tpu.memory_space<vmem>>, vector<1x8xf32>
    %703 = vector.broadcast %702 : vector<1x8xf32> to vector<2x8xf32>
    %704 = arith.addf %701, %703 : vector<2x8xf32>
    %705 = vector.extract_strided_slice %704 {offsets = [0, 0], sizes = [2, 4], strides = [1, 1]} : vector<2x8xf32> to vector<2x4xf32>
    %706 = vector.extract_strided_slice %704 {offsets = [0, 4], sizes = [2, 4], strides = [1, 1]} : vector<2x8xf32> to vector<2x4xf32>
    %cst_199 = arith.constant 5.000000e-01 : f32
    %707 = vector.broadcast %cst_199 : f32 to vector<2x4xf32>
    %708 = arith.mulf %707, %706 : vector<2x4xf32>
    %709 = math.exp %708 : vector<2x4xf32>
    %710 = arith.mulf %5, %709 : vector<2x4xf32>
    %711 = arith.addf %705, %710 : vector<2x4xf32>
    %c1160 = arith.constant 1160 : index
    %c0_200 = arith.constant 0 : index
    %712 = vector.load %arg6[%c1160, %c0_200] : memref<1248x128xf32, #tpu.memory_space<vmem>>, vector<4x8xf32>
    %cst_201 = arith.constant dense<0.000000e+00> : vector<2x8xf32>
    %713 = tpu.matmul %711, %712, %cst_201 {dimension_numbers = #tpu.dot_dimension_numbers<[1], [0], [0], [1], [0, 0, 1, 1], [], []>} : vector<2x4xf32>, vector<4x8xf32>, vector<2x8xf32> -> vector<2x8xf32>
    %714 = vector.extract_strided_slice %679 {offsets = [0, 8], sizes = [2, 8], strides = [1, 1]} : vector<2x16xf32> to vector<2x8xf32>
    %715 = arith.addf %713, %714 : vector<2x8xf32>
    %716 = vector.extract_strided_slice %681 {offsets = [0, 8], sizes = [2, 8], strides = [1, 1]} : vector<2x16xf32> to vector<2x8xf32>
    %717 = arith.addf %715, %716 : vector<2x8xf32>
    %c1168 = arith.constant 1168 : index
    %c0_202 = arith.constant 0 : index
    %718 = vector.load %arg6[%c1168, %c0_202] : memref<1248x128xf32, #tpu.memory_space<vmem>>, vector<1x8xf32>
    %719 = vector.broadcast %718 : vector<1x8xf32> to vector<2x8xf32>
    %720 = arith.addf %717, %719 : vector<2x8xf32>
    %cst_203 = arith.constant 0.000000e+00 : f32
    %721 = vector.broadcast %cst_203 : f32 to vector<2x8xf32>
    %722 = arith.maximumf %720, %721 : vector<2x8xf32>
    %c1176 = arith.constant 1176 : index
    %c0_204 = arith.constant 0 : index
    %723 = vector.load %arg6[%c1176, %c0_204] : memref<1248x128xf32, #tpu.memory_space<vmem>>, vector<8x8xf32>
    %cst_205 = arith.constant dense<0.000000e+00> : vector<2x8xf32>
    %724 = tpu.matmul %722, %723, %cst_205 {dimension_numbers = #tpu.dot_dimension_numbers<[1], [0], [0], [1], [0, 0, 1, 1], [], []>} : vector<2x8xf32>, vector<8x8xf32>, vector<2x8xf32> -> vector<2x8xf32>
    %c1184 = arith.constant 1184 : index
    %c0_206 = arith.constant 0 : index
    %725 = vector.load %arg6[%c1184, %c0_206] : memref<1248x128xf32, #tpu.memory_space<vmem>>, vector<1x8xf32>
    %726 = vector.broadcast %725 : vector<1x8xf32> to vector<2x8xf32>
    %727 = arith.addf %724, %726 : vector<2x8xf32>
    %cst_207 = arith.constant 0.000000e+00 : f32
    %728 = vector.broadcast %cst_207 : f32 to vector<2x8xf32>
    %729 = arith.maximumf %727, %728 : vector<2x8xf32>
    %c1192 = arith.constant 1192 : index
    %c0_208 = arith.constant 0 : index
    %730 = vector.load %arg6[%c1192, %c0_208] : memref<1248x128xf32, #tpu.memory_space<vmem>>, vector<8x24xf32>
    %cst_209 = arith.constant dense<0.000000e+00> : vector<2x24xf32>
    %731 = tpu.matmul %729, %730, %cst_209 {dimension_numbers = #tpu.dot_dimension_numbers<[1], [0], [0], [1], [0, 0, 1, 1], [], []>} : vector<2x8xf32>, vector<8x24xf32>, vector<2x24xf32> -> vector<2x24xf32>
    %c1200 = arith.constant 1200 : index
    %c0_210 = arith.constant 0 : index
    %732 = vector.load %arg6[%c1200, %c0_210] : memref<1248x128xf32, #tpu.memory_space<vmem>>, vector<1x24xf32>
    %733 = vector.broadcast %732 : vector<1x24xf32> to vector<2x24xf32>
    %734 = arith.addf %731, %733 : vector<2x24xf32>
    %c1208 = arith.constant 1208 : index
    %c0_211 = arith.constant 0 : index
    %735 = vector.load %arg6[%c1208, %c0_211] : memref<1248x128xf32, #tpu.memory_space<vmem>>, vector<24x36xf32>
    %cst_212 = arith.constant dense<0.000000e+00> : vector<2x36xf32>
    %736 = tpu.matmul %734, %735, %cst_212 {dimension_numbers = #tpu.dot_dimension_numbers<[1], [0], [0], [1], [0, 0, 1, 1], [], []>} : vector<2x24xf32>, vector<24x36xf32>, vector<2x36xf32> -> vector<2x36xf32>
    %c1232 = arith.constant 1232 : index
    %c0_213 = arith.constant 0 : index
    %737 = vector.load %arg6[%c1232, %c0_213] : memref<1248x128xf32, #tpu.memory_space<vmem>>, vector<6x36xf32>
    %cst_214 = arith.constant dense<0.000000e+00> : vector<2x36xf32>
    %738 = tpu.matmul %4, %737, %cst_214 {dimension_numbers = #tpu.dot_dimension_numbers<[1], [0], [0], [1], [0, 0, 1, 1], [], []>} : vector<2x6xf32>, vector<6x36xf32>, vector<2x36xf32> -> vector<2x36xf32>
    %739 = arith.addf %736, %738 : vector<2x36xf32>
    %c1240 = arith.constant 1240 : index
    %c0_215 = arith.constant 0 : index
    %740 = vector.load %arg6[%c1240, %c0_215] : memref<1248x128xf32, #tpu.memory_space<vmem>>, vector<1x36xf32>
    %741 = vector.broadcast %740 : vector<1x36xf32> to vector<2x36xf32>
    %742 = arith.addf %739, %741 : vector<2x36xf32>
    %cst_216 = arith.constant 0.000000e+00 : f32
    %743 = vector.broadcast %cst_216 : f32 to vector<2x84xf32>
    %744 = tpu.concatenate %742, %704, %743 in 1 : vector<2x36xf32>, vector<2x8xf32>, vector<2x84xf32> -> vector<2x128xf32>
    %c0_217 = arith.constant 0 : index
    %c0_218 = arith.constant 0 : index
    %745 = vector.load %arg7[%c0_217, %c0_218] : memref<2x128xf32, #tpu.memory_space<vmem>>, vector<2x128xf32>
    tpu.vector_store %arg7[%c0_217, %c0_218], %744 {strides = array<i32>} : memref<2x128xf32, #tpu.memory_space<vmem>>, vector<2x128xf32>,
    return
  }
}

</mosaic_0001>

<bundles_post_ra>
// kernel: fwd.1
= control target key start
LH: loop header
LB: loop body
LE: loop exit
PB: predicated region body
PF: predicated region fallthrough
CT: control target
= control target key end

     0   :  { %12 = vsyncpa [#allocation3], 0  ;;  %s7641_s24 = smov [#allocation2]   ;;  %s8742_s0 = inlined_call_operand.vmem [shape: f32[32,3], index: 0, kind: input, shape index: {}]   ;;  %s8743_s1 = inlined_call_operand.vmem [shape: f32[32,3], index: 1, kind: input, shape index: {}]   ;;  %s8744_s2 = inlined_call_operand.vmem [shape: f32[2,2,11], index: 2, kind: input, shape index: {}]   ;;  %s8745_s3 = inlined_call_operand.vmem [shape: f32[12,2,2], index: 3, kind: input, shape index: {}]   ;;  %s8746_s4 = inlined_call_operand.vmem [shape: f32[2,6], index: 4, kind: input, shape index: {}]   ;;  %s8747_s5 = inlined_call_operand.vmem [shape: f32[2,4], index: 5, kind: input, shape index: {}]   ;;  %s8748_s6 = inlined_call_operand.hbm [shape: f32[1248,128], index: 6, kind: input, shape index: {}]   ;;  %s8749_s7 = inlined_call_operand.vmem [shape: f32[2,128], index: 7, kind: output, shape index: {}]  }
   0x1   :  { %s30_s25 = sshll.u32 %s7641_s24, 4  ;;  %s7617_s28 = scalar_lea.hbm %s8748_s6, 19968  ;;  %s31_s25 = int_to_ptr.vmem [resolvable:$true] %s30_s25 }
   0x2   :  { %p7618_p0 = scmp.ne.s32.totalorder %s8748_s6, %s7617_s28  ;;  %p7621_p1 = scmp.lt.u32.totalorder %s7617_s28, %s8748_s6 }
   0x4   :  { %p7623_p2 = pnand %p7621_p1, %p7618_p0 }
   0x6   :  { %7626 = shalt.err (!%p7623_p2)
}
   0x7   :  { %s7627_s10 = scalar_lea.vmem %s31_s25, 19968  ;;  %p7632_p4 = scmp.lt.s32.totalorder %s31_s25, %s31_s25 }
   0x8   :  { %p7628_p3 = scmp.ne.s32.totalorder %s31_s25, %s7627_s10  ;;  %p7633_p5 = scmp.lt.s32.totalorder %s7627_s10, %s7627_s10 }
   0xa   :  { %p7634_p6 = por %p7633_p5, %p7632_p4 }
   0xc   :  { %p7635_p7 = pnand %p7634_p6, %p7628_p3 }
   0xe   :  { %7638 = shalt.err (!%p7635_p7)
}
   0xf   :  { %s7642_s11 = smov 128   ;;  %s7643_s12 = smov 8  }
  0x10   :  { %36 = dma.hbm_to_vmem [thread:$0]  %s8748_s6, 19968, %s31_s25, [#allocation3], %s7642_s11, %s7642_s11, %s7643_s12  }
  0x11   :  { %7639 = dma.done.wait [#allocation3], 19968  }
  0x12   :  { %7640 = vsyncadd [#allocation3], 4294947328  ;;  %vm140_vm0 = vcmask 1041408   ;;  %v7644_v0 = vmov 0.0   ;;  %v87_v1 = vlaneseq  ;;  %vm7645_vm1 = vmmov 1   ;;  %v290_v14 = vld [vmem:[#allocation2] sm:$0xff] }
  0x13   :  { %7422 = vmatprep.subr.mxu1 %v7644_v0  ;;  %6751 = vmatprep.subr.mxu0 %v7644_v0  ;;  %vm7723_vm2 = vmpackc.low %vm140_vm0, %vm7645_vm1  ;;  %vm8751_vm3 = vmmov 0   ;;  %v7647_v3 = vmov 1983009808   ;;  %v64_v8 = vld [vmem:[#allocation2 + $0x20] sm:$0x3]  ;;  %v7648_v15 = vmov 0.0|0.0  }
  0x14   :  { %6759 = vmatprep.mubr.msk.f32.mxu1 %vm8751_vm3, %v7644_v0  ;;  %v85_v4 = vunpack.c.l.s4 %v7647_v3  ;;  %6753 = vmatprep.mubr.msk.f32.mxu0 %vm8751_vm3, %v7644_v0  ;;  %v7731_v5 = vshrl.u32 %v87_v1, 7  ;;  %v58_v9 = vld [vmem:[%s8745_s3 + $0x10] sm:$0x3]  ;;  %v59_v10 = vld [vmem:[%s8745_s3 + $0x12] sm:$0x3]  ;;  %v291_v17 = vld [vmem:[#allocation2 + $0x8] sm:$0xff] }
  0x15   :  { %7423 = vmatpush3.msk.msra.mxu1 %vm140_vm0, %v64_v8  ;;  %v60_v11 = vld [vmem:[%s8745_s3 + $0x14] sm:$0x3]  ;;  %v61_v12 = vld [vmem:[%s8745_s3 + $0x16] sm:$0x3]  ;;  %v116_v13 = vcombine.low %v58_v9, %v59_v10  ;;  %6752 = vmatpush3.msk.msra.mxu0 %vm140_vm0, %v64_v8  ;;  %v50_v18 = vld [vmem:[%s8745_s3] sm:$0x3]  ;;  %v7766_v26 = vpack.c.bf16 %v291_v17, %v290_v14 }
  0x16   :  { %v86_v6 = vunpack.c.0.s8 %v85_v4  ;;  %7212 = vmatprep.subr.bf16.mxu1 %v7648_v15  ;;  %v117_v16 = vcombine.low %v60_v11, %v61_v12  ;;  %v51_v19 = vld [vmem:[%s8745_s3 + $0x2] sm:$0x3]  ;;  %7218 = vmatprep.subr.bf16.mxu0 %v7648_v15  ;;  %v52_v21 = vld [vmem:[%s8745_s3 + $0x4] sm:$0x3]  ;;  %v53_v22 = vld [vmem:[%s8745_s3 + $0x6] sm:$0x3] }
  0x17   :  { %v82_v23 = vcombine.low %v50_v18, %v51_v19  ;;  %v83_v25 = vcombine.low %v52_v21, %v53_v22  ;;  %vm133_vm4 = vcmask 15360   ;;  %v292_v30 = vld [vmem:[#allocation2 + $0x10] sm:$0xff]  ;;  %v293_v31 = vld [vmem:[#allocation2 + $0x18] sm:$0xff]  ;;  %v7795_v36 = vld [vmem:[#allocation2 + $0x28] ss:$0 sm:$0xff]  ;;  %s7649_s30 = smov 64  }
  0x18   :  { %v7734_v7 = vsub.s32 %v86_v6, %v7731_v5  ;;  %v7772_v33 = vpack.c.bf16 %v293_v31, %v292_v30  ;;  %s7650_s8 = smov 32   ;;  %v54_v54 = vld [vmem:[%s8745_s3 + $0x8] sm:$0x3]  ;;  %v55_v55 = vld [vmem:[%s8745_s3 + $0xa] sm:$0x3]  ;;  %vm294_vm5 = vcmask 261120  }
  0x19   :  { %v56_v56 = vld [vmem:[%s8745_s3 + $0xc] sm:$0x3]  ;;  %v57_v57 = vld [vmem:[%s8745_s3 + $0xe] sm:$0x3]  ;;  %v99_v58 = vcombine.low %v54_v54, %v55_v55  ;;  %vm1883_vm6 = vcmask 1042432   ;;  %s7651_s3 = smov 96  }
  0x1a   :  { %v124_v20 = vrot.slane %v116_v13, %v7734_v7  ;;  %v131_v24 = vrot.slane %v117_v16, %v7734_v7  ;;  %v90_v27 = vrot.slane %v82_v23, %v7734_v7  ;;  %v97_v29 = vrot.slane %v83_v25, %v7734_v7  ;;  %s7652_s16 = smov 127   ;;  %v5507_v2 = vld [vmem:[#allocation2 + $0x458] sm:$0xf]  ;;  %s7658_s17 = smov 12  }
  0x1b   :  { %v100_v59 = vcombine.low %v56_v56, %v57_v57  ;;  %v107_v60 = vrot.slane %v99_v58, %v7734_v7  ;;  %vm1592_vm7 = vcmask 523264   ;;  %vm8750_vm8 = vcmask 785408   ;;  %s7659_s18 = smov 24   ;;  %s7660_s19 = smov 36  }
  0x1c   :  { %v132_v28 = vcombine.low %v124_v20, %v131_v24  ;;  %v98_v32 = vcombine.low %v90_v27, %v97_v29  ;;  %vm1870_vm9 = vcmask 23552   ;;  %vm2062_vm10 = vcmp.lt.s32.totalorder %v7731_v5, 1  ;;  %s7661_s20 = smov 48   ;;  %s7662_s21 = smov 60  }
  0x1d   :  { %v114_v61 = vrot.slane %v100_v59, %v7734_v7  ;;  %vm2098_vm13 = vcmask 64512   ;;  %vm2600_vm14 = vcmp.lt.s32.totalorder %v7731_v5, 2  ;;  %s7663_s22 = smov 72   ;;  %s7664_s23 = smov 84  }
  0x1e   :  { %6760 = vmatmul.mubr.msk.f32.vlgmr.msra.gmra.mrb[0].mxu1 %vm133_vm4, %v132_v28  ;;  %6754 = vmatmul.mubr.msk.f32.vlgmr.msra.gmra.mrb[0].mxu0 %vm133_vm4, %v98_v32  ;;  %s7665_s24 = smov 4  }
  0x1f   :  { %7214 = vmatpush3.bf16.msra.mxu1 %v7766_v26  ;;  %6770 = vmatprep.mubr.msk.f32.mxu1 %vm8751_vm3, %v7644_v0  ;;  %v115_v62 = vcombine.low %v107_v60, %v114_v61 }
  0x20   :  { %7215 = vmatprep.subr.bf16.mxu1 %v7648_v15  ;;  %7220 = vmatpush3.bf16.msra.mxu0 %v7766_v26 }
  0x21   :  { %6756 = vmatprep.mubr.msk.f32.mxu0 %vm8751_vm3, %v7644_v0  ;;  %7221 = vmatprep.subr.bf16.mxu0 %v7648_v15 }
  0x22   :  { %6757 = vmatmul.mubr.msk.f32.gmra.mrb[2].mxu0 %vm133_vm4, %v115_v62  ;;  %vm3082_vm4 = vcmask 1043456  }
  0x23   :  { %7217 = vmatpush3.bf16.msra.mxu1 %v7772_v33  ;;  %6781 = vmatprep.mubr.msk.f32.mxu0 %vm8751_vm3, %v7644_v0 }
  0x24   :  { %7224 = vmatprep.subr.bf16.mxu1 %v7648_v15  ;;  %7223 = vmatpush3.bf16.msra.mxu0 %v7772_v33 }
  0x25   :  { %7230 = vmatprep.subr.bf16.mxu0 %v7648_v15 }
  0x26   :  { %6771 = vmatmul.mubr.f32.vlgmr.msra.gmra.mrb[2].mxu1 %v7644_v0 }
  0x27   :  { %7226 = vmatpush3.bf16.msra.mxu1 %v7766_v26  ;;  %6792 = vmatprep.mubr.msk.f32.mxu1 %vm8751_vm3, %v7644_v0 }
  0x28   :  { %7227 = vmatprep.subr.bf16.mxu1 %v7648_v15 }
  0x2b   :  { %7229 = vmatpush3.bf16.msra.mxu1 %v7772_v33 }
  0x2c   :  { %7236 = vmatprep.subr.bf16.mxu1 %v7648_v15 }
  0xf1   :  { %v7793_v34 = vpop.f32.mrb[0].mxu1  ;;  %v210_v37 = vpop.f32.mrb[0].mxu0 }
  0xf2   :  { %v6761_v35 = vpop.f32.mrb[1].mxu1  ;;  %v7798_v38 = vadd.f32 %v7795_v36, %v210_v37  ;;  %v6755_v39 = vpop.f32.mrb[1].mxu0 }
  0xf4   :  { %v234_v40 = vrot.slane %v7798_v38, %v7734_v7  ;;  %v227_v31 = vcombine.high %v7798_v38, %v7798_v38 }
  0xf5   :  { %v7824_v6 = vpop.f32.mrb[2].mxu0 }
  0xf6   :  { %v6758_v8 = vpop.f32.mrb[3].mxu0  ;;  %v242_v10 = vcombine.high %v234_v40, %v234_v40  ;;  %v241_v32 = vrot.slane %v227_v31, %v7734_v7 }
  0xf8   :  { %v243_v54 = vcombine.high %v241_v32, %v241_v32 }
  0xf9   :  { %v364_v41 = vpop.f32.mrb[2].mxu1 }
  0xfa   :  { %v368_v42 = vadd.f32 %v364_v41, %v234_v40  ;;  %v6772_v43 = vpop.f32.mrb[3].mxu1 }
  0xfc   :  { %7515 = vtanh.f32 %v368_v42  ;;  %v6283_v45 = vmul.f32 -1.442695, %v368_v42 }
  0xfe   :  { %7517 = vpow2.f32 %v6283_v45 }
 0x106   :  { %v7516_v44 = vpop.eup %7515 }
 0x107   :  { %378 = vrot.lane.b32.xlu0 %v7516_v44, %s7649_s30 }
 0x108   :  { %v7518_v46 = vpop.eup %7517 }
 0x109   :  { %v372_v47 = vadd.f32 1.0, %v7518_v46 }
 0x10b   :  { %7519 = vrcp.f32 %v372_v47 }
 0x115   :  { %v7520_v48 = vpop.eup %7519 }
 0x116   :  { %v376_v51 = vmul.f32 0.0, %v7520_v48 }
 0x179   :  { %v379_v49 = vpop.permute.xlu0 %378 }
 0x17a   :  { %v381_v50 = vmul.f32 %v7520_v48, %v379_v49 }
 0x17c   :  { %383 = vrot.lane.b32.xlu0 %v381_v50, %s7650_s8 }
 0x1ee   :  { %v384_v52 = vpop.permute.xlu0 %383 }
 0x1ef   :  { %v386_v53 = vadd.f32 %v384_v52, %v376_v51 }
 0x1f1   :  { %7521 = vtanh.f32 %v386_v53 }
 0x1fb   :  { %v7522_v63 = vpop.eup %7521 }
 0x1fc   :  { %389 = vrot.lane.b32.xlu1 %v7522_v63, %s7649_s30 }
 0x26e   :  { %v390_v1 = vpop.permute.xlu1 %389 }
 0x26f   :  { %v392_v3 = vmul.f32 %v7520_v48, %v390_v1 }
 0x271   :  { %v400_v4 = vrot.slane %v392_v3, %v7734_v7 }
 0x273   :  { %401 = vrot.lane.b32.xlu1 %v400_v4, %s7650_s8 }
 0x2e5   :  { %v7826_v9 = vpop.permute.xlu1 %401 }
 0x2e6   :  { %6782 = vmatmul.mubr.msk.f32.vlgmr.msra.gmra.mrb[4].mxu0 %vm294_vm5, %v7826_v9 }
 0x2e7   :  { %7232 = vmatpush3.bf16.msra.mxu0 %v7766_v26  ;;  %6803 = vmatprep.mubr.msk.f32.mxu0 %vm8751_vm3, %v7644_v0 }
 0x2e8   :  { %7233 = vmatprep.subr.bf16.mxu0 %v7648_v15 }
 0x2eb   :  { %7235 = vmatpush3.bf16.msra.mxu0 %v7772_v33 }
 0x2ec   :  { %7242 = vmatprep.subr.bf16.mxu0 %v7648_v15 }
 0x3b9   :  { %v471_v11 = vpop.f32.mrb[4].mxu0 }
 0x3ba   :  { %v475_v12 = vadd.f32 %v471_v11, %v242_v10  ;;  %v6783_v13 = vpop.f32.mrb[5].mxu0 }
 0x3bc   :  { %7523 = vtanh.f32 %v475_v12  ;;  %v6285_v16 = vmul.f32 -1.442695, %v475_v12 }
 0x3be   :  { %7525 = vpow2.f32 %v6285_v16  ;;  %v7886_v16 = vadd.f32 %v7795_v36, %v7824_v6 }
 0x3c6   :  { %v7524_v14 = vpop.eup %7523 }
 0x3c7   :  { %485 = vrot.lane.b32.xlu0 %v7524_v14, %s7649_s30 }
 0x3c8   :  { %v7526_v17 = vpop.eup %7525 }
 0x3c9   :  { %v479_v18 = vadd.f32 1.0, %v7526_v17  ;;  %v251_v17 = vrot.slane %v7886_v16, %v7734_v7 }
 0x3cb   :  { %7527 = vrcp.f32 %v479_v18 }
 0x3d5   :  { %v7528_v19 = vpop.eup %7527 }
 0x3d6   :  { %v483_v22 = vmul.f32 %v7528_v19, %v386_v53 }
 0x439   :  { %v486_v20 = vpop.permute.xlu0 %485 }
 0x43a   :  { %v488_v21 = vmul.f32 %v7528_v19, %v486_v20 }
 0x43c   :  { %490 = vrot.lane.b32.xlu1 %v488_v21, %s7650_s8 }
 0x4ae   :  { %v491_v23 = vpop.permute.xlu1 %490 }
 0x4af   :  { %v493_v24 = vadd.f32 %v491_v23, %v483_v22 }
 0x4b1   :  { %7529 = vtanh.f32 %v493_v24 }
 0x4bb   :  { %v7530_v25 = vpop.eup %7529 }
 0x4bc   :  { %496 = vrot.lane.b32.xlu0 %v7530_v25, %s7649_s30 }
 0x52e   :  { %v497_v27 = vpop.permute.xlu0 %496 }
 0x52f   :  { %v499_v28 = vmul.f32 %v7528_v19, %v497_v27 }
 0x531   :  { %v7840_v29 = vrot.slane %v499_v28, %v7734_v7 }
 0x533   :  { %508 = vrot.lane.b32.xlu1 %v7840_v29, %s7650_s8 }
 0x5a5   :  { %v509_v30 = vpop.permute.xlu1 %508 }
 0x5a6   :  { %6793 = vmatmul.mubr.msk.f32.vlgmr.msra.gmra.mrb[4].mxu1 %vm294_vm5, %v509_v30 }
 0x5a7   :  { %7238 = vmatpush3.bf16.msra.mxu1 %v7766_v26  ;;  %6814 = vmatprep.mubr.msk.f32.mxu1 %vm8751_vm3, %v7644_v0 }
 0x5a8   :  { %7239 = vmatprep.subr.bf16.mxu1 %v7648_v15 }
 0x5ab   :  { %7241 = vmatpush3.bf16.msra.mxu1 %v7772_v33 }
 0x5ac   :  { %7248 = vmatprep.subr.bf16.mxu1 %v7648_v15 }
 0x679   :  { %v578_v35 = vpop.f32.mrb[4].mxu1 }
 0x67a   :  { %v582_v37 = vadd.f32 %v578_v35, %v241_v32  ;;  %v6794_v39 = vpop.f32.mrb[5].mxu1 }
 0x67c   :  { %7531 = vtanh.f32 %v582_v37  ;;  %v6287_v41 = vmul.f32 -1.442695, %v582_v37 }
 0x67e   :  { %7533 = vpow2.f32 %v6287_v41  ;;  %v259_v41 = vcombine.high %v251_v17, %v251_v17 }
 0x686   :  { %v7532_v40 = vpop.eup %7531 }
 0x687   :  { %592 = vrot.lane.b32.xlu0 %v7532_v40, %s7649_s30 }
 0x688   :  { %v7534_v42 = vpop.eup %7533 }
 0x689   :  { %v586_v43 = vadd.f32 1.0, %v7534_v42 }
 0x68b   :  { %7535 = vrcp.f32 %v586_v43 }
 0x695   :  { %v7536_v44 = vpop.eup %7535 }
 0x696   :  { %v590_v38 = vmul.f32 %v7536_v44, %v493_v24 }
 0x6f9   :  { %v593_v45 = vpop.permute.xlu0 %592 }
 0x6fa   :  { %v595_v46 = vmul.f32 %v7536_v44, %v593_v45 }
 0x6fc   :  { %597 = vrot.lane.b32.xlu1 %v595_v46, %s7650_s8 }
 0x76e   :  { %v598_v47 = vpop.permute.xlu1 %597 }
 0x76f   :  { %v600_v48 = vadd.f32 %v598_v47, %v590_v38 }
 0x771   :  { %7537 = vtanh.f32 %v600_v48 }
 0x77b   :  { %v7538_v49 = vpop.eup %7537 }
 0x77c   :  { %603 = vrot.lane.b32.xlu0 %v7538_v49, %s7649_s30 }
 0x7ee   :  { %v604_v50 = vpop.permute.xlu0 %603 }
 0x7ef   :  { %v606_v51 = vmul.f32 %v7536_v44, %v604_v50 }
 0x7f1   :  { %v7858_v52 = vrot.slane %v606_v51, %v7734_v7 }
 0x7f3   :  { %615 = vrot.lane.b32.xlu1 %v7858_v52, %s7650_s8 }
 0x865   :  { %v616_v53 = vpop.permute.xlu1 %615 }
 0x866   :  { %6804 = vmatmul.mubr.msk.f32.vlgmr.msra.gmra.mrb[6].mxu0 %vm294_vm5, %v616_v53 }
 0x867   :  { %7244 = vmatpush3.bf16.msra.mxu0 %v7766_v26  ;;  %6825 = vmatprep.mubr.msk.f32.mxu0 %vm8751_vm3, %v7644_v0 }
 0x868   :  { %7245 = vmatprep.subr.bf16.mxu0 %v7648_v15 }
 0x86b   :  { %7247 = vmatpush3.bf16.msra.mxu0 %v7772_v33 }
 0x86c   :  { %7254 = vmatprep.subr.bf16.mxu0 %v7648_v15 }
 0x939   :  { %v685_v55 = vpop.f32.mrb[6].mxu0 }
 0x93a   :  { %v689_v56 = vadd.f32 %v685_v55, %v243_v54  ;;  %v6805_v57 = vpop.f32.mrb[7].mxu0 }
 0x93c   :  { %7539 = vtanh.f32 %v689_v56  ;;  %v6289_v59 = vmul.f32 -1.442695, %v689_v56 }
 0x93e   :  { %7541 = vpow2.f32 %v6289_v59 }
 0x946   :  { %v7540_v58 = vpop.eup %7539 }
 0x947   :  { %699 = vrot.lane.b32.xlu0 %v7540_v58, %s7649_s30 }
 0x948   :  { %v7542_v60 = vpop.eup %7541 }
 0x949   :  { %v693_v61 = vadd.f32 1.0, %v7542_v60  ;;  %v244_v60 = vcombine.high %v7886_v16, %v7886_v16 }
 0x94b   :  { %7543 = vrcp.f32 %v693_v61  ;;  %v258_v61 = vrot.slane %v244_v60, %v7734_v7 }
 0x955   :  { %v7544_v62 = vpop.eup %7543 }
 0x956   :  { %v697_v3 = vmul.f32 %v7544_v62, %v600_v48 }
 0x9b9   :  { %v700_v63 = vpop.permute.xlu0 %699 }
 0x9ba   :  { %v702_v1 = vmul.f32 %v7544_v62, %v700_v63 }
 0x9bc   :  { %704 = vrot.lane.b32.xlu1 %v702_v1, %s7650_s8 }
 0xa2e   :  { %v705_v4 = vpop.permute.xlu1 %704 }
 0xa2f   :  { %v707_v8 = vadd.f32 %v705_v4, %v697_v3 }
 0xa31   :  { %7545 = vtanh.f32 %v707_v8 }
 0xa3b   :  { %v7546_v10 = vpop.eup %7545 }
 0xa3c   :  { %710 = vrot.lane.b32.xlu0 %v7546_v10, %s7649_s30 }
 0xaae   :  { %v711_v11 = vpop.permute.xlu0 %710 }
 0xaaf   :  { %v7872_v12 = vmul.f32 %v7544_v62, %v711_v11 }
 0xab1   :  { %v721_v13 = vrot.slane %v7872_v12, %v7734_v7 }
 0xab3   :  { %722 = vrot.lane.b32.xlu1 %v721_v13, %s7650_s8 }
 0xb25   :  { %v723_v14 = vpop.permute.xlu1 %722 }
 0xb26   :  { %6815 = vmatmul.mubr.msk.f32.vlgmr.msra.gmra.mrb[6].mxu1 %vm294_vm5, %v723_v14 }
 0xb27   :  { %7250 = vmatpush3.bf16.msra.mxu1 %v7766_v26  ;;  %6836 = vmatprep.mubr.msk.f32.mxu1 %vm8751_vm3, %v7644_v0 }
 0xb28   :  { %7251 = vmatprep.subr.bf16.mxu1 %v7648_v15 }
 0xb2b   :  { %7253 = vmatpush3.bf16.msra.mxu1 %v7772_v33 }
 0xb2c   :  { %7260 = vmatprep.subr.bf16.mxu1 %v7648_v15 }
 0xbf9   :  { %v792_v18 = vpop.f32.mrb[6].mxu1 }
 0xbfa   :  { %v796_v19 = vadd.f32 %v792_v18, %v251_v17  ;;  %v6816_v20 = vpop.f32.mrb[7].mxu1 }
 0xbfc   :  { %7547 = vtanh.f32 %v796_v19  ;;  %v6291_v22 = vmul.f32 -1.442695, %v796_v19 }
 0xbfe   :  { %7549 = vpow2.f32 %v6291_v22 }
 0xc06   :  { %v7548_v21 = vpop.eup %7547 }
 0xc07   :  { %806 = vrot.lane.b32.xlu0 %v7548_v21, %s7649_s30 }
 0xc08   :  { %v7550_v23 = vpop.eup %7549 }
 0xc09   :  { %v800_v24 = vadd.f32 1.0, %v7550_v23 }
 0xc0b   :  { %7551 = vrcp.f32 %v800_v24  ;;  %v260_v24 = vcombine.high %v258_v61, %v258_v61 }
 0xc15   :  { %v7552_v25 = vpop.eup %7551 }
 0xc16   :  { %v804_v6 = vmul.f32 %v7552_v25, %v707_v8 }
 0xc79   :  { %v807_v27 = vpop.permute.xlu0 %806 }
 0xc7a   :  { %v809_v28 = vmul.f32 %v7552_v25, %v807_v27 }
 0xc7c   :  { %811 = vrot.lane.b32.xlu1 %v809_v28, %s7650_s8 }
 0xcee   :  { %v812_v30 = vpop.permute.xlu1 %811 }
 0xcef   :  { %v814_v31 = vadd.f32 %v812_v30, %v804_v6 }
 0xcf1   :  { %7553 = vtanh.f32 %v814_v31 }
 0xcfb   :  { %v7554_v32 = vpop.eup %7553 }
 0xcfc   :  { %817 = vrot.lane.b32.xlu0 %v7554_v32, %s7649_s30 }
 0xd6e   :  { %v818_v35 = vpop.permute.xlu0 %817 }
 0xd6f   :  { %v820_v37 = vmul.f32 %v7552_v25, %v818_v35 }
 0xd71   :  { %v828_v39 = vrot.slane %v820_v37, %v7734_v7 }
 0xd73   :  { %829 = vrot.lane.b32.xlu1 %v828_v39, %s7650_s8 }
 0xde5   :  { %v7895_v40 = vpop.permute.xlu1 %829 }
 0xde6   :  { %6826 = vmatmul.mubr.msk.f32.vlgmr.msra.gmra.mrb[8].mxu0 %vm294_vm5, %v7895_v40 }
 0xde7   :  { %7256 = vmatpush3.bf16.msra.mxu0 %v7766_v26  ;;  %6847 = vmatprep.mubr.msk.f32.mxu0 %vm8751_vm3, %v7644_v0 }
 0xde8   :  { %7257 = vmatprep.subr.bf16.mxu0 %v7648_v15 }
 0xdeb   :  { %7259 = vmatpush3.bf16.msra.mxu0 %v7772_v33 }
 0xdec   :  { %7266 = vmatprep.subr.bf16.mxu0 %v7648_v15 }
 0xeb9   :  { %v899_v42 = vpop.f32.mrb[8].mxu0 }
 0xeba   :  { %v903_v43 = vadd.f32 %v899_v42, %v259_v41  ;;  %v6827_v44 = vpop.f32.mrb[9].mxu0 }
 0xebc   :  { %7555 = vtanh.f32 %v903_v43  ;;  %v6293_v46 = vmul.f32 -1.442695, %v903_v43 }
 0xebe   :  { %7557 = vpow2.f32 %v6293_v46 }
 0xec6   :  { %v7556_v45 = vpop.eup %7555 }
 0xec7   :  { %913 = vrot.lane.b32.xlu0 %v7556_v45, %s7649_s30 }
 0xec8   :  { %v7558_v38 = vpop.eup %7557 }
 0xec9   :  { %v907_v47 = vadd.f32 1.0, %v7558_v38 }
 0xecb   :  { %7559 = vrcp.f32 %v907_v47 }
 0xed5   :  { %v7560_v48 = vpop.eup %7559 }
 0xed6   :  { %v911_v51 = vmul.f32 %v7560_v48, %v814_v31 }
 0xf39   :  { %v914_v49 = vpop.permute.xlu0 %913 }
 0xf3a   :  { %v916_v50 = vmul.f32 %v7560_v48, %v914_v49 }
 0xf3c   :  { %918 = vrot.lane.b32.xlu1 %v916_v50, %s7650_s8 }
 0xfae   :  { %v919_v53 = vpop.permute.xlu1 %918 }
 0xfaf   :  { %v921_v54 = vadd.f32 %v919_v53, %v911_v51 }
 0xfb1   :  { %7561 = vtanh.f32 %v921_v54 }
 0xfbb   :  { %v7562_v55 = vpop.eup %7561 }
 0xfbc   :  { %924 = vrot.lane.b32.xlu0 %v7562_v55, %s7649_s30 }
0x102e   :  { %v925_v56 = vpop.permute.xlu0 %924 }
0x102f   :  { %v927_v57 = vmul.f32 %v7560_v48, %v925_v56  ;;  %v7954_v48 = vadd.f32 %v7795_v36, %v7793_v34 }
0x1031   :  { %v7909_v58 = vrot.slane %v927_v57, %v7734_v7  ;;  %v268_v49 = vrot.slane %v7954_v48, %v7734_v7 }
0x1033   :  { %936 = vrot.lane.b32.xlu1 %v7909_v58, %s7650_s8 }
0x10a5   :  { %v937_v59 = vpop.permute.xlu1 %936 }
0x10a6   :  { %6837 = vmatmul.mubr.msk.f32.vlgmr.msra.gmra.mrb[8].mxu1 %vm294_vm5, %v937_v59 }
0x10a7   :  { %7262 = vmatpush3.bf16.msra.mxu1 %v7766_v26  ;;  %6858 = vmatprep.mubr.msk.f32.mxu1 %vm8751_vm3, %v7644_v0 }
0x10a8   :  { %7263 = vmatprep.subr.bf16.mxu1 %v7648_v15 }
0x10ab   :  { %7265 = vmatpush3.bf16.msra.mxu1 %v7772_v33 }
0x10ac   :  { %7272 = vmatprep.subr.bf16.mxu1 %v7648_v15 }
0x1179   :  { %v1006_v62 = vpop.f32.mrb[8].mxu1 }
0x117a   :  { %v1010_v63 = vadd.f32 %v1006_v62, %v258_v61  ;;  %v6838_v1 = vpop.f32.mrb[9].mxu1 }
0x117c   :  { %7563 = vtanh.f32 %v1010_v63  ;;  %v6295_v4 = vmul.f32 -1.442695, %v1010_v63 }
0x117e   :  { %7565 = vpow2.f32 %v6295_v4 }
0x1186   :  { %v7564_v3 = vpop.eup %7563 }
0x1187   :  { %1020 = vrot.lane.b32.xlu0 %v7564_v3, %s7649_s30 }
0x1188   :  { %v7566_v8 = vpop.eup %7565 }
0x1189   :  { %v1014_v10 = vadd.f32 1.0, %v7566_v8 }
0x118b   :  { %7567 = vrcp.f32 %v1014_v10  ;;  %v276_v10 = vcombine.high %v268_v49, %v268_v49 }
0x1195   :  { %v7568_v11 = vpop.eup %7567 }
0x1196   :  { %v1018_v16 = vmul.f32 %v7568_v11, %v921_v54 }
0x11f9   :  { %v1021_v13 = vpop.permute.xlu0 %1020 }
0x11fa   :  { %v1023_v14 = vmul.f32 %v7568_v11, %v1021_v13 }
0x11fc   :  { %1025 = vrot.lane.b32.xlu1 %v1023_v14, %s7650_s8 }
0x126e   :  { %v1026_v17 = vpop.permute.xlu1 %1025 }
0x126f   :  { %v1028_v18 = vadd.f32 %v1026_v17, %v1018_v16 }
0x1271   :  { %7569 = vtanh.f32 %v1028_v18 }
0x127b   :  { %v7570_v19 = vpop.eup %7569 }
0x127c   :  { %1031 = vrot.lane.b32.xlu0 %v7570_v19, %s7649_s30 }
0x12ee   :  { %v1032_v20 = vpop.permute.xlu0 %1031 }
0x12ef   :  { %v1034_v21 = vmul.f32 %v7568_v11, %v1032_v20 }
0x12f1   :  { %v7927_v22 = vrot.slane %v1034_v21, %v7734_v7 }
0x12f3   :  { %1043 = vrot.lane.b32.xlu1 %v7927_v22, %s7650_s8 }
0x1365   :  { %v1044_v23 = vpop.permute.xlu1 %1043 }
0x1366   :  { %6848 = vmatmul.mubr.msk.f32.vlgmr.msra.gmra.mrb[10].mxu0 %vm294_vm5, %v1044_v23 }
0x1367   :  { %7268 = vmatpush3.bf16.msra.mxu0 %v7766_v26  ;;  %6869 = vmatprep.mubr.msk.f32.mxu0 %vm8751_vm3, %v7644_v0 }
0x1368   :  { %7269 = vmatprep.subr.bf16.mxu0 %v7648_v15 }
0x136b   :  { %7271 = vmatpush3.bf16.msra.mxu0 %v7772_v33 }
0x136c   :  { %7278 = vmatprep.subr.bf16.mxu0 %v7648_v15 }
0x1439   :  { %v1113_v25 = vpop.f32.mrb[10].mxu0 }
0x143a   :  { %v1117_v27 = vadd.f32 %v1113_v25, %v260_v24  ;;  %v6849_v28 = vpop.f32.mrb[11].mxu0 }
0x143c   :  { %7571 = vtanh.f32 %v1117_v27  ;;  %v6297_v30 = vmul.f32 -1.442695, %v1117_v27 }
0x143e   :  { %7573 = vpow2.f32 %v6297_v30 }
0x1446   :  { %v7572_v6 = vpop.eup %7571 }
0x1447   :  { %1127 = vrot.lane.b32.xlu0 %v7572_v6, %s7649_s30 }
0x1448   :  { %v7574_v31 = vpop.eup %7573 }
0x1449   :  { %v1121_v32 = vadd.f32 1.0, %v7574_v31  ;;  %v261_v31 = vcombine.high %v7954_v48, %v7954_v48 }
0x144b   :  { %7575 = vrcp.f32 %v1121_v32  ;;  %v275_v32 = vrot.slane %v261_v31, %v7734_v7  ;;  %v1622_v31 = vld [vmem:[#allocation2 + $0xd0] sm:$0xff] }
0x1455   :  { %v7576_v35 = vpop.eup %7575 }
0x1456   :  { %v1125_v41 = vmul.f32 %v7576_v35, %v1028_v18 }
0x14b9   :  { %v1128_v37 = vpop.permute.xlu0 %1127 }
0x14ba   :  { %v1130_v39 = vmul.f32 %v7576_v35, %v1128_v37 }
0x14bc   :  { %1132 = vrot.lane.b32.xlu1 %v1130_v39, %s7650_s8 }
0x152e   :  { %v1133_v42 = vpop.permute.xlu1 %1132 }
0x152f   :  { %v1135_v43 = vadd.f32 %v1133_v42, %v1125_v41 }
0x1531   :  { %7577 = vtanh.f32 %v1135_v43 }
0x153b   :  { %v7578_v44 = vpop.eup %7577 }
0x153c   :  { %1138 = vrot.lane.b32.xlu0 %v7578_v44, %s7649_s30 }
0x15ae   :  { %v1139_v45 = vpop.permute.xlu0 %1138 }
0x15af   :  { %v7941_v46 = vmul.f32 %v7576_v35, %v1139_v45 }
0x15b1   :  { %v1149_v38 = vrot.slane %v7941_v46, %v7734_v7 }
0x15b3   :  { %1150 = vrot.lane.b32.xlu1 %v1149_v38, %s7650_s8 }
0x1625   :  { %v1151_v47 = vpop.permute.xlu1 %1150 }
0x1626   :  { %6859 = vmatmul.mubr.msk.f32.vlgmr.msra.gmra.mrb[10].mxu1 %vm294_vm5, %v1151_v47 }
0x1627   :  { %7274 = vmatpush3.bf16.msra.mxu1 %v7766_v26  ;;  %6880 = vmatprep.mubr.msk.f32.mxu1 %vm8751_vm3, %v7644_v0 }
0x1628   :  { %7275 = vmatprep.subr.bf16.mxu1 %v7648_v15 }
0x162b   :  { %7277 = vmatpush3.bf16.msra.mxu1 %v7772_v33 }
0x16f9   :  { %v1220_v50 = vpop.f32.mrb[10].mxu1 }
0x16fa   :  { %v1224_v51 = vadd.f32 %v1220_v50, %v268_v49  ;;  %v6860_v53 = vpop.f32.mrb[11].mxu1 }
0x16fc   :  { %7579 = vtanh.f32 %v1224_v51  ;;  %v6299_v55 = vmul.f32 -1.442695, %v1224_v51 }
0x16fe   :  { %7581 = vpow2.f32 %v6299_v55 }
0x1706   :  { %v7580_v54 = vpop.eup %7579 }
0x1707   :  { %1234 = vrot.lane.b32.xlu0 %v7580_v54, %s7649_s30 }
0x1708   :  { %v7582_v56 = vpop.eup %7581 }
0x1709   :  { %v1228_v57 = vadd.f32 1.0, %v7582_v56 }
0x170b   :  { %7583 = vrcp.f32 %v1228_v57  ;;  %v277_v57 = vcombine.high %v275_v32, %v275_v32 }
0x1715   :  { %v7584_v59 = vpop.eup %7583 }
0x1716   :  { %v1232_v34 = vmul.f32 %v7584_v59, %v1135_v43 }
0x1779   :  { %v1235_v60 = vpop.permute.xlu0 %1234 }
0x177a   :  { %v1237_v61 = vmul.f32 %v7584_v59, %v1235_v60 }
0x177c   :  { %1239 = vrot.lane.b32.xlu1 %v1237_v61, %s7650_s8 }
0x17ee   :  { %v1240_v36 = vpop.permute.xlu1 %1239 }
0x17ef   :  { %v1242_v62 = vadd.f32 %v1240_v36, %v1232_v34 }
0x17f1   :  { %7585 = vtanh.f32 %v1242_v62 }
0x17fb   :  { %v7586_v63 = vpop.eup %7585 }
0x17fc   :  { %1245 = vrot.lane.b32.xlu0 %v7586_v63, %s7649_s30 }
0x186e   :  { %v1246_v1 = vpop.permute.xlu0 %1245 }
0x186f   :  { %v1248_v3 = vmul.f32 %v7584_v59, %v1246_v1 }
0x1871   :  { %v1256_v4 = vrot.slane %v1248_v3, %v7734_v7 }
0x1873   :  { %1257 = vrot.lane.b32.xlu1 %v1256_v4, %s7650_s8 }
0x18e5   :  { %v7963_v8 = vpop.permute.xlu1 %1257 }
0x18e6   :  { %6870 = vmatmul.mubr.msk.f32.vlgmr.msra.gmra.mrb[12].mxu0 %vm294_vm5, %v7963_v8 }
0x18e7   :  { %7280 = vmatpush3.bf16.msra.mxu0 %v7766_v26  ;;  %6891 = vmatprep.mubr.msk.f32.mxu0 %vm8751_vm3, %v7644_v0 }
0x18e8   :  { %7281 = vmatprep.subr.bf16.mxu0 %v7648_v15 }
0x18eb   :  { %7283 = vmatpush3.bf16.msra.mxu0 %v7772_v33 }
0x18ec   :  { %7316 = vmatprep.subr.bf16.mxu0 %v7648_v15 }
0x19b9   :  { %v1327_v11 = vpop.f32.mrb[12].mxu0 }
0x19ba   :  { %v1331_v13 = vadd.f32 %v1327_v11, %v276_v10  ;;  %v6871_v14 = vpop.f32.mrb[13].mxu0  ;;  %v7460_v10 = vpack.i.bf16 %v7840_v29, %v7909_v58  ;;  %v1634_v11 = vld [vmem:[#allocation2 + $0x130] sm:$0xff]  ;;  %v1639_v29 = vld [vmem:[#allocation2 + $0x158] sm:$0xff] }
0x19bb   :  { %v1636_v14 = vld [vmem:[#allocation2 + $0x140] sm:$0xff] }
0x19bc   :  { %7587 = vtanh.f32 %v1331_v13  ;;  %v6301_v17 = vmul.f32 -1.442695, %v1331_v13  ;;  %v1635_v13 = vld [vmem:[#allocation2 + $0x138] sm:$0xff] }
0x19be   :  { %7589 = vpow2.f32 %v6301_v17  ;;  %v1637_v17 = vld [vmem:[#allocation2 + $0x148] sm:$0xff] }
0x19c6   :  { %v7588_v16 = vpop.eup %7587 }
0x19c7   :  { %1341 = vrot.lane.b32.xlu0 %v7588_v16, %s7649_s30  ;;  %v7317_v16 = vpack.c.bf16 %v1635_v13, %v1634_v11  ;;  %v1647_v11 = vld [vmem:[#allocation2 + $0x198] sm:$0xff] }
0x19c8   :  { %v7590_v26 = vpop.eup %7589 }
0x19c9   :  { %v1335_v18 = vadd.f32 1.0, %v7590_v26  ;;  %v1618_v26 = vld [vmem:[#allocation2 + $0xb0] sm:$0xff] }
0x19cb   :  { %7591 = vrcp.f32 %v1335_v18  ;;  %v1619_v18 = vld [vmem:[#allocation2 + $0xb8] sm:$0xff] }
0x19d5   :  { %v7592_v19 = vpop.eup %7591 }
0x19d6   :  { %v1339_v33 = vmul.f32 %v7592_v19, %v1242_v62 }
0x1a39   :  { %v1342_v20 = vpop.permute.xlu0 %1341 }
0x1a3a   :  { %v1344_v21 = vmul.f32 %v7592_v19, %v1342_v20  ;;  %v1602_v20 = vld [vmem:[#allocation2 + $0x30] sm:$0xff] }
0x1a3c   :  { %1346 = vrot.lane.b32.xlu1 %v1344_v21, %s7650_s8  ;;  %v1603_v21 = vld [vmem:[#allocation2 + $0x38] sm:$0xff] }
0x1aae   :  { %v1347_v23 = vpop.permute.xlu1 %1346 }
0x1aaf   :  { %v1349_v24 = vadd.f32 %v1347_v23, %v1339_v33  ;;  %v7320_v33 = vpack.c.bf16 %v1637_v17, %v1636_v14  ;;  %v7286_v23 = vpack.c.bf16 %v1603_v21, %v1602_v20  ;;  %v1629_v17 = vld [vmem:[#allocation2 + $0x108] sm:$0xff] }
0x1ab0   :  { %v1613_v20 = vld [vmem:[#allocation2 + $0x88] sm:$0xff] }
0x1ab1   :  { %7593 = vtanh.f32 %v1349_v24 }
0x1abb   :  { %v7594_v25 = vpop.eup %7593 }
0x1abc   :  { %1352 = vrot.lane.b32.xlu0 %v7594_v25, %s7649_s30  ;;  %v1620_v25 = vld [vmem:[#allocation2 + $0xc0] sm:$0xff] }
0x1b2e   :  { %v1353_v27 = vpop.permute.xlu0 %1352 }
0x1b2f   :  { %v1355_v28 = vmul.f32 %v7592_v19, %v1353_v27  ;;  %v7284_v19 = vpack.c.bf16 %v1619_v18, %v1618_v26  ;;  %v1621_v27 = vld [vmem:[#allocation2 + $0xc8] sm:$0xff] }
0x1b30   :  { %v7288_v58 = vpack.c.bf16 %v1621_v27, %v1620_v25  ;;  %v1630_v27 = vld [vmem:[#allocation2 + $0x110] sm:$0xff] }
0x1b31   :  { %v1363_v6 = vrot.slane %v1355_v28, %v7734_v7  ;;  %7285 = vmatprep.subr.bf16.mxu1 %v7284_v19  ;;  %v1604_v28 = vld [vmem:[#allocation2 + $0x40] sm:$0xff] }
0x1b32   :  { %v1612_v19 = vld [vmem:[#allocation2 + $0x80] sm:$0xff] }
0x1b33   :  { %1364 = vrot.lane.b32.xlu1 %v1363_v6, %s7650_s8 }
0x1ba5   :  { %v1365_v30 = vpop.permute.xlu1 %1364 }
0x1ba6   :  { %6881 = vmatmul.mubr.msk.f32.vlgmr.msra.gmra.mrb[12].mxu1 %vm294_vm5, %v1365_v30 }
0x1ba7   :  { %7287 = vmatpush3.bf16.msra.mxu1 %v7286_v23  ;;  %v1648_v23 = vld [vmem:[#allocation2 + $0x1a0] sm:$0xff] }
0x1ba8   :  { %7289 = vmatprep.subr.bf16.mxu1 %v7288_v58 }
0x1c79   :  { %v1434_v35 = vpop.f32.mrb[12].mxu1 }
0x1c7a   :  { %v1438_v37 = vadd.f32 %v1434_v35, %v275_v32  ;;  %v6882_v39 = vpop.f32.mrb[13].mxu1  ;;  %v1623_v32 = vld [vmem:[#allocation2 + $0xd8] sm:$0xff] }
0x1c7b   :  { %v7292_v35 = vpack.c.bf16 %v1623_v32, %v1622_v31  ;;  %v1607_v39 = vld [vmem:[#allocation2 + $0x58] sm:$0xff]  ;;  %v1632_v31 = vld [vmem:[#allocation2 + $0x120] sm:$0xff]  ;;  %v1633_v32 = vld [vmem:[#allocation2 + $0x128] sm:$0xff] }
0x1c7c   :  { %7595 = vtanh.f32 %v1438_v37  ;;  %v6303_v42 = vmul.f32 -1.442695, %v1438_v37  ;;  %v1606_v37 = vld [vmem:[#allocation2 + $0x50] sm:$0xff] }
0x1c7e   :  { %7597 = vpow2.f32 %v6303_v42  ;;  %v1624_v42 = vld [vmem:[#allocation2 + $0xe0] sm:$0xff] }
0x1c86   :  { %v7596_v41 = vpop.eup %7595 }
0x1c87   :  { %1448 = vrot.lane.b32.xlu0 %v7596_v41, %s7649_s30 }
0x1c88   :  { %v7598_v43 = vpop.eup %7597 }
0x1c89   :  { %v1442_v44 = vadd.f32 1.0, %v7598_v43  ;;  %v1625_v43 = vld [vmem:[#allocation2 + $0xe8] sm:$0xff] }
0x1c8b   :  { %7599 = vrcp.f32 %v1442_v44  ;;  %v1640_v44 = vld [vmem:[#allocation2 + $0x160] sm:$0xff] }
0x1c95   :  { %v7600_v45 = vpop.eup %7599 }
0x1c96   :  { %v1446_v48 = vmul.f32 %v7600_v45, %v1349_v24  ;;  %v1638_v24 = vld [vmem:[#allocation2 + $0x150] sm:$0xff] }
0x1c97   :  { %v7323_v41 = vpack.c.bf16 %v1639_v29, %v1638_v24  ;;  %v1649_v24 = vld [vmem:[#allocation2 + $0x1a8] sm:$0xff]  ;;  %v1631_v29 = vld [vmem:[#allocation2 + $0x118] sm:$0xff] }
0x1c98   :  { %v7338_v25 = vpack.c.bf16 %v1649_v24, %v1648_v23  ;;  %v7308_v58 = vpack.c.bf16 %v1631_v29, %v1630_v27 }
0x1cf9   :  { %v1449_v38 = vpop.permute.xlu0 %1448 }
0x1cfa   :  { %v1451_v47 = vmul.f32 %v7600_v45, %v1449_v38  ;;  %v7294_v38 = vpack.c.bf16 %v1607_v39, %v1606_v37  ;;  %v7312_v37 = vpack.c.bf16 %v1633_v32, %v1632_v31  ;;  %v1616_v39 = vld [vmem:[#allocation2 + $0xa0] sm:$0xff] }
0x1cfc   :  { %1453 = vrot.lane.b32.xlu1 %v1451_v47, %s7650_s8  ;;  %v7296_v47 = vpack.c.bf16 %v1625_v43, %v1624_v42 }
0x1d6e   :  { %v1454_v49 = vpop.permute.xlu1 %1453 }
0x1d6f   :  { %v7984_v50 = vadd.f32 %v1454_v49, %v1446_v48  ;;  %v1608_v48 = vld [vmem:[#allocation2 + $0x60] sm:$0xff]  ;;  %v1609_v49 = vld [vmem:[#allocation2 + $0x68] sm:$0xff] }
0x1d71   :  { %7601 = vtanh.f32 %v7984_v50 }
0x1d7b   :  { %v7602_v51 = vpop.eup %7601 }
0x1d7c   :  { %1459 = vrot.lane.b32.xlu0 %v7602_v51, %s7649_s30 }
0x1dee   :  { %v1460_v53 = vpop.permute.xlu0 %1459 }
0x1def   :  { %v1462_v54 = vmul.f32 %v7600_v45, %v1460_v53  ;;  %v1641_v45 = vld [vmem:[#allocation2 + $0x168] sm:$0xff]  ;;  %v1626_v53 = vld [vmem:[#allocation2 + $0xf0] sm:$0xff] }
0x1df0   :  { %v7326_v51 = vpack.c.bf16 %v1641_v45, %v1640_v44  ;;  %v7465_v44 = vpack.i.bf16 %v7858_v52, %v7927_v22  ;;  %v5260_v45 = vld [vmem:[#allocation2 + $0x318] sm:$0x3] }
0x1df1   :  { %v7989_v55 = vrot.slane %v1462_v54, %v7734_v7  ;;  %v1627_v54 = vld [vmem:[#allocation2 + $0xf8] sm:$0xff]  ;;  %7424 = vpush %v5260_v45 }
0x1df3   :  { %1471 = vrot.lane.b32.xlu1 %v7989_v55, %s7650_s8 }
0x1e65   :  { %v1472_v56 = vpop.permute.xlu1 %1471 }
0x1e66   :  { %6892 = vmatmul.mubr.msk.f32.vlgmr.msra.gmra.mrb[14].mxu0 %vm294_vm5, %v1472_v56  ;;  %v1642_v56 = vld [vmem:[#allocation2 + $0x170] sm:$0xff] }
0x1e67   :  { %6926 = vmatprep.mubr.msk.f32.mxu0 %vm8751_vm3, %v7644_v0  ;;  %7318 = vmatpush3.bf16.msra.mxu0 %v7317_v16  ;;  %v1628_v16 = vld [vmem:[#allocation2 + $0x100] sm:$0xff]  ;;  %vm3087_vm3 = vcmask 97280  }
0x1e68   :  { %7319 = vmatprep.subr.bf16.mxu0 %v7648_v15  ;;  %v7304_v18 = vpack.c.bf16 %v1629_v17, %v1628_v16 }
0x1e6b   :  { %7321 = vmatpush3.bf16.msra.mxu0 %v7320_v33  ;;  %v7306_v33 = vpack.c.bf16 %v1613_v20, %v1612_v19 }
0x1e6c   :  { %7322 = vmatprep.subr.bf16.mxu0 %v7648_v15 }
0x1e6f   :  { %7324 = vmatpush3.bf16.msra.mxu0 %v7323_v41  ;;  %v1617_v41 = vld [vmem:[#allocation2 + $0xa8] sm:$0xff] }
0x1e70   :  { %7325 = vmatprep.subr.bf16.mxu0 %v7648_v15  ;;  %v7314_v42 = vpack.c.bf16 %v1617_v41, %v1616_v39  ;;  %v8102_v41 = vand.u32 15, %v7731_v5 }
0x1e72   :  { %vm1854_vm11 = vcmp.ge.s32.totalorder %v8102_v41, 1  ;;  %vm1858_vm15 = vcmp.ge.s32.totalorder %v8102_v41, 2 }
0x1e73   :  { %7327 = vmatpush3.bf16.msra.mxu0 %v7326_v51 }
0x1e74   :  { %7328 = vmatprep.subr.bf16.mxu0 %v7648_v15 }
0x1f39   :  { %v1541_v59 = vpop.f32.mrb[14].mxu0 }
0x1f3a   :  { %v1545_v60 = vadd.f32 %v1541_v59, %v277_v57  ;;  %v6893_v61 = vpop.f32.mrb[15].mxu0  ;;  %v1643_v57 = vld [vmem:[#allocation2 + $0x178] sm:$0xff]  ;;  %v7298_v59 = vpack.c.bf16 %v1609_v49, %v1608_v48 }
0x1f3b   :  { %v1610_v61 = vld [vmem:[#allocation2 + $0x70] sm:$0xff] }
0x1f3c   :  { %7603 = vtanh.f32 %v1545_v60  ;;  %v6305_v36 = vmul.f32 -1.442695, %v1545_v60  ;;  %v7300_v60 = vpack.c.bf16 %v1627_v54, %v1626_v53  ;;  %v8035_v53 = vld [vmem:[%s8742_s0] sm:$0xff] }
0x1f3e   :  { %7605 = vpow2.f32 %v6305_v36  ;;  %v7329_v36 = vpack.c.bf16 %v1643_v57, %v1642_v56 }
0x1f40   :  { %7330 = vmatpush3.bf16.msra.mxu0 %v7329_v36 }
0x1f41   :  { %7331 = vmatprep.subr.bf16.mxu0 %v7648_v15 }
0x1f46   :  { %v7604_v34 = vpop.eup %7603 }
0x1f47   :  { %1555 = vrot.lane.b32.xlu0 %v7604_v34, %s7649_s30  ;;  %v1611_v34 = vld [vmem:[#allocation2 + $0x78] sm:$0xff] }
0x1f48   :  { %v7606_v62 = vpop.eup %7605 }
0x1f49   :  { %v1549_v63 = vadd.f32 1.0, %v7606_v62  ;;  %v1644_v62 = vld [vmem:[#allocation2 + $0x180] sm:$0xff] }
0x1f4b   :  { %7607 = vrcp.f32 %v1549_v63  ;;  %v1645_v63 = vld [vmem:[#allocation2 + $0x188] sm:$0xff] }
0x1f55   :  { %v7997_v1 = vpop.eup %7607 }
0x1f56   :  { %v1553_v14 = vmul.f32 %v7997_v1, %v7984_v50  ;;  %v1615_v50 = vld [vmem:[#allocation2 + $0x98] sm:$0xff] }
0x1fb9   :  { %v1556_v3 = vpop.permute.xlu0 %1555 }
0x1fba   :  { %v1558_v4 = vmul.f32 %v7997_v1, %v1556_v3  ;;  %v7302_v3 = vpack.c.bf16 %v1611_v34, %v1610_v61  ;;  %v8050_v61 = vld [vmem:[%s8742_s0 + $0x10] sm:$0xff] }
0x1fbc   :  { %1560 = vrot.lane.b32.xlu1 %v1558_v4, %s7650_s8  ;;  %v7332_v4 = vpack.c.bf16 %v1645_v63, %v1644_v62 }
0x1fbe   :  { %7333 = vmatpush3.bf16.msra.mxu0 %v7332_v4 }
0x1fbf   :  { %7334 = vmatprep.subr.bf16.mxu0 %v7648_v15 }
0x1fc0   :  { %1585 = vrot.lane.b32.xlu1 %v1363_v6, %s7649_s30  ;;  %v1605_v6 = vld [vmem:[#allocation2 + $0x48] sm:$0xff] }
0x1fc1   :  { %v7290_v30 = vpack.c.bf16 %v1605_v6, %v1604_v28  ;;  %v1614_v28 = vld [vmem:[#allocation2 + $0x90] sm:$0xff] }
0x1fc2   :  { %v7310_v6 = vpack.c.bf16 %v1615_v50, %v1614_v28 }
0x1fc3   :  { %7291 = vmatpush3.bf16.msra.mxu1 %v7290_v30  ;;  %v8014_v30 = vld [vmem:[#allocation2 + $0x1b8] sm:$0x3f] }
0x1fc4   :  { %7461 = vrot.lane.b32.xlu1 %v7460_v10, %s7649_s30  ;;  %7293 = vmatprep.subr.bf16.mxu1 %v7292_v35  ;;  %v1646_v10 = vld [vmem:[#allocation2 + $0x190] sm:$0xff]  ;;  %v1869_v35 = vrot.slane %v8014_v30, 3 }
0x1fc5   :  { %v7335_v13 = vpack.c.bf16 %v1647_v11, %v1646_v10  ;;  %v8082_v11 = vld [vmem:[#allocation2 + $0x1e0] sm:$0x7] }
0x1fc7   :  { %7295 = vmatpush3.bf16.msra.mxu1 %v7294_v38  ;;  %7336 = vmatpush3.bf16.msra.mxu0 %v7335_v13  ;;  %v5285_v38 = vrot.slane %v5260_v45, 1  ;;  %v48_v13 = vld [vmem:[%s8744_s2] sm:$0x3] }
0x1fc8   :  { %7297 = vmatprep.subr.bf16.mxu1 %v7296_v47  ;;  %7337 = vmatprep.subr.bf16.mxu0 %v7648_v15 }
0x1fc9   :  { %5270 = vrot.lane.b32.xlu1 %v5260_v45, %s7652_s16  ;;  %v6306_v45 = vld [vmem:[#allocation2 + $0x1b0] ss:$0 sm:$0xff] }
0x1fcb   :  { %7299 = vmatpush3.bf16.msra.mxu1 %v7298_v59  ;;  %7339 = vmatpush3.bf16.msra.mxu0 %v7338_v25 }
0x1fcc   :  { %7301 = vmatprep.subr.bf16.mxu1 %v7300_v60  ;;  %6937 = vmatprep.subr.msk.mxu0 %vm1883_vm6, %v8014_v30 }
0x1fcf   :  { %7303 = vmatpush3.bf16.msra.mxu1 %v7302_v3 }
0x1fd0   :  { %7305 = vmatprep.subr.bf16.mxu1 %v7304_v18 }
0x1fd3   :  { %7307 = vmatpush3.bf16.msra.mxu1 %v7306_v33 }
0x1fd4   :  { %7309 = vmatprep.subr.bf16.mxu1 %v7308_v58 }
0x1fd7   :  { %7311 = vmatpush3.bf16.msra.mxu1 %v7310_v6 }
0x1fd8   :  { %7313 = vmatprep.subr.bf16.mxu1 %v7312_v37 }
0x1fdb   :  { %7315 = vmatpush3.bf16.msra.mxu1 %v7314_v42  ;;  %v1804_v42 = vadd.s32 16, %v7731_v5 }
0x1fdc   :  { %6929 = vmatprep.subr.msk.mxu1 %vm1883_vm6, %v1869_v35 }
0x202e   :  { %v1561_v26 = vpop.permute.xlu1 %1560 }
0x202f   :  { %v1563_v21 = vadd.f32 %v1561_v26, %v1553_v14  ;;  %v49_v14 = vld [vmem:[%s8744_s2 + $0x2] sm:$0x3]  ;;  %s7654_s2 = smov 116  }
0x2031   :  { %7609 = vtanh.f32 %v1563_v21 }
0x2032   :  { %v1586_v47 = vpop.permute.xlu1 %1585 }
0x2036   :  { %v7462_v49 = vpop.permute.xlu1 %7461 }
0x2037   :  { %v7464_v54 = vunpack.i.h.bf16 %v7462_v49  ;;  %v7463_v56 = vunpack.i.l.bf16 %v7462_v49 }
0x2039   :  { %v1591_v36 = vsel %vm294_vm5, %v7826_v9, %v7464_v54  ;;  %v1596_v62 = vsel %vm294_vm5, %v7895_v40, %v7463_v56  ;;  %v8069_v9 = vld [vmem:[%s8742_s0 + $0x18] sm:$0xff]  ;;  %v6318_v56 = vld [vmem:[#allocation2 + $0x1c0] ss:$0 sm:$0xff] }
0x203b   :  { %v7610_v43 = vpop.eup %7609  ;;  %v5271_v34 = vpop.permute.xlu1 %5270 }
0x203c   :  { %1566 = vrot.lane.b32.xlu0 %v7610_v43, %s7649_s30  ;;  %7426 = vpush %v5271_v34 }
0x203d   :  { %7428 = vpush %v5285_v38 }
0x2040   :  { %1588 = vrot.lane.b32.xlu0 %v7989_v55, %s7651_s3  ;;  %v1599_v55 = vsel %vm294_vm5, %v7963_v8, %v1586_v47  ;;  %vm8248_vm5 = vmpackc.low %vm3082_vm4, %vm7645_vm1  ;;  %vm3043_vm1 = vcmp.lt.s32.totalorder %v7731_v5, 4 }
0x2044   :  { %7466 = vrot.lane.b32.xlu0 %v7465_v44, %s7651_s3 }
0x2048   :  { %5301 = vrot.lane.b32.xlu0 %v5285_v38, %s7652_s16 }
0x20ae   :  { %v1567_v48 = vpop.permute.xlu0 %1566 }
0x20af   :  { %v1569_v52 = vmul.f32 %v7997_v1, %v1567_v48  ;;  %v8045_v1 = vld [vmem:[%s8742_s0 + $0x8] sm:$0xff]  ;;  %s7425_s0 = spop %7424 }
0x20b0   :  { %v5264_v16 = vstv %s7425_s0  ;;  %s7427_s29 = spop %7426  ;;  %s7666_s0 = smov 124  }
0x20b1   :  { %v5266_v17 = vmul.f32 %v5264_v16, %v48_v13  ;;  %v5267_v26 = vmul.f32 %v5264_v16, %v49_v14  ;;  %v5273_v18 = vstv %s7427_s29  ;;  %s7429_s30 = spop %7428 }
0x20b2   :  { %v1589_v22 = vpop.permute.xlu0 %1588  ;;  %v5275_v19 = vmul.f32 %v5273_v18, %v48_v13  ;;  %v5276_v20 = vmul.f32 %v5273_v18, %v49_v14  ;;  %v5287_v21 = vstv %s7429_s30 }
0x20b3   :  { %v1600_v51 = vsel %vm1592_vm7, %v1599_v55, %v1589_v22  ;;  %v5289_v33 = vmul.f32 %v5287_v21, %v48_v13  ;;  %v5290_v23 = vmul.f32 %v5287_v21, %v49_v14  ;;  %v8108_v22 = vand.u32 15, %v1804_v42 }
0x20b4   :  { %v1601_v57 = vsel %vm8750_vm8, %v1600_v51, %v1569_v52  ;;  %v5279_v28 = vrot.slane %v5275_v19, 1  ;;  %v5280_v50 = vrot.slane %v5276_v20, 1 }
0x20b5   :  { %6927 = vmatmul.mubr.f32.vlgmr.msra.gmra.mrb[16].mxu0 %v1601_v57  ;;  %5295 = vrot.lane.b32.xlu1 %v5290_v23, %s7652_s16  ;;  %vm1856_vm12 = vcmp.ge.s32.totalorder %v8108_v22, 1  ;;  %vm1860_vm0 = vcmp.ge.s32.totalorder %v8108_v22, 2 }
0x20b6   :  { %6938 = vmatpush3.msk.msra.mxu0 %vm1883_vm6, %v8014_v30  ;;  %v7467_v8 = vpop.permute.xlu0 %7466  ;;  %6939 = vmatprep.mubr.msk.f32.mxu0 %vm1870_vm9, %v8035_v53  ;;  %v8096_v6 = vadd.f32 %v5280_v50, %v5267_v26  ;;  %v8098_v30 = vadd.f32 %v5279_v28, %v5266_v17 }
0x20b7   :  { %v7469_v59 = vunpack.i.h.bf16 %v7467_v8  ;;  %v7468_v60 = vunpack.i.l.bf16 %v7467_v8  ;;  %5293 = vrot.lane.b32.xlu0 %v5289_v33, %s7652_s16 }
0x20b9   :  { %6940 = vmatmul.mubr.msk.f32.vlgmr.msra.gmra.mrb[18].mxu0 %vm1870_vm9, %v8045_v1  ;;  %v1597_v63 = vsel %vm1592_vm7, %v1596_v62, %v7468_v60  ;;  %v1593_v3 = vsel %vm1592_vm7, %v1591_v36, %v7469_v59  ;;  %vm1862_vm7 = vcmp.ge.s32.totalorder %v8102_v41, 4 }
0x20ba   :  { %v1598_v4 = vsel %vm8750_vm8, %v1597_v63, %v7941_v46  ;;  %v1595_v10 = vsel %vm8750_vm8, %v1593_v3, %v7872_v12  ;;  %6942 = vmatprep.mubr.msk.f32.mxu0 %vm1870_vm9, %v8050_v61  ;;  %v5302_v40 = vpop.permute.xlu0 %5301  ;;  %v2095_v12 = vld [vmem:[#allocation2 + $0x1c8] sm:$0xff]  ;;  %v2096_v46 = vld [vmem:[#allocation2 + $0x1d0] sm:$0xff]  ;;  %vm1864_vm8 = vcmp.ge.s32.totalorder %v8108_v22, 4 }
0x20bb   :  { %1719 = vmatprep.mubr.f32.mxu1 %v1598_v4  ;;  %7430 = vpush %v5302_v40  ;;  %6953 = vmatprep.subr.mxu0 %v2095_v12  ;;  %v5586_v22 = vld [vmem:[#allocation2 + $0x350] sm:$0xff] }
0x20bc   :  { %1720 = vmatmul.mubr.f32.vlgmr.msra.gmra.mrb[14].mxu1 %v1595_v10  ;;  %6954 = vmatpush3.msra.mxu0 %v2095_v12 }
0x20bd   :  { %6930 = vmatpush3.msk.msra.mxu1 %vm1883_vm6, %v1869_v35  ;;  %6943 = vmatmul.mubr.msk.f32.gmra.mrb[20].mxu0 %vm1870_vm9, %v8069_v9 }
0x20be   :  { %6931 = vmatprep.mubr.msk.f32.mxu1 %vm1870_vm9, %v8035_v53  ;;  %6945 = vmatprep.subr.mxu1 %v2096_v46 }
0x20c0   :  { %6932 = vmatmul.mubr.msk.f32.vlgmr.msra.gmra.mrb[16].mxu1 %vm1870_vm9, %v8045_v1 }
0x20c1   :  { %6934 = vmatprep.mubr.msk.f32.mxu1 %vm1870_vm9, %v8050_v61  ;;  %6946 = vmatpush3.msra.mxu1 %v2096_v46 }
0x20c2   :  { %6961 = vmatprep.subr.msk.mxu1 %vm1883_vm6, %v8082_v11 }
0x20c4   :  { %6935 = vmatmul.mubr.msk.f32.gmra.mrb[18].mxu1 %vm1870_vm9, %v8069_v9 }
0x20ec   :  { %s7431_s8 = spop %7430 }
0x20ed   :  { %v5304_v24 = vstv %s7431_s8 }
0x20ee   :  { %v5306_v25 = vmul.f32 %v5304_v24, %v48_v13  ;;  %v5307_v27 = vmul.f32 %v5304_v24, %v49_v14 }
0x20f0   :  { %v5310_v29 = vrot.slane %v5306_v25, 1  ;;  %v5311_v58 = vrot.slane %v5307_v27, 1 }
0x20f2   :  { %5314 = vrot.lane.b32.xlu1 %v5311_v58, %s7652_s16  ;;  %5312 = vrot.lane.b32.xlu0 %v5310_v29, %s7652_s16  ;;  %s7656_s16 = smov 108  }
0x2188   :  { %v1791_v31 = vpop.f32.mrb[16].mxu0 }
0x2189   :  { %v6928_v32 = vpop.f32.mrb[17].mxu0 }
0x218a   :  { %v2412_v32 = vld [vmem:[#allocation2 + $0x1f8] sm:$0xff] }
0x218b   :  { %6969 = vmatprep.subr.mxu0 %v2412_v32 }
0x218c   :  { %v6941_v35 = vpop.f32.mrb[18].mxu0 }
0x218d   :  { %v2059_v37 = vrot.slane %v6941_v35, 7  ;;  %v2039_v39 = vpop.f32.mrb[19].mxu0 }
0x218e   :  { %v2058_v43 = vrot.slane %v2039_v39, 7 }
0x218f   :  { %v6566_v44 = vpop.f32.mrb[14].mxu1 }
0x2190   :  { %v6567_v38 = vpop.f32.mrb[15].mxu1  ;;  %v6944_v47 = vpop.f32.mrb[20].mxu0  ;;  %v2065_v48 = vsel %vm2062_vm10, %v2058_v43, %v2059_v37 }
0x2191   :  { %v6568_v49 = vadd.f32 %v6567_v38, %v6566_v44  ;;  %v2061_v55 = vrot.slane %v6944_v47, 7  ;;  %v2049_v52 = vpop.f32.mrb[21].mxu0 }
0x2192   :  { %v2060_v51 = vrot.slane %v2049_v52, 7 }
0x2193   :  { %v1722_v54 = vadd.f32 %v6568_v49, %v6306_v45  ;;  %v6933_v57 = vpop.f32.mrb[16].mxu1  ;;  %v2066_v8 = vsel %vm2062_vm10, %v2061_v55, %v2058_v43 }
0x2194   :  { %v2080_v59 = vadd.f32 %v6933_v57, %v2065_v48  ;;  %v1952_v60 = vpop.f32.mrb[17].mxu1  ;;  %v2075_v34 = vsel %vm1854_vm11, %v2066_v8, 0.0  ;;  %v2063_v36 = vsel %vm2062_vm10, %v2060_v51, %v2061_v55  ;;  %v2064_v62 = vsel %vm2062_vm10, %v2059_v37, %v2060_v51  ;;  %v6327_v48 = vld [vmem:[#allocation2 + $0x1d8] ss:$0 sm:$0xff] }
0x2195   :  { %v1792_v63 = vadd.f32 %v1791_v31, %v1722_v54  ;;  %v2079_v3 = vadd.f32 %v2075_v34, %v1952_v60  ;;  %v2077_v14 = vsel %vm1856_vm12, %v2064_v62, 0.0 }
0x2196   :  { %v2088_v4 = vadd.f32 %v6318_v56, %v2080_v59 }
0x2197   :  { %v6307_v10 = vmul.f32 -1.442695, %v1792_v63  ;;  %v2087_v40 = vadd.f32 %v6318_v56, %v2079_v3  ;;  %v6936_v12 = vpop.f32.mrb[18].mxu1 }
0x2198   :  { %v2082_v46 = vadd.f32 %v6936_v12, %v2063_v36  ;;  %v1962_v13 = vpop.f32.mrb[19].mxu1  ;;  %v2092_v26 = vmax.f32 %v2088_v4, 0.0 }
0x2199   :  { %7611 = vpow2.f32 %v6307_v10  ;;  %v2091_v16 = vmax.f32 %v2087_v40, 0.0  ;;  %v2081_v17 = vadd.f32 %v2077_v14, %v1962_v13 }
0x219a   :  { %v2090_v18 = vadd.f32 %v6318_v56, %v2082_v46 }
0x219b   :  { %v2089_v19 = vadd.f32 %v6318_v56, %v2081_v17  ;;  %6947 = vmatprep.mubr.msk.f32.mxu1 %vm2098_vm13, %v2091_v16  ;;  %6955 = vmatprep.mubr.msk.f32.mxu0 %vm2098_vm13, %v2091_v16  ;;  %v6328_v56 = vld [vmem:[#allocation2 + $0x1e8] ss:$0 sm:$0xff] }
0x219c   :  { %6948 = vmatmul.mubr.msk.f32.vlgmr.msra.gmra.mrb[20].mxu1 %vm2098_vm13, %v2092_v26  ;;  %6956 = vmatmul.mubr.msk.f32.vlgmr.msra.gmra.mrb[22].mxu0 %vm2098_vm13, %v2092_v26  ;;  %v2094_v21 = vmax.f32 %v2090_v18, 0.0 }
0x219d   :  { %v2093_v20 = vmax.f32 %v2089_v19, 0.0  ;;  %6962 = vmatpush3.msk.msra.mxu1 %vm1883_vm6, %v8082_v11  ;;  %v7653_v11 = vmov 1966171168   ;;  %6970 = vmatpush3.msra.mxu0 %v2412_v32 }
0x219e   :  { %v4906_v24 = vunpack.c.l.s4 %v7653_v11 }
0x219f   :  { %6950 = vmatprep.mubr.msk.f32.mxu1 %vm2098_vm13, %v2093_v20  ;;  %6958 = vmatprep.mubr.msk.f32.mxu0 %vm2098_vm13, %v2093_v20 }
0x21a0   :  { %6951 = vmatmul.mubr.msk.f32.gmra.mrb[22].mxu1 %vm2098_vm13, %v2094_v21  ;;  %6959 = vmatmul.mubr.msk.f32.gmra.mrb[24].mxu0 %vm2098_vm13, %v2094_v21  ;;  %v4907_v25 = vunpack.c.0.s8 %v4906_v24 }
0x21a1   :  { %6963 = vmatprep.mubr.msk.f32.mxu1 %vm1870_vm9, %v8035_v53  ;;  %v4929_v53 = vsub.s32 0, %v7731_v5 }
0x21a2   :  { %v4910_v27 = vsub.s32 %v4907_v25, %v7731_v5 }
0x21a3   :  { %v7612_v33 = vpop.eup %7611 }
0x21a4   :  { %v1798_v23 = vadd.f32 1.0, %v7612_v33  ;;  %6964 = vmatmul.mubr.msk.f32.vlgmr.msra.gmra.mrb[24].mxu1 %vm1870_vm9, %v8045_v1 }
0x21a5   :  { %6966 = vmatprep.mubr.msk.f32.mxu1 %vm1870_vm9, %v8050_v61 }
0x21a6   :  { %7613 = vrcp.f32 %v1798_v23 }
0x21a8   :  { %6967 = vmatmul.mubr.msk.f32.gmra.mrb[26].mxu1 %vm1870_vm9, %v8069_v9  ;;  %v2411_v9 = vld [vmem:[#allocation2 + $0x1f0] sm:$0xff] }
0x21a9   :  { %6977 = vmatprep.subr.mxu1 %v2411_v9 }
0x21aa   :  { %6978 = vmatpush3.msra.mxu1 %v2411_v9 }
0x21b0   :  { %v7614_v29 = vpop.eup %7613 }
0x21b1   :  { %v4911_v58 = vrot.slane %v7614_v29, %v4910_v27 }
0x21b3   :  { %v4919_v28 = vrot.slane %v4911_v58, %v4910_v27  ;;  %v4912_v50 = vcombine.high %v4911_v58, %v4911_v58 }
0x21b5   :  { %v8141_v31 = vrot.slane %v4919_v28, %v4929_v53  ;;  %v4926_v1 = vrot.slane %v4912_v50, %v4910_v27  ;;  %v2633_v28 = vld [vmem:[#allocation2 + $0x208] sm:$0xff]  ;;  %v2634_v50 = vld [vmem:[#allocation2 + $0x210] sm:$0xff] }
0x21b6   :  { %6993 = vmatprep.subr.mxu1 %v2633_v28  ;;  %6985 = vmatprep.subr.mxu0 %v2634_v50 }
0x21b7   :  { %5096 = vrot.lane.b32.xlu1 %v8141_v31, %s7654_s2  ;;  %v8144_v61 = vrot.slane %v4926_v1, %v4929_v53 }
0x21b9   :  { %5098 = vrot.lane.b32.xlu0 %v8144_v61, %s7654_s2 }
0x226f   :  { %v6949_v35 = vpop.f32.mrb[20].mxu1  ;;  %v6957_v37 = vpop.f32.mrb[22].mxu0 }
0x2270   :  { %v2282_v39 = vrot.slane %v6957_v37, 7  ;;  %v2177_v42 = vpop.f32.mrb[21].mxu1  ;;  %v2262_v43 = vpop.f32.mrb[23].mxu0 }
0x2271   :  { %v2281_v44 = vrot.slane %v2262_v43, 7 }
0x2273   :  { %v2287_v45 = vsel %vm2062_vm10, %v2281_v44, %v2282_v39  ;;  %v6952_v38 = vpop.f32.mrb[22].mxu1  ;;  %v6960_v47 = vpop.f32.mrb[24].mxu0 }
0x2274   :  { %v2294_v49 = vadd.f32 %v6949_v35, %v2287_v45  ;;  %v2284_v55 = vrot.slane %v6960_v47, 7  ;;  %v2187_v52 = vpop.f32.mrb[23].mxu1  ;;  %v2272_v51 = vpop.f32.mrb[25].mxu0 }
0x2275   :  { %v2283_v54 = vrot.slane %v2272_v51, 7 }
0x2276   :  { %v2288_v57 = vsel %vm2062_vm10, %v2284_v55, %v2281_v44  ;;  %v2302_v8 = vadd.f32 %v6327_v48, %v2294_v49 }
0x2277   :  { %v2289_v59 = vsel %vm1854_vm11, %v2288_v57, 0.0  ;;  %v2285_v60 = vsel %vm2062_vm10, %v2283_v54, %v2284_v55  ;;  %v2286_v34 = vsel %vm2062_vm10, %v2282_v39, %v2283_v54  ;;  %v6965_v36 = vpop.f32.mrb[24].mxu1  ;;  %v6342_v55 = vld [vmem:[#allocation2 + $0x200] ss:$0 sm:$0xff] }
0x2278   :  { %v2291_v62 = vsel %vm1856_vm12, %v2286_v34, 0.0  ;;  %v2296_v63 = vadd.f32 %v6952_v38, %v2285_v60  ;;  %v2306_v3 = vmax.f32 %v2302_v8, 0.0  ;;  %v2390_v4 = vadd.f32 %v6965_v36, %v6328_v56  ;;  %v2384_v10 = vpop.f32.mrb[25].mxu1 }
0x2279   :  { %v2293_v40 = vadd.f32 %v2289_v59, %v2177_v42  ;;  %v2295_v12 = vadd.f32 %v2291_v62, %v2187_v52  ;;  %v2385_v16 = vadd.f32 %v6328_v56, %v2384_v10 }
0x227a   :  { %v2404_v46 = vadd.f32 %v2390_v4, %v2306_v3  ;;  %v2304_v13 = vadd.f32 %v6327_v48, %v2296_v63 }
0x227b   :  { %v2301_v14 = vadd.f32 %v6327_v48, %v2293_v40  ;;  %v6968_v17 = vpop.f32.mrb[26].mxu1  ;;  %v2303_v26 = vadd.f32 %v6327_v48, %v2295_v12  ;;  %v2854_v12 = vld [vmem:[#allocation2 + $0x220] sm:$0xff] }
0x227c   :  { %v2308_v18 = vmax.f32 %v2304_v13, 0.0  ;;  %v2400_v19 = vadd.f32 %v6968_v17, %v6328_v56  ;;  %v2394_v20 = vpop.f32.mrb[27].mxu1  ;;  %v8163_v58 = vmax.f32 %v2404_v46, 0.0  ;;  %v2855_v46 = vld [vmem:[#allocation2 + $0x228] sm:$0xff] }
0x227d   :  { %v2305_v21 = vmax.f32 %v2301_v14, 0.0  ;;  %v2307_v33 = vmax.f32 %v2303_v26, 0.0  ;;  %v2395_v23 = vadd.f32 %v6328_v56, %v2394_v20 }
0x227e   :  { %v2406_v11 = vadd.f32 %v2400_v19, %v2308_v18  ;;  %v6351_v19 = vld [vmem:[#allocation2 + $0x218] ss:$0 sm:$0xff] }
0x227f   :  { %v2403_v24 = vadd.f32 %v2385_v16, %v2305_v21  ;;  %v2405_v25 = vadd.f32 %v2395_v23, %v2307_v33 }
0x2280   :  { %v8177_v53 = vmax.f32 %v2406_v11, 0.0 }
0x2281   :  { %v8159_v27 = vmax.f32 %v2403_v24, 0.0  ;;  %v8161_v29 = vmax.f32 %v2405_v25, 0.0 }
0x2283   :  { %6971 = vmatprep.mubr.msk.f32.mxu0 %vm2098_vm13, %v8159_v27  ;;  %6979 = vmatprep.mubr.msk.f32.mxu1 %vm2098_vm13, %v8159_v27 }
0x2284   :  { %6972 = vmatmul.mubr.msk.f32.vlgmr.msra.gmra.mrb[26].mxu0 %vm2098_vm13, %v8163_v58  ;;  %6980 = vmatmul.mubr.msk.f32.vlgmr.msra.gmra.mrb[28].mxu1 %vm2098_vm13, %v8163_v58 }
0x2285   :  { %6974 = vmatprep.mubr.msk.f32.mxu0 %vm2098_vm13, %v8161_v29  ;;  %6982 = vmatprep.mubr.msk.f32.mxu1 %vm2098_vm13, %v8161_v29 }
0x2286   :  { %6994 = vmatpush3.msra.mxu1 %v2633_v28  ;;  %6986 = vmatpush3.msra.mxu0 %v2634_v50 }
0x2287   :  { %7009 = vmatprep.subr.mxu1 %v2854_v12  ;;  %7001 = vmatprep.subr.mxu0 %v2855_v46 }
0x2288   :  { %6975 = vmatmul.mubr.msk.f32.gmra.mrb[28].mxu0 %vm2098_vm13, %v8177_v53  ;;  %6983 = vmatmul.mubr.msk.f32.gmra.mrb[30].mxu1 %vm2098_vm13, %v8177_v53 }
0x2357   :  { %v6973_v1 = vpop.f32.mrb[26].mxu0  ;;  %v6981_v9 = vpop.f32.mrb[28].mxu1 }
0x2358   :  { %v2597_v32 = vrot.slane %v6981_v9, 6  ;;  %v2492_v35 = vpop.f32.mrb[27].mxu0  ;;  %v2577_v37 = vpop.f32.mrb[29].mxu1 }
0x2359   :  { %v2596_v39 = vrot.slane %v2577_v37, 6 }
0x235b   :  { %v2603_v42 = vsel %vm2600_vm14, %v2596_v39, %v2597_v32  ;;  %v6976_v43 = vpop.f32.mrb[28].mxu0  ;;  %v6984_v44 = vpop.f32.mrb[30].mxu1 }
0x235c   :  { %v2618_v45 = vadd.f32 %v6973_v1, %v2603_v42  ;;  %v2599_v38 = vrot.slane %v6984_v44, 6  ;;  %v2502_v47 = vpop.f32.mrb[29].mxu0  ;;  %v2587_v48 = vpop.f32.mrb[31].mxu1 }
0x235d   :  { %v2598_v49 = vrot.slane %v2587_v48, 6 }
0x235e   :  { %v2604_v52 = vsel %vm2600_vm14, %v2599_v38, %v2596_v39  ;;  %v2626_v60 = vadd.f32 %v6342_v55, %v2618_v45 }
0x235f   :  { %v2613_v51 = vsel %vm1858_vm15, %v2604_v52, 0.0  ;;  %v2601_v54 = vsel %vm2600_vm14, %v2598_v49, %v2599_v38  ;;  %v2602_v56 = vsel %vm2600_vm14, %v2597_v32, %v2598_v49 }
0x2360   :  { %v2617_v57 = vadd.f32 %v2613_v51, %v2492_v35  ;;  %v2615_v8 = vsel %vm1860_vm0, %v2602_v56, 0.0  ;;  %v2620_v59 = vadd.f32 %v6976_v43, %v2601_v54  ;;  %v2630_v3 = vmax.f32 %v2626_v60, 0.0 }
0x2361   :  { %v2619_v34 = vadd.f32 %v2615_v8, %v2502_v47 }
0x2362   :  { %v2625_v36 = vadd.f32 %v6342_v55, %v2617_v57  ;;  %v2628_v10 = vadd.f32 %v6342_v55, %v2620_v59 }
0x2363   :  { %v2627_v62 = vadd.f32 %v6342_v55, %v2619_v34 }
0x2364   :  { %v2629_v63 = vmax.f32 %v2625_v36, 0.0  ;;  %v2632_v40 = vmax.f32 %v2628_v10, 0.0  ;;  %v3401_v10 = vld [vmem:[#allocation2 + $0x268] sm:$0x3f] }
0x2365   :  { %v2631_v4 = vmax.f32 %v2627_v62, 0.0  ;;  %v3076_v62 = vld [vmem:[#allocation2 + $0x238] sm:$0xff] }
0x2366   :  { %6987 = vmatprep.mubr.msk.f32.mxu0 %vm2098_vm13, %v2629_v63  ;;  %6995 = vmatprep.mubr.msk.f32.mxu1 %vm2098_vm13, %v2629_v63 }
0x2367   :  { %6988 = vmatmul.mubr.msk.f32.vlgmr.msra.gmra.mrb[30].mxu0 %vm2098_vm13, %v2630_v3  ;;  %6996 = vmatmul.mubr.msk.f32.vlgmr.msra.gmra.mrb[32].mxu1 %vm2098_vm13, %v2630_v3 }
0x2368   :  { %6990 = vmatprep.mubr.msk.f32.mxu0 %vm2098_vm13, %v2631_v4  ;;  %6998 = vmatprep.mubr.msk.f32.mxu1 %vm2098_vm13, %v2631_v4  ;;  %v3302_v4 = vld [vmem:[#allocation2 + $0x258] sm:$0xff] }
0x2369   :  { %7010 = vmatpush3.msra.mxu1 %v2854_v12  ;;  %7002 = vmatpush3.msra.mxu0 %v2855_v46 }
0x236b   :  { %6991 = vmatmul.mubr.msk.f32.gmra.mrb[32].mxu0 %vm2098_vm13, %v2632_v40  ;;  %6999 = vmatmul.mubr.msk.f32.gmra.mrb[34].mxu1 %vm2098_vm13, %v2632_v40  ;;  %v3404_v40 = vrot.slane %v3401_v10, 3 }
0x243a   :  { %v6989_v13 = vpop.f32.mrb[30].mxu0  ;;  %v6997_v14 = vpop.f32.mrb[32].mxu1 }
0x243b   :  { %v2819_v16 = vrot.slane %v6997_v14, 6  ;;  %v2714_v17 = vpop.f32.mrb[31].mxu0  ;;  %v2799_v26 = vpop.f32.mrb[33].mxu1 }
0x243c   :  { %v2818_v18 = vrot.slane %v2799_v26, 6 }
0x243e   :  { %v2824_v20 = vsel %vm2600_vm14, %v2818_v18, %v2819_v16  ;;  %v6992_v21 = vpop.f32.mrb[32].mxu0  ;;  %v7000_v33 = vpop.f32.mrb[34].mxu1 }
0x243f   :  { %v2831_v23 = vadd.f32 %v6989_v13, %v2824_v20  ;;  %v2821_v11 = vrot.slane %v7000_v33, 6  ;;  %v2724_v24 = vpop.f32.mrb[33].mxu0  ;;  %v2809_v25 = vpop.f32.mrb[35].mxu1 }
0x2440   :  { %v2820_v28 = vrot.slane %v2809_v25, 6 }
0x2441   :  { %v2839_v50 = vadd.f32 %v6351_v19, %v2831_v23  ;;  %v2825_v1 = vsel %vm2600_vm14, %v2821_v11, %v2818_v18 }
0x2442   :  { %v2826_v9 = vsel %vm1858_vm15, %v2825_v1, 0.0  ;;  %v2822_v32 = vsel %vm2600_vm14, %v2820_v28, %v2821_v11  ;;  %v2823_v35 = vsel %vm2600_vm14, %v2819_v16, %v2820_v28 }
0x2443   :  { %v2830_v37 = vadd.f32 %v2826_v9, %v2714_v17  ;;  %v2828_v39 = vsel %vm1860_vm0, %v2823_v35, 0.0  ;;  %v2833_v42 = vadd.f32 %v6992_v21, %v2822_v32  ;;  %v2843_v43 = vmax.f32 %v2839_v50, 0.0 }
0x2444   :  { %v2832_v44 = vadd.f32 %v2828_v39, %v2724_v24  ;;  %v6360_v24 = vld [vmem:[#allocation2 + $0x230] ss:$0 sm:$0xff] }
0x2445   :  { %v2838_v45 = vadd.f32 %v6351_v19, %v2830_v37  ;;  %v2841_v38 = vadd.f32 %v6351_v19, %v2833_v42  ;;  %v2847_v49 = vadd.f32 %v2843_v43, %v8163_v58  ;;  %v3078_v58 = vld [vmem:[#allocation2 + $0x248] sm:$0xff] }
0x2446   :  { %v2840_v47 = vadd.f32 %v6351_v19, %v2832_v44  ;;  %v3084_v60 = vrot.slane %v3078_v58, 4 }
0x2447   :  { %v2842_v48 = vmax.f32 %v2838_v45, 0.0  ;;  %v2845_v52 = vmax.f32 %v2841_v38, 0.0  ;;  %v8223_v57 = vmax.f32 %v2847_v49, 0.0  ;;  %v8290_v49 = vld [vmem:[%s8743_s1] sm:$0xff] }
0x2448   :  { %v2844_v55 = vmax.f32 %v2840_v47, 0.0 }
0x2449   :  { %v2846_v51 = vadd.f32 %v2842_v48, %v8159_v27  ;;  %v2849_v59 = vadd.f32 %v2845_v52, %v8177_v53  ;;  %v8311_v52 = vld [vmem:[%s8743_s1 + $0x10] sm:$0xff] }
0x244a   :  { %v2848_v54 = vadd.f32 %v2844_v55, %v8161_v29  ;;  %v3077_v29 = vld [vmem:[#allocation2 + $0x240] sm:$0xff]  ;;  %v8299_v55 = vld [vmem:[%s8743_s1 + $0x8] sm:$0xff] }
0x244b   :  { %v8221_v56 = vmax.f32 %v2846_v51, 0.0  ;;  %v8240_v27 = vmax.f32 %v2849_v59, 0.0  ;;  %v3083_v53 = vrot.slane %v3077_v29, 4  ;;  %v7346_v3 = vpack.c.bf16 %v3077_v29, %v3076_v62  ;;  %v8318_v51 = vld [vmem:[%s8743_s1 + $0x18] sm:$0xff] }
0x244c   :  { %v8225_v8 = vmax.f32 %v2848_v54, 0.0  ;;  %v3619_v54 = vld [vmem:[#allocation2 + $0x278] sm:$0xff] }
0x244d   :  { %7003 = vmatprep.mubr.msk.f32.mxu0 %vm2098_vm13, %v8221_v56  ;;  %7011 = vmatprep.mubr.msk.f32.mxu1 %vm2098_vm13, %v8221_v56  ;;  %v3085_v36 = vsel %vm3082_vm4, %v3083_v53, %v3084_v60 }
0x244e   :  { %7004 = vmatmul.mubr.msk.f32.vlgmr.msra.gmra.mrb[34].mxu0 %vm2098_vm13, %v8223_v57  ;;  %7012 = vmatmul.mubr.msk.f32.vlgmr.msra.gmra.mrb[36].mxu1 %vm2098_vm13, %v8223_v57  ;;  %v7340_v63 = vpack.c.bf16 %v3084_v60, %v3085_v36 }
0x244f   :  { %7006 = vmatprep.mubr.msk.f32.mxu0 %vm2098_vm13, %v8225_v8  ;;  %7014 = vmatprep.mubr.msk.f32.mxu1 %vm2098_vm13, %v8225_v8 }
0x2450   :  { %7342 = vmatprep.subr.msk.bf16.mxu0 %vm8248_vm5, %v7340_v63  ;;  %7348 = vmatprep.subr.msk.bf16.mxu1 %vm8248_vm5, %v7346_v3 }
0x2451   :  { %7345 = vmatpush3.bf16.msk.msra.mxu0 %vm8248_vm5, %v7340_v63  ;;  %7351 = vmatpush3.bf16.msk.msra.mxu1 %vm8248_vm5, %v7346_v3  ;;  %v6371_v63 = vld [vmem:[#allocation2 + $0x250] ss:$0 sm:$0xff] }
0x2452   :  { %7007 = vmatmul.mubr.msk.f32.gmra.mrb[36].mxu0 %vm2098_vm13, %v8240_v27  ;;  %7015 = vmatmul.mubr.msk.f32.gmra.mrb[38].mxu1 %vm2098_vm13, %v8240_v27 }
0x2453   :  { %7037 = vmatprep.subr.mxu0 %v3302_v4  ;;  %7045 = vmatprep.subr.msk.mxu1 %vm1883_vm6, %v3404_v40 }
0x2521   :  { %v7005_v12 = vpop.f32.mrb[34].mxu0  ;;  %v7013_v46 = vpop.f32.mrb[36].mxu1 }
0x2522   :  { %v3040_v13 = vrot.slane %v7013_v46, 4  ;;  %v2935_v14 = vpop.f32.mrb[35].mxu0  ;;  %v3020_v16 = vpop.f32.mrb[37].mxu1  ;;  %v6372_v46 = vld [vmem:[#allocation2 + $0x260] ss:$0 sm:$0xff] }
0x2523   :  { %v3039_v17 = vrot.slane %v3020_v16, 4 }
0x2525   :  { %v3046_v26 = vsel %vm3043_vm1, %v3039_v17, %v3040_v13  ;;  %v7008_v18 = vpop.f32.mrb[36].mxu0  ;;  %v7016_v19 = vpop.f32.mrb[38].mxu1 }
0x2526   :  { %v3061_v20 = vadd.f32 %v7005_v12, %v3046_v26  ;;  %v3042_v21 = vrot.slane %v7016_v19, 4  ;;  %v2945_v33 = vpop.f32.mrb[37].mxu0  ;;  %v3030_v23 = vpop.f32.mrb[39].mxu1 }
0x2527   :  { %v3041_v11 = vrot.slane %v3030_v23, 4 }
0x2528   :  { %v3047_v25 = vsel %vm3043_vm1, %v3042_v21, %v3039_v17  ;;  %v3069_v37 = vadd.f32 %v6360_v24, %v3061_v20 }
0x2529   :  { %v3056_v28 = vsel %vm1862_vm7, %v3047_v25, 0.0  ;;  %v3044_v50 = vsel %vm3043_vm1, %v3041_v11, %v3042_v21  ;;  %v3045_v1 = vsel %vm3043_vm1, %v3040_v13, %v3041_v11 }
0x252a   :  { %v3060_v9 = vadd.f32 %v3056_v28, %v2935_v14  ;;  %v3058_v32 = vsel %vm1864_vm8, %v3045_v1, 0.0  ;;  %v3063_v35 = vadd.f32 %v7008_v18, %v3044_v50  ;;  %v3073_v45 = vmax.f32 %v3069_v37, 0.0 }
0x252b   :  { %v3062_v39 = vadd.f32 %v3058_v32, %v2945_v33 }
0x252c   :  { %v3068_v42 = vadd.f32 %v6360_v24, %v3060_v9  ;;  %v3071_v47 = vadd.f32 %v6360_v24, %v3063_v35 }
0x252d   :  { %v3070_v43 = vadd.f32 %v6360_v24, %v3062_v39 }
0x252e   :  { %v3072_v44 = vmax.f32 %v3068_v42, 0.0  ;;  %v3075_v48 = vmax.f32 %v3071_v47, 0.0 }
0x252f   :  { %v3074_v38 = vmax.f32 %v3070_v43, 0.0 }
0x2530   :  { %7021 = vmatprep.mubr.msk.f32.mxu0 %vm3087_vm3, %v3072_v44  ;;  %7031 = vmatprep.mubr.msk.f32.mxu1 %vm3087_vm3, %v3072_v44 }
0x2531   :  { %7022 = vmatmul.mubr.msk.f32.vlgmr.msra.gmra.mrb[38].mxu0 %vm3087_vm3, %v3073_v45  ;;  %7032 = vmatmul.mubr.msk.f32.vlgmr.msra.gmra.mrb[40].mxu1 %vm3087_vm3, %v3073_v45 }
0x2532   :  { %7038 = vmatpush3.msra.mxu0 %v3302_v4  ;;  %7024 = vmatprep.mubr.msk.f32.mxu0 %vm3087_vm3, %v3074_v38 }
0x2533   :  { %7034 = vmatprep.mubr.msk.f32.mxu1 %vm3087_vm3, %v3074_v38  ;;  %7053 = vmatprep.subr.msk.mxu0 %vm1883_vm6, %v3401_v10 }
0x2534   :  { %7046 = vmatpush3.msk.msra.mxu1 %vm1883_vm6, %v3404_v40 }
0x2535   :  { %7025 = vmatmul.mubr.msk.f32.gmra.mrb[40].mxu0 %vm3087_vm3, %v3075_v48  ;;  %7035 = vmatmul.mubr.msk.f32.gmra.mrb[42].mxu1 %vm3087_vm3, %v3075_v48 }
0x2536   :  { %7039 = vmatprep.mubr.msk.f32.mxu0 %vm2098_vm13, %v8221_v56  ;;  %7047 = vmatprep.mubr.msk.f32.mxu1 %vm1870_vm9, %v8290_v49  ;;  %v3620_v56 = vld [vmem:[#allocation2 + $0x280] sm:$0xff] }
0x2537   :  { %7061 = vmatprep.subr.mxu1 %v3620_v56 }
0x2539   :  { %7040 = vmatmul.mubr.msk.f32.vlgmr.msra.gmra.mrb[42].mxu0 %vm2098_vm13, %v8223_v57  ;;  %7048 = vmatmul.mubr.msk.f32.vlgmr.msra.gmra.mrb[44].mxu1 %vm1870_vm9, %v8299_v55  ;;  %v8332_v57 = vld [vmem:[#allocation2 + $0x290] sm:$0x7] }
0x253a   :  { %7054 = vmatpush3.msk.msra.mxu0 %vm1883_vm6, %v3401_v10  ;;  %7042 = vmatprep.mubr.msk.f32.mxu0 %vm2098_vm13, %v8225_v8 }
0x253b   :  { %7050 = vmatprep.mubr.msk.f32.mxu1 %vm1870_vm9, %v8311_v52  ;;  %7069 = vmatprep.subr.mxu0 %v3619_v54 }
0x253c   :  { %7062 = vmatpush3.msra.mxu1 %v3620_v56 }
0x253d   :  { %7043 = vmatmul.mubr.msk.f32.gmra.mrb[44].mxu0 %vm2098_vm13, %v8240_v27  ;;  %7051 = vmatmul.mubr.msk.f32.gmra.mrb[46].mxu1 %vm1870_vm9, %v8318_v51 }
0x253e   :  { %7055 = vmatprep.mubr.msk.f32.mxu0 %vm1870_vm9, %v8290_v49  ;;  %7077 = vmatprep.subr.msk.mxu1 %vm1883_vm6, %v8332_v57 }
0x2541   :  { %7056 = vmatmul.mubr.msk.f32.vlgmr.msra.gmra.mrb[46].mxu0 %vm1870_vm9, %v8299_v55 }
0x2542   :  { %7058 = vmatprep.mubr.msk.f32.mxu0 %vm1870_vm9, %v8311_v52  ;;  %7070 = vmatpush3.msra.mxu0 %v3619_v54 }
0x2545   :  { %7059 = vmatmul.mubr.msk.f32.gmra.mrb[48].mxu0 %vm1870_vm9, %v8318_v51 }
0x2604   :  { %v7023_v8 = vpop.f32.mrb[38].mxu0  ;;  %v7033_v59 = vpop.f32.mrb[40].mxu1 }
0x2605   :  { %v3275_v27 = vrot.slane %v7033_v59, 4  ;;  %v3168_v29 = vpop.f32.mrb[39].mxu0  ;;  %v3255_v58 = vpop.f32.mrb[41].mxu1 }
0x2606   :  { %v3274_v53 = vrot.slane %v3255_v58, 4 }
0x2608   :  { %v3280_v60 = vsel %vm3043_vm1, %v3274_v53, %v3275_v27  ;;  %v7026_v36 = vpop.f32.mrb[40].mxu0  ;;  %v7036_v62 = vpop.f32.mrb[42].mxu1 }
0x2609   :  { %v3287_v3 = vadd.f32 %v7023_v8, %v3280_v60  ;;  %v3277_v4 = vrot.slane %v7036_v62, 4  ;;  %v3178_v10 = vpop.f32.mrb[41].mxu0  ;;  %v3265_v40 = vpop.f32.mrb[43].mxu1 }
0x260a   :  { %v3276_v12 = vrot.slane %v3265_v40, 4 }
0x260b   :  { %v3281_v13 = vsel %vm3043_vm1, %v3277_v4, %v3274_v53  ;;  %v3295_v14 = vadd.f32 %v6371_v63, %v3287_v3 }
0x260c   :  { %v3282_v16 = vsel %vm1862_vm7, %v3281_v13, 0.0  ;;  %v3278_v17 = vsel %vm3043_vm1, %v3276_v12, %v3277_v4  ;;  %v3279_v26 = vsel %vm3043_vm1, %v3275_v27, %v3276_v12  ;;  %v7041_v18 = vpop.f32.mrb[42].mxu0  ;;  %v7049_v19 = vpop.f32.mrb[44].mxu1 }
0x260d   :  { %v3284_v20 = vsel %vm1864_vm8, %v3279_v26, 0.0  ;;  %v3289_v21 = vadd.f32 %v7026_v36, %v3278_v17  ;;  %v3299_v33 = vmax.f32 %v3295_v14, 0.0  ;;  %v3380_v23 = vadd.f32 %v7041_v18, %v6372_v46  ;;  %v3374_v11 = vpop.f32.mrb[43].mxu0  ;;  %v3485_v24 = vpop.f32.mrb[45].mxu1 }
0x260e   :  { %v3286_v25 = vadd.f32 %v3282_v16, %v3168_v29  ;;  %v3288_v28 = vadd.f32 %v3284_v20, %v3178_v10  ;;  %v3375_v47 = vadd.f32 %v6372_v46, %v3374_v11  ;;  %v6387_v20 = vld [vmem:[#allocation2 + $0x270] ss:$0 sm:$0xff] }
0x260f   :  { %v3394_v50 = vadd.f32 %v3380_v23, %v3299_v33  ;;  %v3297_v1 = vadd.f32 %v6371_v63, %v3289_v21 }
0x2610   :  { %v3294_v9 = vadd.f32 %v6371_v63, %v3286_v25  ;;  %v7044_v32 = vpop.f32.mrb[44].mxu0  ;;  %v3296_v35 = vadd.f32 %v6371_v63, %v3288_v28  ;;  %v7052_v37 = vpop.f32.mrb[46].mxu1 }
0x2611   :  { %v3398_v39 = vmax.f32 %v3394_v50, 0.0  ;;  %v3301_v42 = vmax.f32 %v3297_v1, 0.0  ;;  %v3390_v43 = vadd.f32 %v7044_v32, %v6372_v46  ;;  %v3384_v44 = vpop.f32.mrb[45].mxu0  ;;  %v3495_v45 = vpop.f32.mrb[47].mxu1 }
0x2612   :  { %v3298_v38 = vmax.f32 %v3294_v9, 0.0  ;;  %v3300_v48 = vmax.f32 %v3296_v35, 0.0  ;;  %v3385_v54 = vadd.f32 %v6372_v46, %v3384_v44 }
0x2613   :  { %v3396_v56 = vadd.f32 %v3390_v43, %v3301_v42  ;;  %v5005_v29 = vmul.f32 %v8141_v31, %v3398_v39 }
0x2614   :  { %v3393_v8 = vadd.f32 %v3375_v47, %v3298_v38  ;;  %v3395_v59 = vadd.f32 %v3385_v54, %v3300_v48  ;;  %v7057_v27 = vpop.f32.mrb[46].mxu0 }
0x2615   :  { %v3400_v58 = vmax.f32 %v3396_v56, 0.0  ;;  %v3592_v53 = vrot.slane %v7057_v27, 7  ;;  %v3572_v60 = vpop.f32.mrb[47].mxu0  ;;  %v8355_v46 = vrot.slane %v5005_v29, %v7734_v7  ;;  %v3935_v27 = vld [vmem:[#allocation2 + $0x2a8] sm:$0xff] }
0x2616   :  { %v3397_v36 = vmax.f32 %v3393_v8, 0.0  ;;  %v3399_v62 = vmax.f32 %v3395_v59, 0.0  ;;  %v3591_v63 = vrot.slane %v3572_v60, 7  ;;  %v3934_v59 = vld [vmem:[#allocation2 + $0x2a0] sm:$0xff]  ;;  %7085 = vmatprep.subr.mxu0 %v3935_v27 }
0x2617   :  { %v5013_v3 = vmul.f32 %v8144_v61, %v3400_v58 }
0x2618   :  { %v4937_v4 = vmul.f32 %v8141_v31, %v3397_v36  ;;  %v4938_v10 = vmul.f32 %v8144_v61, %v3399_v62  ;;  %v3597_v40 = vsel %vm2062_vm10, %v3591_v63, %v3592_v53  ;;  %v7060_v12 = vpop.f32.mrb[48].mxu0  ;;  %v6396_v62 = vld [vmem:[#allocation2 + $0x288] ss:$0 sm:$0xff] }
0x2619   :  { %v8358_v13 = vrot.slane %v5013_v3, %v7734_v7  ;;  %v3604_v14 = vadd.f32 %v7049_v19, %v3597_v40  ;;  %v3594_v16 = vrot.slane %v7060_v12, 7  ;;  %v3582_v17 = vpop.f32.mrb[49].mxu0  ;;  %v6397_v40 = vld [vmem:[#allocation2 + $0x298] ss:$0 sm:$0xff] }
0x261a   :  { %v4939_v26 = vcombine.high %v4937_v4, %v7644_v0  ;;  %v8362_v18 = vrot.slane %v4937_v4, %v7734_v7  ;;  %v4954_v31 = vcombine.high %v4938_v10, %v7644_v0  ;;  %v8366_v61 = vrot.slane %v4938_v10, %v7734_v7 }
0x261b   :  { %v3593_v21 = vrot.slane %v3582_v17, 7  ;;  %v3598_v33 = vsel %vm2062_vm10, %v3594_v16, %v3591_v63  ;;  %v5021_v19 = vcombine.low %v8355_v46, %v8358_v13  ;;  %v3612_v32 = vadd.f32 %v6387_v20, %v3604_v14 }
0x261c   :  { %v8373_v23 = vrot.slane %v4939_v26, %v7734_v7  ;;  %v8376_v11 = vrot.slane %v4954_v31, %v7734_v7  ;;  %v4969_v25 = vcombine.low %v8362_v18, %v8366_v61  ;;  %v3599_v28 = vsel %vm1854_vm11, %v3598_v33, 0.0 }
0x261d   :  { %v3603_v50 = vadd.f32 %v3599_v28, %v3485_v24  ;;  %v3595_v1 = vsel %vm2062_vm10, %v3593_v21, %v3594_v16  ;;  %v3596_v9 = vsel %vm2062_vm10, %v3592_v53, %v3593_v21  ;;  %v4970_v44 = vcombine.high %v8362_v18, %v8366_v61 }
0x261e   :  { %v3606_v35 = vadd.f32 %v7052_v37, %v3595_v1  ;;  %v3601_v39 = vsel %vm1856_vm12, %v3596_v9, 0.0  ;;  %v4985_v38 = vcombine.low %v8373_v23, %v8376_v11  ;;  %v4986_v24 = vcombine.high %v8373_v23, %v8376_v11  ;;  %v5592_v11 = vld [vmem:[#allocation2 + $0x380] sm:$0xff] }
0x261f   :  { %v3611_v42 = vadd.f32 %v6387_v20, %v3603_v50  ;;  %v3605_v43 = vadd.f32 %v3601_v39, %v3495_v45  ;;  %v3616_v54 = vmax.f32 %v3612_v32, 0.0  ;;  %v5022_v37 = vcombine.high %v8355_v46, %v8358_v13 }
0x2620   :  { %v3614_v56 = vadd.f32 %v6387_v20, %v3606_v35 }
0x2621   :  { %v3615_v47 = vmax.f32 %v3611_v42, 0.0  ;;  %v3613_v48 = vadd.f32 %v6387_v20, %v3605_v43 }
0x2622   :  { %v3618_v45 = vmax.f32 %v3614_v56, 0.0 }
0x2623   :  { %v3617_v8 = vmax.f32 %v3613_v48, 0.0  ;;  %7063 = vmatprep.mubr.msk.f32.mxu1 %vm2098_vm13, %v3615_v47  ;;  %7071 = vmatprep.mubr.msk.f32.mxu0 %vm2098_vm13, %v3615_v47 }
0x2624   :  { %7064 = vmatmul.mubr.msk.f32.vlgmr.msra.gmra.mrb[48].mxu1 %vm2098_vm13, %v3616_v54  ;;  %7072 = vmatmul.mubr.msk.f32.vlgmr.msra.gmra.mrb[50].mxu0 %vm2098_vm13, %v3616_v54 }
0x2625   :  { %7066 = vmatprep.mubr.msk.f32.mxu1 %vm2098_vm13, %v3617_v8  ;;  %7074 = vmatprep.mubr.msk.f32.mxu0 %vm2098_vm13, %v3617_v8 }
0x2626   :  { %7078 = vmatpush3.msk.msra.mxu1 %vm1883_vm6, %v8332_v57  ;;  %7086 = vmatpush3.msra.mxu0 %v3935_v27  ;;  %vm5336_vm6 = vcmask 1041409  }
0x2627   :  { %7093 = vmatprep.subr.mxu1 %v3934_v59 }
0x2628   :  { %7067 = vmatmul.mubr.msk.f32.gmra.mrb[50].mxu1 %vm2098_vm13, %v3618_v45  ;;  %7075 = vmatmul.mubr.msk.f32.gmra.mrb[52].mxu0 %vm2098_vm13, %v3618_v45 }
0x2629   :  { %7079 = vmatprep.mubr.msk.f32.mxu1 %vm1870_vm9, %v8290_v49 }
0x262c   :  { %7080 = vmatmul.mubr.msk.f32.vlgmr.msra.gmra.mrb[52].mxu1 %vm1870_vm9, %v8299_v55 }
0x262d   :  { %7082 = vmatprep.mubr.msk.f32.mxu1 %vm1870_vm9, %v8311_v52  ;;  %7094 = vmatpush3.msra.mxu1 %v3934_v59 }
0x2630   :  { %7083 = vmatmul.mubr.msk.f32.gmra.mrb[54].mxu1 %vm1870_vm9, %v8318_v51  ;;  %vm8757_vm9 = vmmov 0  }
0x26f7   :  { %v7065_v57 = vpop.f32.mrb[48].mxu1  ;;  %v7073_v29 = vpop.f32.mrb[50].mxu0 }
0x26f8   :  { %v3805_v58 = vrot.slane %v7073_v29, 7  ;;  %v3700_v53 = vpop.f32.mrb[49].mxu1  ;;  %v3785_v49 = vpop.f32.mrb[51].mxu0 }
0x26f9   :  { %v3804_v60 = vrot.slane %v3785_v49, 7 }
0x26fb   :  { %v3810_v55 = vsel %vm2062_vm10, %v3804_v60, %v3805_v58  ;;  %v7068_v36 = vpop.f32.mrb[50].mxu1  ;;  %v7076_v52 = vpop.f32.mrb[52].mxu0 }
0x26fc   :  { %v3817_v63 = vadd.f32 %v7065_v57, %v3810_v55  ;;  %v3807_v51 = vrot.slane %v7076_v52, 7  ;;  %v3710_v3 = vpop.f32.mrb[51].mxu1  ;;  %v3795_v4 = vpop.f32.mrb[53].mxu0  ;;  %v4147_v55 = vld [vmem:[#allocation2 + $0x2b8] sm:$0xff] }
0x26fd   :  { %v3806_v10 = vrot.slane %v3795_v4, 7  ;;  %7109 = vmatprep.subr.mxu1 %v4147_v55 }
0x26fe   :  { %v3811_v12 = vsel %vm2062_vm10, %v3807_v51, %v3804_v60  ;;  %v3825_v14 = vadd.f32 %v6396_v62, %v3817_v63 }
0x26ff   :  { %v3812_v16 = vsel %vm1854_vm11, %v3811_v12, 0.0  ;;  %v3808_v17 = vsel %vm2062_vm10, %v3806_v10, %v3807_v51  ;;  %v3809_v26 = vsel %vm2062_vm10, %v3805_v58, %v3806_v10  ;;  %v7081_v31 = vpop.f32.mrb[52].mxu1  ;;  %vm5338_vm10 = vcmask 80896  }
0x2700   :  { %v3814_v20 = vsel %vm1856_vm12, %v3809_v26, 0.0  ;;  %v3819_v21 = vadd.f32 %v7068_v36, %v3808_v17  ;;  %v3829_v33 = vmax.f32 %v3825_v14, 0.0  ;;  %v3913_v28 = vadd.f32 %v7081_v31, %v6397_v40  ;;  %v3907_v50 = vpop.f32.mrb[53].mxu1  ;;  %v4148_v36 = vld [vmem:[#allocation2 + $0x2c0] sm:$0xff] }
0x2701   :  { %v3816_v1 = vadd.f32 %v3812_v16, %v3700_v53  ;;  %v3818_v9 = vadd.f32 %v3814_v20, %v3710_v3  ;;  %v3908_v42 = vadd.f32 %v6397_v40, %v3907_v50  ;;  %7101 = vmatprep.subr.mxu0 %v4148_v36  ;;  %v6411_v20 = vld [vmem:[#allocation2 + $0x2b0] ss:$0 sm:$0xff]  ;;  %vm5081_vm11 = vcmask 293888  }
0x2702   :  { %v3927_v32 = vadd.f32 %v3913_v28, %v3829_v33  ;;  %v3827_v35 = vadd.f32 %v6396_v62, %v3819_v21  ;;  %vm5083_vm12 = vcmask 392192  }
0x2703   :  { %v3824_v39 = vadd.f32 %v6396_v62, %v3816_v1  ;;  %v7084_v43 = vpop.f32.mrb[54].mxu1  ;;  %v3826_v47 = vadd.f32 %v6396_v62, %v3818_v9 }
0x2704   :  { %v3831_v48 = vmax.f32 %v3827_v35, 0.0  ;;  %v3923_v54 = vadd.f32 %v7084_v43, %v6397_v40  ;;  %v3917_v56 = vpop.f32.mrb[55].mxu1  ;;  %v8430_v53 = vmax.f32 %v3927_v32, 0.0 }
0x2705   :  { %v3828_v8 = vmax.f32 %v3824_v39, 0.0  ;;  %v3830_v45 = vmax.f32 %v3826_v47, 0.0  ;;  %v3918_v59 = vadd.f32 %v6397_v40, %v3917_v56 }
0x2706   :  { %v3929_v27 = vadd.f32 %v3923_v54, %v3831_v48 }
0x2707   :  { %v3926_v57 = vadd.f32 %v3908_v42, %v3828_v8  ;;  %v3928_v29 = vadd.f32 %v3918_v59, %v3830_v45  ;;  %v4368_v45 = vld [vmem:[#allocation2 + $0x2d0] sm:$0xff]  ;;  %v4369_v59 = vld [vmem:[#allocation2 + $0x2d8] sm:$0xff] }
0x2708   :  { %v8444_v60 = vmax.f32 %v3929_v27, 0.0  ;;  %v5261_v27 = vld [vmem:[#allocation2 + $0x320] sm:$0x1] }
0x2709   :  { %v8426_v58 = vmax.f32 %v3926_v57, 0.0  ;;  %v8428_v49 = vmax.f32 %v3928_v29, 0.0  ;;  %7432 = vpush %v5261_v27 }
0x270b   :  { %7087 = vmatprep.mubr.msk.f32.mxu0 %vm2098_vm13, %v8426_v58  ;;  %7095 = vmatprep.mubr.msk.f32.mxu1 %vm2098_vm13, %v8426_v58 }
0x270c   :  { %7088 = vmatmul.mubr.msk.f32.vlgmr.msra.gmra.mrb[54].mxu0 %vm2098_vm13, %v8430_v53  ;;  %7096 = vmatmul.mubr.msk.f32.vlgmr.msra.gmra.mrb[56].mxu1 %vm2098_vm13, %v8430_v53 }
0x270d   :  { %7090 = vmatprep.mubr.msk.f32.mxu0 %vm2098_vm13, %v8428_v49  ;;  %7098 = vmatprep.mubr.msk.f32.mxu1 %vm2098_vm13, %v8428_v49 }
0x270e   :  { %7110 = vmatpush3.msra.mxu1 %v4147_v55  ;;  %7102 = vmatpush3.msra.mxu0 %v4148_v36 }
0x270f   :  { %7125 = vmatprep.subr.mxu1 %v4368_v45  ;;  %7117 = vmatprep.subr.mxu0 %v4369_v59 }
0x2710   :  { %7091 = vmatmul.mubr.msk.f32.gmra.mrb[56].mxu0 %vm2098_vm13, %v8444_v60  ;;  %7099 = vmatmul.mubr.msk.f32.gmra.mrb[58].mxu1 %vm2098_vm13, %v8444_v60 }
0x273a   :  { %s7433_s1 = spop %7432 }
0x27df   :  { %v7089_v52 = vpop.f32.mrb[54].mxu0  ;;  %v7097_v62 = vpop.f32.mrb[56].mxu1 }
0x27e0   :  { %v4120_v63 = vrot.slane %v7097_v62, 6  ;;  %v4015_v51 = vpop.f32.mrb[55].mxu0  ;;  %v4100_v3 = vpop.f32.mrb[57].mxu1 }
0x27e1   :  { %v4119_v4 = vrot.slane %v4100_v3, 6 }
0x27e3   :  { %v4125_v10 = vsel %vm2600_vm14, %v4119_v4, %v4120_v63  ;;  %v7092_v40 = vpop.f32.mrb[56].mxu0  ;;  %v7100_v12 = vpop.f32.mrb[58].mxu1 }
0x27e4   :  { %v4132_v14 = vadd.f32 %v7089_v52, %v4125_v10  ;;  %v4122_v16 = vrot.slane %v7100_v12, 6  ;;  %v4025_v17 = vpop.f32.mrb[57].mxu0  ;;  %v4110_v26 = vpop.f32.mrb[59].mxu1 }
0x27e5   :  { %v4121_v31 = vrot.slane %v4110_v26, 6 }
0x27e6   :  { %v4126_v21 = vsel %vm2600_vm14, %v4122_v16, %v4119_v4  ;;  %v4140_v35 = vadd.f32 %v6411_v20, %v4132_v14 }
0x27e7   :  { %v4127_v33 = vsel %vm1858_vm15, %v4126_v21, 0.0  ;;  %v4123_v28 = vsel %vm2600_vm14, %v4121_v31, %v4122_v16  ;;  %v4124_v50 = vsel %vm2600_vm14, %v4120_v63, %v4121_v31  ;;  %v6420_v63 = vld [vmem:[#allocation2 + $0x2c8] ss:$0 sm:$0xff] }
0x27e8   :  { %v4131_v1 = vadd.f32 %v4127_v33, %v4015_v51  ;;  %v4129_v9 = vsel %vm1860_vm0, %v4124_v50, 0.0  ;;  %v4134_v32 = vadd.f32 %v7092_v40, %v4123_v28  ;;  %v4144_v48 = vmax.f32 %v4140_v35, 0.0 }
0x27e9   :  { %v4133_v39 = vadd.f32 %v4129_v9, %v4025_v17 }
0x27ea   :  { %v4139_v42 = vadd.f32 %v6411_v20, %v4131_v1  ;;  %v4142_v56 = vadd.f32 %v6411_v20, %v4134_v32 }
0x27eb   :  { %v4141_v43 = vadd.f32 %v6411_v20, %v4133_v39 }
0x27ec   :  { %v4143_v47 = vmax.f32 %v4139_v42, 0.0  ;;  %v4146_v8 = vmax.f32 %v4142_v56, 0.0 }
0x27ed   :  { %v4145_v54 = vmax.f32 %v4141_v43, 0.0 }
0x27ee   :  { %7103 = vmatprep.mubr.msk.f32.mxu0 %vm2098_vm13, %v4143_v47  ;;  %7111 = vmatprep.mubr.msk.f32.mxu1 %vm2098_vm13, %v4143_v47 }
0x27ef   :  { %7104 = vmatmul.mubr.msk.f32.vlgmr.msra.gmra.mrb[58].mxu0 %vm2098_vm13, %v4144_v48  ;;  %7112 = vmatmul.mubr.msk.f32.vlgmr.msra.gmra.mrb[60].mxu1 %vm2098_vm13, %v4144_v48 }
0x27f0   :  { %7106 = vmatprep.mubr.msk.f32.mxu0 %vm2098_vm13, %v4145_v54  ;;  %7114 = vmatprep.mubr.msk.f32.mxu1 %vm2098_vm13, %v4145_v54 }
0x27f1   :  { %7126 = vmatpush3.msra.mxu1 %v4368_v45  ;;  %7118 = vmatpush3.msra.mxu0 %v4369_v59 }
0x27f3   :  { %7107 = vmatmul.mubr.msk.f32.gmra.mrb[60].mxu0 %vm2098_vm13, %v4146_v8  ;;  %7115 = vmatmul.mubr.msk.f32.gmra.mrb[62].mxu1 %vm2098_vm13, %v4146_v8 }
0x28c2   :  { %v7105_v57 = vpop.f32.mrb[58].mxu0  ;;  %v7113_v29 = vpop.f32.mrb[60].mxu1 }
0x28c3   :  { %v4333_v55 = vrot.slane %v7113_v29, 6  ;;  %v4228_v36 = vpop.f32.mrb[59].mxu0  ;;  %v4313_v52 = vpop.f32.mrb[61].mxu1 }
0x28c4   :  { %v4332_v62 = vrot.slane %v4313_v52, 6  ;;  %v5296_v29 = vpop.permute.xlu1 %5295  ;;  %v4581_v52 = vld [vmem:[#allocation2 + $0x2e8] sm:$0xff] }
0x28c6   :  { %v4338_v51 = vsel %vm2600_vm14, %v4332_v62, %v4333_v55  ;;  %v7108_v3 = vpop.f32.mrb[60].mxu0  ;;  %v7116_v4 = vpop.f32.mrb[62].mxu1 }
0x28c7   :  { %v4345_v10 = vadd.f32 %v7105_v57, %v4338_v51  ;;  %v4335_v40 = vrot.slane %v7116_v4, 6  ;;  %v4238_v12 = vpop.f32.mrb[61].mxu0  ;;  %v4323_v14 = vpop.f32.mrb[63].mxu1  ;;  %v5300_v51 = vadd.f32 %v5296_v29, %v8096_v6 }
0x28c8   :  { %v4334_v16 = vrot.slane %v4323_v14, 6  ;;  %v5315_v4 = vpop.permute.xlu1 %5314 }
0x28c9   :  { %v4353_v17 = vadd.f32 %v6420_v63, %v4345_v10  ;;  %v4339_v26 = vsel %vm2600_vm14, %v4335_v40, %v4332_v62  ;;  %v5319_v6 = vadd.f32 %v5315_v4, %v5300_v51 }
0x28ca   :  { %v4340_v31 = vsel %vm1858_vm15, %v4339_v26, 0.0  ;;  %v4336_v20 = vsel %vm2600_vm14, %v4334_v16, %v4335_v40  ;;  %v4337_v21 = vsel %vm2600_vm14, %v4333_v55, %v4334_v16  ;;  %v5294_v55 = vpop.permute.xlu0 %5293  ;;  %v4805_v40 = vld [vmem:[#allocation2 + $0x308] sm:$0xff]  ;;  %vm5085_vm14 = vcmask 490496  }
0x28cb   :  { %v4344_v33 = vadd.f32 %v4340_v31, %v4228_v36  ;;  %v4342_v28 = vsel %vm1860_vm0, %v4337_v21, 0.0  ;;  %v4347_v50 = vadd.f32 %v7108_v3, %v4336_v20  ;;  %v4357_v1 = vmax.f32 %v4353_v17, 0.0 }
0x28cc   :  { %v4346_v9 = vadd.f32 %v4342_v28, %v4238_v12  ;;  %v5299_v3 = vadd.f32 %v5294_v55, %v8098_v30  ;;  %v5322_v30 = vstv %s7433_s1  ;;  %vm5089_vm15 = vcmask 687104  }
0x28cd   :  { %v4352_v32 = vadd.f32 %v6420_v63, %v4344_v33  ;;  %v4355_v35 = vadd.f32 %v6420_v63, %v4347_v50  ;;  %v4361_v43 = vadd.f32 %v4357_v1, %v8430_v53  ;;  %v4583_v53 = vld [vmem:[#allocation2 + $0x2f8] sm:$0xff]  ;;  %v5325_v16 = vadd.f32 %v5322_v30, %v5319_v6 }
0x28ce   :  { %v4354_v39 = vadd.f32 %v6420_v63, %v4346_v9  ;;  %v4588_v57 = vrot.slane %v4583_v53, 4  ;;  %v5313_v10 = vpop.permute.xlu0 %5312  ;;  %vm5092_vm0 = vcmask 883712  }
0x28cf   :  { %v4356_v42 = vmax.f32 %v4352_v32, 0.0  ;;  %v4359_v48 = vmax.f32 %v4355_v35, 0.0  ;;  %v8487_v45 = vmax.f32 %v4361_v43, 0.0  ;;  %v5318_v12 = vadd.f32 %v5313_v10, %v5299_v3 }
0x28d0   :  { %v4358_v47 = vmax.f32 %v4354_v39, 0.0  ;;  %v5335_v17 = vrot.slane %v5325_v16, 7  ;;  %v5420_v16 = vld [vmem:[#allocation2 + $0x3f8] sm:$0xff] }
0x28d1   :  { %v4360_v54 = vadd.f32 %v4356_v42, %v8426_v58  ;;  %v4363_v27 = vadd.f32 %v4359_v48, %v8444_v60  ;;  %v5324_v14 = vadd.f32 %v5322_v30, %v5318_v12  ;;  %v5417_v30 = vld [vmem:[#allocation2 + $0x3e0] sm:$0xff] }
0x28d2   :  { %v4362_v56 = vadd.f32 %v4358_v47, %v8428_v49  ;;  %v4582_v49 = vld [vmem:[#allocation2 + $0x2f0] sm:$0xff]  ;;  %v6429_v47 = vld [vmem:[#allocation2 + $0x2e0] ss:$0 sm:$0xff] }
0x28d3   :  { %v8485_v8 = vmax.f32 %v4360_v54, 0.0  ;;  %v8504_v58 = vmax.f32 %v4363_v27, 0.0  ;;  %v4587_v60 = vrot.slane %v4582_v49, 4  ;;  %v7358_v63 = vpack.c.bf16 %v4582_v49, %v4581_v52  ;;  %v5327_v52 = vld [vmem:[#allocation2 + $0x330] sm:$0x3] }
0x28d4   :  { %v8489_v59 = vmax.f32 %v4362_v56, 0.0  ;;  %v5337_v26 = vsel %vm5336_vm6, %v5335_v17, %v5324_v14 }
0x28d5   :  { %7119 = vmatprep.mubr.msk.f32.mxu0 %vm2098_vm13, %v8485_v8  ;;  %7127 = vmatprep.mubr.msk.f32.mxu1 %vm2098_vm13, %v8485_v8  ;;  %v4589_v36 = vsel %vm3082_vm4, %v4587_v60, %v4588_v57 }
0x28d6   :  { %7120 = vmatmul.mubr.msk.f32.vlgmr.msra.gmra.mrb[62].mxu0 %vm2098_vm13, %v8487_v45  ;;  %7128 = vmatmul.mubr.msk.f32.vlgmr.msra.gmra.mrb[64].mxu1 %vm2098_vm13, %v8487_v45  ;;  %v7352_v62 = vpack.c.bf16 %v4588_v57, %v4589_v36  ;;  %v5326_v36 = vld [vmem:[#allocation2 + $0x328] sm:$0xff] }
0x28d7   :  { %7122 = vmatprep.mubr.msk.f32.mxu0 %vm2098_vm13, %v8489_v59  ;;  %7130 = vmatprep.mubr.msk.f32.mxu1 %vm2098_vm13, %v8489_v59  ;;  %v7365_v10 = vpack.c.bf16 %v5327_v52, %v5326_v36  ;;  %v5584_v36 = vld [vmem:[#allocation2 + $0x340] sm:$0xff]  ;;  %v5585_v52 = vld [vmem:[#allocation2 + $0x348] sm:$0xff] }
0x28d8   :  { %7354 = vmatprep.subr.msk.bf16.mxu0 %vm8248_vm5, %v7352_v62  ;;  %7360 = vmatprep.subr.msk.bf16.mxu1 %vm8248_vm5, %v7358_v63 }
0x28d9   :  { %7357 = vmatpush3.bf16.msk.msra.mxu0 %vm8248_vm5, %v7352_v62  ;;  %7363 = vmatpush3.bf16.msk.msra.mxu1 %vm8248_vm5, %v7358_v63  ;;  %vm5094_vm5 = vcmask 982016  }
0x28da   :  { %7123 = vmatmul.mubr.msk.f32.gmra.mrb[64].mxu0 %vm2098_vm13, %v8504_v58  ;;  %7131 = vmatmul.mubr.msk.f32.gmra.mrb[66].mxu1 %vm2098_vm13, %v8504_v58 }
0x28db   :  { %7364 = vmatprep.subr.bf16.mxu1 %v7648_v15  ;;  %7153 = vmatprep.subr.mxu0 %v4805_v40 }
0x29a9   :  { %v7121_v31 = vpop.f32.mrb[62].mxu0  ;;  %v7129_v20 = vpop.f32.mrb[64].mxu1 }
0x29aa   :  { %v4554_v21 = vrot.slane %v7129_v20, 4  ;;  %v4449_v34 = vpop.f32.mrb[63].mxu0  ;;  %v4534_v33 = vpop.f32.mrb[65].mxu1 }
0x29ab   :  { %v4553_v28 = vrot.slane %v4534_v33, 4 }
0x29ad   :  { %v4559_v50 = vsel %vm3043_vm1, %v4553_v28, %v4554_v21  ;;  %v7124_v1 = vpop.f32.mrb[64].mxu0  ;;  %v7132_v9 = vpop.f32.mrb[66].mxu1 }
0x29ae   :  { %v4566_v32 = vadd.f32 %v7121_v31, %v4559_v50  ;;  %v4556_v35 = vrot.slane %v7132_v9, 4  ;;  %v4459_v39 = vpop.f32.mrb[65].mxu0  ;;  %v4544_v42 = vpop.f32.mrb[67].mxu1  ;;  %v7655_v9 = vmov 1934713408  }
0x29af   :  { %v4555_v43 = vrot.slane %v4544_v42, 4 }
0x29b0   :  { %v4560_v48 = vsel %vm3043_vm1, %v4556_v35, %v4553_v28  ;;  %v4574_v57 = vadd.f32 %v6429_v47, %v4566_v32  ;;  %v4972_v32 = vunpack.c.l.s4 %v7655_v9 }
0x29b1   :  { %v4561_v54 = vsel %vm1862_vm7, %v4560_v48, 0.0  ;;  %v4557_v56 = vsel %vm3043_vm1, %v4555_v43, %v4556_v35  ;;  %v4558_v27 = vsel %vm3043_vm1, %v4554_v21, %v4555_v43  ;;  %v6441_v48 = vld [vmem:[#allocation2 + $0x310] ss:$0 sm:$0xff] }
0x29b2   :  { %v4565_v49 = vadd.f32 %v4561_v54, %v4449_v34  ;;  %v4563_v53 = vsel %vm1864_vm8, %v4558_v27, 0.0  ;;  %v4568_v60 = vadd.f32 %v7124_v1, %v4557_v56  ;;  %v4578_v51 = vmax.f32 %v4574_v57, 0.0  ;;  %v6440_v1 = vld [vmem:[#allocation2 + $0x300] ss:$0 sm:$0xff]  ;;  %v6446_v27 = vld [vmem:[#allocation2 + $0x338] ss:$0 sm:$0xff] }
0x29b3   :  { %v4567_v29 = vadd.f32 %v4563_v53, %v4459_v39 }
0x29b4   :  { %v4573_v55 = vadd.f32 %v6429_v47, %v4565_v49  ;;  %v4576_v4 = vadd.f32 %v6429_v47, %v4568_v60 }
0x29b5   :  { %v4575_v62 = vadd.f32 %v6429_v47, %v4567_v29 }
0x29b6   :  { %v4577_v63 = vmax.f32 %v4573_v55, 0.0  ;;  %v4580_v6 = vmax.f32 %v4576_v4, 0.0  ;;  %v4973_v55 = vunpack.c.0.s8 %v4972_v32  ;;  %v5097_v32 = vpop.permute.xlu1 %5096 }
0x29b7   :  { %v4579_v3 = vmax.f32 %v4575_v62, 0.0 }
0x29b8   :  { %7137 = vmatprep.mubr.msk.f32.mxu0 %vm3087_vm3, %v4577_v63  ;;  %7147 = vmatprep.mubr.msk.f32.mxu1 %vm3087_vm3, %v4577_v63 }
0x29b9   :  { %7138 = vmatmul.mubr.msk.f32.vlgmr.msra.gmra.mrb[66].mxu0 %vm3087_vm3, %v4578_v51  ;;  %7148 = vmatmul.mubr.msk.f32.vlgmr.msra.gmra.mrb[68].mxu1 %vm3087_vm3, %v4578_v51 }
0x29ba   :  { %7154 = vmatpush3.msra.mxu0 %v4805_v40  ;;  %7140 = vmatprep.mubr.msk.f32.mxu0 %vm3087_vm3, %v4579_v3  ;;  %v5416_v40 = vld [vmem:[#allocation2 + $0x3d8] sm:$0xff] }
0x29bb   :  { %7150 = vmatprep.mubr.msk.f32.mxu1 %vm3087_vm3, %v4579_v3  ;;  %7367 = vmatpush3.bf16.msk.msra.mxu1 %vm7723_vm2, %v7365_v10  ;;  %vm5258_vm2 = vcmask 31744  }
0x29bc   :  { %7168 = vmatprep.subr.mxu1 %v7644_v0  ;;  %7368 = vmatprep.subr.bf16.mxu0 %v7648_v15 }
0x29bd   :  { %7141 = vmatmul.mubr.msk.f32.gmra.mrb[68].mxu0 %vm3087_vm3, %v4580_v6  ;;  %7151 = vmatmul.mubr.msk.f32.gmra.mrb[70].mxu1 %vm3087_vm3, %v4580_v6 }
0x29be   :  { %7155 = vmatprep.mubr.msk.f32.mxu0 %vm2098_vm13, %v8485_v8  ;;  %7165 = vmatprep.mubr.msk.f32.mxu1 %vm8757_vm9, %v7644_v0  ;;  %v5415_v8 = vld [vmem:[#allocation2 + $0x3d0] sm:$0xff] }
0x29bf   :  { %v7369_v12 = vpack.c.bf16 %v5416_v40, %v5415_v8 }
0x29c1   :  { %7156 = vmatmul.mubr.msk.f32.vlgmr.msra.gmra.mrb[70].mxu0 %vm2098_vm13, %v8487_v45  ;;  %7166 = vmatmul.mubr.msk.f32.vlgmr.msra.gmra.mrb[72].mxu1 %vm5338_vm10, %v5337_v26  ;;  %v5418_v45 = vld [vmem:[#allocation2 + $0x3e8] sm:$0xff]  ;;  %vm6108_vm10 = vcmask 48128  }
0x29c2   :  { %7158 = vmatprep.mubr.msk.f32.mxu0 %vm2098_vm13, %v8489_v59  ;;  %7170 = vmatprep.mubr.msk.f32.mxu1 %vm8757_vm9, %v7644_v0  ;;  %v7372_v14 = vpack.c.bf16 %v5418_v45, %v5417_v30  ;;  %v5419_v59 = vld [vmem:[#allocation2 + $0x3f0] sm:$0xff] }
0x29c3   :  { %7169 = vmatpush3.msk.msra.mxu1 %vm3082_vm4, %v5507_v2  ;;  %7370 = vmatpush1.bf16.msra.mxu0 %v7369_v12  ;;  %v7375_v17 = vpack.c.bf16 %v5420_v16, %v5419_v59  ;;  %v7393_v12 = vpack.c.bf16 %v5585_v52, %v5584_v36  ;;  %v8576_v16 = vsub.s32 %v4973_v55, %v7731_v5 }
0x29c4   :  { %7392 = vmatprep.subr.bf16.mxu1 %v7648_v15  ;;  %7371 = vmatprep.subr.bf16.mxu0 %v7648_v15 }
0x29c5   :  { %7159 = vmatmul.mubr.msk.f32.gmra.mrb[72].mxu0 %vm2098_vm13, %v8504_v58  ;;  %v8583_v5 = vrot.slane %v5021_v19, %v8576_v16  ;;  %v8596_v19 = vrot.slane %v4970_v44, %v8576_v16  ;;  %v8611_v44 = vrot.slane %v4985_v38, %v8576_v16 }
0x29c7   :  { %7373 = vmatpush1.bf16.msra.mxu0 %v7372_v14  ;;  %v5030_v36 = vcombine.high %v8583_v5, %v7644_v0 }
0x29c8   :  { %7374 = vmatprep.subr.bf16.mxu0 %v7648_v15 }
0x29cb   :  { %7376 = vmatpush1.bf16.msra.mxu0 %v7375_v17  ;;  %v5587_v17 = vld [vmem:[#allocation2 + $0x358] sm:$0xff] }
0x29cc   :  { %7377 = vmatprep.subr.bf16.mxu0 %v7648_v15  ;;  %v7396_v9 = vpack.c.bf16 %v5587_v17, %v5586_v22  ;;  %v8634_v22 = vcombine.high %v8611_v44, %v7644_v0 }
0x2a8c   :  { %v7139_v58 = vpop.f32.mrb[66].mxu0  ;;  %v7149_v26 = vpop.f32.mrb[68].mxu1 }
0x2a8d   :  { %v4778_v31 = vrot.slane %v7149_v26, 4  ;;  %v4671_v20 = vpop.f32.mrb[67].mxu0  ;;  %v4758_v21 = vpop.f32.mrb[69].mxu1 }
0x2a8e   :  { %v4777_v34 = vrot.slane %v4758_v21, 4 }
0x2a90   :  { %v4783_v33 = vsel %vm3043_vm1, %v4777_v34, %v4778_v31  ;;  %v7142_v28 = vpop.f32.mrb[68].mxu0  ;;  %v7152_v50 = vpop.f32.mrb[70].mxu1 }
0x2a91   :  { %v4790_v35 = vadd.f32 %v7139_v58, %v4783_v33  ;;  %v4780_v39 = vrot.slane %v7152_v50, 4  ;;  %v4681_v42 = vpop.f32.mrb[69].mxu0  ;;  %v4768_v43 = vpop.f32.mrb[71].mxu1 }
0x2a92   :  { %v4779_v47 = vrot.slane %v4768_v43, 4  ;;  %v5589_v43 = vld [vmem:[#allocation2 + $0x368] sm:$0xff] }
0x2a93   :  { %v4784_v54 = vsel %vm3043_vm1, %v4780_v39, %v4777_v34  ;;  %v4798_v56 = vadd.f32 %v6440_v1, %v4790_v35 }
0x2a94   :  { %v4785_v49 = vsel %vm1862_vm7, %v4784_v54, 0.0  ;;  %v4781_v53 = vsel %vm3043_vm1, %v4779_v47, %v4780_v39  ;;  %v4782_v60 = vsel %vm3043_vm1, %v4778_v31, %v4779_v47  ;;  %v7157_v57 = vpop.f32.mrb[70].mxu0  ;;  %v5410_v29 = vpop.f32.mrb[72].mxu1  ;;  %v8589_v39 = vrot.slane %v4969_v25, %v8576_v16 }
0x2a95   :  { %v4787_v62 = vsel %vm1864_vm8, %v4782_v60, 0.0  ;;  %v4792_v63 = vadd.f32 %v7142_v28, %v4781_v53  ;;  %v4802_v51 = vmax.f32 %v4798_v56, 0.0  ;;  %v4883_v3 = vadd.f32 %v7157_v57, %v6441_v48  ;;  %v4877_v4 = vpop.f32.mrb[71].mxu0  ;;  %v7167_v41 = vpop.f32.mrb[73].mxu1  ;;  %v5422_v53 = vld [vmem:[#allocation2 + $0x408] sm:$0xff] }
0x2a96   :  { %v4789_v10 = vadd.f32 %v4785_v49, %v4671_v20  ;;  %v5411_v6 = vadd.f32 %v6446_v27, %v5410_v29  ;;  %v4791_v2 = vadd.f32 %v4787_v62, %v4681_v42  ;;  %v4878_v34 = vadd.f32 %v6441_v48, %v4877_v4  ;;  %v5588_v42 = vld [vmem:[#allocation2 + $0x360] sm:$0xff]  ;;  %v5099_v54 = vpop.permute.xlu0 %5098  ;;  %v5590_v62 = vld [vmem:[#allocation2 + $0x370] sm:$0xff] }
0x2a97   :  { %v4897_v8 = vadd.f32 %v4883_v3, %v4802_v51  ;;  %v4800_v40 = vadd.f32 %v6440_v1, %v4792_v63  ;;  %v5421_v49 = vld [vmem:[#allocation2 + $0x400] sm:$0xff]  ;;  %v7399_v25 = vpack.c.bf16 %v5589_v43, %v5588_v42  ;;  %v8602_v52 = vcombine.high %v8589_v39, %v7644_v0  ;;  %v5591_v63 = vld [vmem:[#allocation2 + $0x378] sm:$0xff] }
0x2a98   :  { %v4797_v30 = vadd.f32 %v6440_v1, %v4789_v10  ;;  %v5414_v45 = vmax.f32 %v5411_v6, 0.0  ;;  %v7160_v14 = vpop.f32.mrb[72].mxu0  ;;  %v4799_v59 = vadd.f32 %v6440_v1, %v4791_v2  ;;  %v7378_v57 = vpack.c.bf16 %v5422_v53, %v5421_v49  ;;  %v5425_v42 = vld [vmem:[#allocation2 + $0x420] sm:$0xff] }
0x2a99   :  { %v4901_v58 = vmax.f32 %v4897_v8, 0.0  ;;  %v4804_v26 = vmax.f32 %v4800_v40, 0.0  ;;  %v4893_v31 = vadd.f32 %v7160_v14, %v6441_v48  ;;  %v4887_v21 = vpop.f32.mrb[73].mxu0  ;;  %v8617_v51 = vrot.slane %v4986_v24, %v8576_v16  ;;  %v5424_v14 = vld [vmem:[#allocation2 + $0x418] sm:$0xff] }
0x2a9a   :  { %v4801_v20 = vmax.f32 %v4797_v30, 0.0  ;;  %v4803_v33 = vmax.f32 %v4799_v59, 0.0  ;;  %v4888_v28 = vadd.f32 %v6441_v48, %v4887_v21  ;;  %7171 = vmatmul.mubr.msk.f32.vlgmr.msra.gmra.mrb[74].mxu1 %vm5258_vm2, %v5414_v45  ;;  %7379 = vmatpush1.bf16.msra.mxu0 %v7378_v57  ;;  %v8626_v2 = vcombine.high %v8596_v19, %v7644_v0  ;;  %v5593_v30 = vld [vmem:[#allocation2 + $0x388] sm:$0xff]  ;;  %v5423_v45 = vld [vmem:[#allocation2 + $0x410] sm:$0xff] }
0x2a9b   :  { %v4899_v50 = vadd.f32 %v4893_v31, %v4804_v26  ;;  %7394 = vmatpush1.bf16.msra.mxu1 %v7393_v12  ;;  %v5170_v47 = vmul.f32 %v5097_v32, %v4901_v58  ;;  %7380 = vmatprep.subr.bf16.mxu0 %v7648_v15  ;;  %v7402_v23 = vpack.c.bf16 %v5591_v63, %v5590_v62  ;;  %vm5079_vm8 = vcmask 195584  }
0x2a9c   :  { %v4896_v1 = vadd.f32 %v4878_v34, %v4801_v20  ;;  %v4898_v35 = vadd.f32 %v4888_v28, %v4803_v33  ;;  %7395 = vmatprep.subr.bf16.mxu1 %v7648_v15  ;;  %v8638_v17 = vcombine.high %v8617_v51, %v7644_v0  ;;  %v7381_v58 = vpack.c.bf16 %v5424_v14, %v5423_v45  ;;  %v5594_v28 = vld [vmem:[#allocation2 + $0x390] sm:$0xff] }
0x2a9d   :  { %v4903_v48 = vmax.f32 %v4899_v50, 0.0  ;;  %v5177_v18 = vrot.slane %v5170_v47, %v7734_v7  ;;  %v7405_v33 = vpack.c.bf16 %v5593_v30, %v5592_v11  ;;  %v5595_v50 = vld [vmem:[#allocation2 + $0x398] sm:$0xff]  ;;  %vm5602_vm1 = vcmask 130048  }
0x2a9e   :  { %v4900_v56 = vmax.f32 %v4896_v1, 0.0  ;;  %v4902_v27 = vmax.f32 %v4898_v35, 0.0  ;;  %7382 = vmatpush1.bf16.msra.mxu0 %v7381_v58  ;;  %v7408_v49 = vpack.c.bf16 %v5595_v50, %v5594_v28  ;;  %vm8758_vm7 = vcmask 785408  }
0x2a9f   :  { %v5178_v60 = vmul.f32 %v5099_v54, %v4903_v48  ;;  %7397 = vmatpush1.bf16.msra.mxu1 %v7396_v9  ;;  %7383 = vmatprep.subr.bf16.mxu0 %v7648_v15  ;;  %vm8759_vm6 = vmmov %vm8758_vm7 }
0x2aa0   :  { %v5102_v29 = vmul.f32 %v5097_v32, %v4900_v56  ;;  %v5103_v55 = vmul.f32 %v5099_v54, %v4902_v27  ;;  %7398 = vmatprep.subr.bf16.mxu1 %v7648_v15 }
0x2aa1   :  { %v5185_v61 = vrot.slane %v5178_v60, %v7734_v7 }
0x2aa2   :  { %v5104_v3 = vcombine.high %v5102_v29, %v7644_v0  ;;  %v5111_v4 = vrot.slane %v5102_v29, %v7734_v7  ;;  %v5119_v41 = vcombine.high %v5103_v55, %v7644_v0  ;;  %v5126_v10 = vrot.slane %v5103_v55, %v7734_v7  ;;  %v5597_v29 = vld [vmem:[#allocation2 + $0x3a8] sm:$0xff]  ;;  %v5427_v55 = vld [vmem:[#allocation2 + $0x430] sm:$0xff] }
0x2aa3   :  { %v5186_v6 = vcombine.low %v5177_v18, %v5185_v61  ;;  %v5187_v38 = vcombine.high %v5177_v18, %v5185_v61  ;;  %7400 = vmatpush1.bf16.msra.mxu1 %v7399_v25  ;;  %v5596_v25 = vld [vmem:[#allocation2 + $0x3a0] sm:$0xff] }
0x2aa4   :  { %v5118_v24 = vrot.slane %v5104_v3, %v7734_v7  ;;  %v5133_v8 = vrot.slane %v5119_v41, %v7734_v7  ;;  %v5134_v40 = vcombine.low %v5111_v4, %v5126_v10  ;;  %v5135_v12 = vcombine.high %v5111_v4, %v5126_v10  ;;  %7401 = vmatprep.subr.bf16.mxu1 %v7648_v15  ;;  %v5429_v3 = vld [vmem:[#allocation2 + $0x440] sm:$0xff]  ;;  %v5430_v4 = vld [vmem:[#allocation2 + $0x448] sm:$0xff] }
0x2aa5   :  { %v5194_v59 = vrot.slane %v5186_v6, %v8576_v16  ;;  %v8647_v9 = vrot.slane %v5187_v38, %v8576_v16  ;;  %v7411_v61 = vpack.c.bf16 %v5597_v29, %v5596_v25  ;;  %v5600_v10 = vld [vmem:[#allocation2 + $0x3c0] sm:$0xff]  ;;  %v5601_v6 = vld [vmem:[#allocation2 + $0x3c8] sm:$0xff]  ;;  %v5431_v38 = vld [vmem:[#allocation2 + $0x450] sm:$0xf] }
0x2aa6   :  { %v8641_v7 = vrot.slane %v5134_v40, %v8576_v16  ;;  %v5149_v26 = vrot.slane %v5135_v12, %v8576_v16  ;;  %v5150_v31 = vcombine.low %v5118_v24, %v5133_v8  ;;  %v5151_v21 = vcombine.high %v5118_v24, %v5133_v8 }
0x2aa7   :  { %v7470_v20 = vpack.i.bf16 %v5194_v59, %v8583_v5  ;;  %v5202_v34 = vcombine.high %v5194_v59, %v7644_v0  ;;  %7403 = vmatpush1.bf16.msra.mxu1 %v7402_v23  ;;  %v5426_v5 = vld [vmem:[#allocation2 + $0x428] sm:$0xff]  ;;  %v5037_v23 = vrot.slane %v5022_v37, %v8576_v16  ;;  %v5203_v11 = vcombine.high %v8647_v9, %v7644_v0 }
0x2aa8   :  { %v7475_v32 = vpack.i.bf16 %v5149_v26, %v8596_v19  ;;  %v5167_v1 = vcombine.high %v5149_v26, %v7644_v0  ;;  %v5158_v35 = vrot.slane %v5150_v31, %v8576_v16  ;;  %7404 = vmatprep.subr.bf16.mxu1 %v7648_v15  ;;  %v5166_v47 = vcombine.high %v8641_v7, %v7644_v0 }
0x2aa9   :  { %7471 = vrot.lane.b32.xlu0 %v7470_v20, %s7651_s3  ;;  %v7480_v43 = vpack.i.bf16 %v5202_v34, %v5030_v36  ;;  %v5165_v48 = vrot.slane %v5151_v21, %v8576_v16  ;;  %v7384_v19 = vpack.c.bf16 %v5426_v5, %v5425_v42  ;;  %v5428_v36 = vld [vmem:[#allocation2 + $0x438] sm:$0xff]  ;;  %s7657_s3 = smov 120  }
0x2aaa   :  { %v7490_v54 = vpack.i.bf16 %v5167_v1, %v8626_v2  ;;  %v7495_v56 = vpack.i.bf16 %v5158_v35, %v8611_v44  ;;  %v5168_v27 = vcombine.high %v5158_v35, %v7644_v0  ;;  %v7485_v62 = vpack.i.bf16 %v5166_v47, %v8602_v52  ;;  %v5598_v44 = vld [vmem:[#allocation2 + $0x3b0] sm:$0xff] }
0x2aab   :  { %7481 = vrot.lane.b32.xlu1 %v7480_v43, %s7656_s16  ;;  %v7500_v53 = vpack.i.bf16 %v5165_v48, %v8617_v51  ;;  %v5169_v60 = vcombine.high %v5165_v48, %v7644_v0  ;;  %7406 = vmatpush1.bf16.msra.mxu1 %v7405_v33  ;;  %v7387_v18 = vpack.c.bf16 %v5428_v36, %v5427_v55  ;;  %v5599_v51 = vld [vmem:[#allocation2 + $0x3b8] sm:$0xff] }
0x2aac   :  { %v7505_v57 = vpack.i.bf16 %v5168_v27, %v8634_v22  ;;  %7407 = vmatprep.subr.bf16.mxu1 %v7648_v15  ;;  %7385 = vmatpush1.bf16.msra.mxu0 %v7384_v19  ;;  %v7390_v52 = vpack.c.bf16 %v5430_v4, %v5429_v3  ;;  %v7414_v41 = vpack.c.bf16 %v5599_v51, %v5598_v44  ;;  %v5684_v4 = vld [vmem:[#allocation2 + $0x468] sm:$0xff] }
0x2aad   :  { %5241 = vrot.lane.b32.xlu0 %v8647_v9, %s7657_s3  ;;  %v7510_v63 = vpack.i.bf16 %v5169_v60, %v8638_v17  ;;  %7386 = vmatprep.subr.bf16.mxu0 %v7648_v15  ;;  %v7417_v2 = vpack.c.bf16 %v5601_v6, %v5600_v10 }
0x2aaf   :  { %7486 = vrot.lane.b32.xlu1 %v7485_v62, %s7658_s17  ;;  %7409 = vmatpush1.bf16.msra.mxu1 %v7408_v49 }
0x2ab0   :  { %7410 = vmatprep.subr.bf16.mxu1 %v7648_v15  ;;  %7388 = vmatpush1.bf16.msra.mxu0 %v7387_v18 }
0x2ab1   :  { %7476 = vrot.lane.b32.xlu0 %v7475_v32, %s7659_s18  ;;  %7389 = vmatprep.subr.bf16.mxu0 %v7648_v15 }
0x2ab3   :  { %7491 = vrot.lane.b32.xlu1 %v7490_v54, %s7660_s19  ;;  %7412 = vmatpush1.bf16.msra.mxu1 %v7411_v61 }
0x2ab4   :  { %7413 = vmatprep.subr.bf16.mxu1 %v7648_v15  ;;  %7391 = vmatpush1.bf16.msra.mxu0 %v7390_v52 }
0x2ab5   :  { %7496 = vrot.lane.b32.xlu0 %v7495_v56, %s7661_s20  ;;  %5469 = vmatprep.subr.mxu0 %v7644_v0 }
0x2ab7   :  { %7506 = vrot.lane.b32.xlu1 %v7505_v57, %s7662_s21  ;;  %7415 = vmatpush1.bf16.msra.mxu1 %v7414_v41 }
0x2ab8   :  { %7416 = vmatprep.subr.bf16.mxu1 %v7648_v15  ;;  %6449 = vmatpush1.msk.msra.mxu0 %vm3082_vm4, %v5431_v38 }
0x2ab9   :  { %7501 = vrot.lane.b32.xlu0 %v7500_v53, %s7663_s22  ;;  %7173 = vmatprep.subr.mxu0 %v7644_v0 }
0x2abb   :  { %7511 = vrot.lane.b32.xlu1 %v7510_v63, %s7664_s23  ;;  %7418 = vmatpush1.bf16.msra.mxu1 %v7417_v2  ;;  %v6454_v2 = vld [vmem:[#allocation2 + $0x460] ss:$0 sm:$0xff] }
0x2abc   :  { %7188 = vmatprep.subr.mxu1 %v7644_v0 }
0x2abd   :  { %5075 = vrot.lane.b32.xlu0 %v5037_v23, %s7657_s3 }
0x2abf   :  { %5245 = vrot.lane.b32.xlu1 %v5203_v11, %s7665_s24 }
0x2b1b   :  { %v7472_v24 = vpop.permute.xlu0 %7471 }
0x2b1c   :  { %v7474_v27 = vunpack.i.h.bf16 %v7472_v24  ;;  %v7473_v49 = vunpack.i.l.bf16 %v7472_v24 }
0x2b1d   :  { %v7482_v8 = vpop.permute.xlu1 %7481 }
0x2b1e   :  { %v7484_v60 = vunpack.i.h.bf16 %v7482_v8  ;;  %v7483_v19 = vunpack.i.l.bf16 %v7482_v8  ;;  %v5764_v8 = vld [vmem:[#allocation2 + $0x478] sm:$0xff] }
0x2b1f   :  { %v5242_v40 = vpop.permute.xlu0 %5241 }
0x2b21   :  { %v7487_v12 = vpop.permute.xlu1 %7486 }
0x2b22   :  { %v7489_v30 = vunpack.i.h.bf16 %v7487_v12  ;;  %v7488_v45 = vunpack.i.l.bf16 %v7487_v12 }
0x2b23   :  { %v7477_v14 = vpop.permute.xlu0 %7476 }
0x2b24   :  { %v5248_v46 = vsel %vm3087_vm3, %v8641_v7, %v7489_v30  ;;  %v5078_v13 = vsel %vm3087_vm3, %v8589_v39, %v7488_v45  ;;  %v7479_v37 = vunpack.i.h.bf16 %v7477_v14  ;;  %v7478_v16 = vunpack.i.l.bf16 %v7477_v14 }
0x2b25   :  { %v7492_v59 = vpop.permute.xlu1 %7491  ;;  %vm5087_vm3 = vcmask 588800  }
0x2b26   :  { %v5080_v22 = vsel %vm5079_vm8, %v5078_v13, %v7478_v16  ;;  %v5249_v17 = vsel %vm5079_vm8, %v5248_v46, %v7479_v37  ;;  %v7494_v58 = vunpack.i.h.bf16 %v7492_v59  ;;  %v7493_v26 = vunpack.i.l.bf16 %v7492_v59  ;;  %v6457_v46 = vld [vmem:[#allocation2 + $0x480] ss:$0 sm:$0xff] }
0x2b27   :  { %v7497_v31 = vpop.permute.xlu0 %7496 }
0x2b28   :  { %v5082_v21 = vsel %vm5081_vm11, %v5080_v22, %v7493_v26  ;;  %v5250_v20 = vsel %vm5081_vm11, %v5249_v17, %v7494_v58  ;;  %v7499_v7 = vunpack.i.h.bf16 %v7497_v31  ;;  %v7498_v34 = vunpack.i.l.bf16 %v7497_v31  ;;  %v5852_v17 = vld [vmem:[#allocation2 + $0x488] sm:$0xf]  ;;  %v63_v26 = vld [vmem:[%s8747_s5] sm:$0x3] }
0x2b29   :  { %v7507_v39 = vpop.permute.xlu1 %7506 }
0x2b2a   :  { %v5251_v33 = vsel %vm5083_vm12, %v5250_v20, %v7499_v7  ;;  %v5084_v28 = vsel %vm5083_vm12, %v5082_v21, %v7498_v34  ;;  %v7509_v50 = vunpack.i.h.bf16 %v7507_v39  ;;  %v7508_v9 = vunpack.i.l.bf16 %v7507_v39  ;;  %v5945_v7 = vld [vmem:[#allocation2 + $0x498] sm:$0xff] }
0x2b2b   :  { %v7502_v32 = vpop.permute.xlu0 %7501 }
0x2b2c   :  { %v5252_v1 = vsel %vm5085_vm14, %v5251_v33, %v7509_v50  ;;  %v5086_v35 = vsel %vm5085_vm14, %v5084_v28, %v7508_v9  ;;  %v7504_v42 = vunpack.i.h.bf16 %v7502_v32  ;;  %v7503_v5 = vunpack.i.l.bf16 %v7502_v32  ;;  %v6461_v9 = vld [vmem:[#allocation2 + $0x490] ss:$0 sm:$0xff] }
0x2b2d   :  { %v7512_v43 = vpop.permute.xlu1 %7511 }
0x2b2e   :  { %v5088_v47 = vsel %vm5087_vm3, %v5086_v35, %v7503_v5  ;;  %v5253_v48 = vsel %vm5087_vm3, %v5252_v1, %v7504_v42  ;;  %v7514_v54 = vunpack.i.h.bf16 %v7512_v43  ;;  %v7513_v56 = vunpack.i.l.bf16 %v7512_v43  ;;  %v6025_v42 = vld [vmem:[#allocation2 + $0x4a8] sm:$0xff]  ;;  %v6107_v5 = vld [vmem:[#allocation2 + $0x4d0] sm:$0x3f]  ;;  %v6462_v43 = vld [vmem:[#allocation2 + $0x4a0] ss:$0 sm:$0xff] }
0x2b2f   :  { %v5076_v53 = vpop.permute.xlu0 %5075 }
0x2b30   :  { %v5090_v25 = vsel %vm5089_vm15, %v5088_v47, %v7513_v56  ;;  %v5254_v57 = vsel %vm5089_vm15, %v5253_v48, %v7514_v54  ;;  %6450 = vmatprep.mubr.msk.f32.mxu0 %vm5258_vm2, %v5076_v53  ;;  %v6104_v47 = vld [vmem:[#allocation2 + $0x4b8] sm:$0xff]  ;;  %v6105_v48 = vld [vmem:[#allocation2 + $0x4c0] sm:$0xff] }
0x2b31   :  { %v5091_v29 = vsel %vm8758_vm7, %v5090_v25, %v7473_v49  ;;  %v5246_v55 = vpop.permute.xlu1 %5245  ;;  %v5255_v36 = vsel %vm8759_vm6, %v5254_v57, %v7474_v27  ;;  %v7420_v49 = vpack.c.bf16 %v6105_v48, %v6104_v47 }
0x2b32   :  { %v5093_v62 = vsel %vm5092_vm0, %v5091_v29, %v7483_v19  ;;  %v5259_v63 = vsel %vm5258_vm2, %v5242_v40, %v5246_v55  ;;  %v5256_v18 = vsel %vm5092_vm0, %v5255_v36, %v7484_v60  ;;  %v62_v60 = vld [vmem:[%s8746_s4] sm:$0x3]  ;;  %v6464_v19 = vld [vmem:[#allocation2 + $0x4b0] ss:$0 sm:$0xff] }
0x2b33   :  { %v5095_v61 = vsel %vm5094_vm5, %v5093_v62, %v5076_v53  ;;  %6453 = vmatprep.mubr.msk.f32.mxu1 %vm5602_vm1, %v5259_v63  ;;  %v5257_v44 = vsel %vm5094_vm5, %v5256_v18, %v5242_v40  ;;  %v6455_v40 = vld [vmem:[#allocation2 + $0x470] ss:$0 sm:$0xff]  ;;  %v6469_v63 = vld [vmem:[#allocation2 + $0x4d8] ss:$0 sm:$0xff] }
0x2b34   :  { %5502 = vmatmul.mubr.f32.vlgmr.msra.gmra.mrb[74].mxu0 %v5095_v61  ;;  %5671 = vmatmul.mubr.f32.vlgmr.msra.gmra.mrb[76].mxu1 %v5257_v44 }
0x2b35   :  { %7175 = vmatprep.mubr.msk.f32.mxu0 %vm8757_vm9, %v7644_v0  ;;  %7190 = vmatprep.mubr.msk.f32.mxu1 %vm8757_vm9, %v7644_v0 }
0x2b36   :  { %7174 = vmatpush3.msra.mxu0 %v5684_v4  ;;  %7189 = vmatpush3.msra.mxu1 %v5945_v7 }
0x2b37   :  { %7178 = vmatprep.subr.mxu0 %v7644_v0  ;;  %7198 = vmatprep.subr.mxu1 %v7644_v0 }
0x2b6d   :  { %v5580_v51 = vpop.f32.mrb[74].mxu1 }
0x2b6e   :  { %v7172_v3 = vpop.f32.mrb[75].mxu1 }
0x2c07   :  { %v5503_v52 = vpop.f32.mrb[74].mxu0  ;;  %v5672_v41 = vpop.f32.mrb[76].mxu1 }
0x2c08   :  { %v5673_v10 = vadd.f32 %v5672_v41, %v5503_v52  ;;  %v5674_v6 = vpop.f32.mrb[77].mxu1  ;;  %5854 = vrot.lane.b32.xlu0 %v5503_v52, %s7657_s3  ;;  %v5505_v38 = vpop.f32.mrb[75].mxu0 }
0x2c0a   :  { %v5676_v23 = vadd.f32 %v5673_v10, %v5580_v51 }
0x2c0c   :  { %v5682_v11 = vadd.f32 %v6454_v2, %v5676_v23 }
0x2c0e   :  { %v5683_v24 = vmax.f32 %v5682_v11, 0.0 }
0x2c10   :  { %7176 = vmatmul.mubr.msk.f32.vlgmr.msra.gmra.mrb[76].mxu0 %vm2098_vm13, %v5683_v24 }
0x2c11   :  { %7180 = vmatprep.mubr.msk.f32.mxu0 %vm8757_vm9, %v7644_v0  ;;  %7179 = vmatpush3.msra.mxu0 %v5764_v8 }
0x2c12   :  { %7183 = vmatprep.subr.mxu0 %v7644_v0 }
0x2c7a   :  { %v5855_v34 = vpop.permute.xlu0 %5854 }
0x2ce3   :  { %v5759_v12 = vpop.f32.mrb[76].mxu0 }
0x2ce4   :  { %v5760_v30 = vadd.f32 %v6455_v40, %v5759_v12  ;;  %v7177_v45 = vpop.f32.mrb[77].mxu0 }
0x2ce6   :  { %v5763_v14 = vmax.f32 %v5760_v30, 0.0 }
0x2ce8   :  { %7181 = vmatmul.mubr.msk.f32.vlgmr.msra.gmra.mrb[78].mxu0 %vm2098_vm13, %v5763_v14 }
0x2ce9   :  { %7185 = vmatprep.mubr.msk.f32.mxu0 %vm8757_vm9, %v7644_v0  ;;  %7184 = vmatpush3.msk.msra.mxu0 %vm3082_vm4, %v5852_v17  ;;  %vm6112_vm4 = vcmask 1045504  }
0x2cea   :  { %7193 = vmatprep.subr.mxu0 %v7644_v0 }
0x2dbb   :  { %v5839_v13 = vpop.f32.mrb[78].mxu0 }
0x2dbc   :  { %v5840_v37 = vadd.f32 %v6457_v46, %v5839_v13  ;;  %v7182_v16 = vpop.f32.mrb[79].mxu0 }
0x2dbe   :  { %v5843_v59 = vmul.f32 0.5, %v5840_v37  ;;  %6266 = vrot.lane.b32.xlu0 %v5840_v37, %s7660_s19 }
0x2dc0   :  { %v5844_v22 = vmul.f32 1.442695, %v5843_v59 }
0x2dc2   :  { %7615 = vpow2.f32 %v5844_v22 }
0x2dcc   :  { %v7616_v58 = vpop.eup %7615 }
0x2dcd   :  { %5847 = vrot.lane.b32.xlu1 %v7616_v58, %s7666_s0 }
0x2dd1   :  { %5934 = vrot.lane.b32.xlu1 %v5580_v51, %s7657_s3 }
0x2e30   :  { %v6267_v44 = vpop.permute.xlu0 %6266 }
0x2e3f   :  { %v5848_v31 = vpop.permute.xlu1 %5847 }
0x2e40   :  { %v5850_v21 = vmul.f32 %v5848_v31, %v63_v26 }
0x2e42   :  { %v5851_v20 = vadd.f32 %v5850_v21, %v5840_v37 }
0x2e43   :  { %v5935_v50 = vpop.permute.xlu1 %5934 }
0x2e44   :  { %7186 = vmatmul.mubr.msk.f32.vlgmr.msra.gmra.mrb[80].mxu0 %vm5258_vm2, %v5851_v20 }
0x2e45   :  { %7195 = vmatprep.mubr.msk.f32.mxu0 %vm8757_vm9, %v7644_v0  ;;  %7194 = vmatpush3.msra.mxu0 %v6025_v42 }
0x2e46   :  { %7419 = vmatprep.subr.bf16.mxu0 %v7648_v15  ;;  %v6106_v15 = vld [vmem:[#allocation2 + $0x4c8] sm:$0xff] }
0x2f17   :  { %v5929_v39 = vpop.f32.mrb[80].mxu0 }
0x2f18   :  { %v5930_v33 = vadd.f32 %v5929_v39, %v5855_v34  ;;  %v7187_v28 = vpop.f32.mrb[81].mxu0 }
0x2f1a   :  { %v5937_v32 = vadd.f32 %v5935_v50, %v5930_v33 }
0x2f1c   :  { %v5943_v1 = vadd.f32 %v6461_v9, %v5937_v32 }
0x2f1e   :  { %v5944_v35 = vmax.f32 %v5943_v1, 0.0 }
0x2f20   :  { %7191 = vmatmul.mubr.msk.f32.vlgmr.msra.gmra.mrb[78].mxu1 %vm2098_vm13, %v5944_v35 }
0x2f21   :  { %7200 = vmatprep.mubr.msk.f32.mxu1 %vm8757_vm9, %v7644_v0  ;;  %7199 = vmatpush3.msk.msra.mxu1 %vm6112_vm4, %v6107_v5 }
0x2f24   :  { %7201 = vmatmul.mubr.msk.f32.vlgmr.msra.gmra.mrb[80].mxu1 %vm6108_vm10, %v62_v60 }
0x2ff3   :  { %v6020_v54 = vpop.f32.mrb[78].mxu1 }
0x2ff4   :  { %v6021_v56 = vadd.f32 %v6462_v43, %v6020_v54  ;;  %v7192_v27 = vpop.f32.mrb[79].mxu1 }
0x2ff6   :  { %v6024_v53 = vmax.f32 %v6021_v56, 0.0 }
0x2ff7   :  { %v6182_v55 = vpop.f32.mrb[80].mxu1 }
0x2ff8   :  { %7196 = vmatmul.mubr.msk.f32.vlgmr.msra.gmra.mrb[82].mxu0 %vm2098_vm13, %v6024_v53  ;;  %v7202_v36 = vpop.f32.mrb[81].mxu1  ;;  %vm6270_vm13 = vcmask 359424  }
0x2ff9   :  { %7421 = vmatpush3.bf16.msra.mxu0 %v7420_v49  ;;  %7209 = vmatprep.mubr.msk.f32.mxu0 %vm8757_vm9, %v7644_v0 }
0x2ffa   :  { %7207 = vmatprep.subr.mxu0 %v7644_v0 }
0x2ffd   :  { %7208 = vmatpush3.msra.mxu0 %v6106_v15 }
0x30cb   :  { %v6100_v25 = vpop.f32.mrb[82].mxu0 }
0x30cc   :  { %v6101_v57 = vadd.f32 %v6464_v19, %v6100_v25  ;;  %v7197_v29 = vpop.f32.mrb[83].mxu0 }
0x30ce   :  { %7210 = vmatmul.mubr.msk.f32.vlgmr.msra.gmra.mrb[84].mxu0 %vm5079_vm8, %v6101_v57 }
0x31a1   :  { %v6255_v62 = vpop.f32.mrb[84].mxu0 }
0x31a2   :  { %v6256_v18 = vadd.f32 %v6255_v62, %v6182_v55  ;;  %v7211_v0 = vpop.f32.mrb[85].mxu0 }
0x31a4   :  { %v6264_v61 = vadd.f32 %v6469_v63, %v6256_v18 }
0x31a6   :  { %v6269_v51 = vsel %vm5081_vm11, %v6264_v61, %v6267_v44 }
0x31a7   :  { %v6271_v3 = vsel %vm6270_vm13, %v6269_v51, 0.0 }
0x31a8   :  { %6272 = vst [vmem:[%s8749_s7] sm:$0x3] %v6271_v3 }
0x31a9   :  { %6277 = vsyncpa [#allocation3], 1 }

</bundles_post_ra>
